<compile_context>
chip_gen: v7x
topology: tpu7x:2x2x1
jax: 0.10.0
libtpu: 0.0.40
codegen_flags: <defaults>
</compile_context>

<pallas_src>
import functools

import jax
import jax.numpy as jnp
from jax.experimental import pallas as pl
from jax.experimental.pallas import tpu as pltpu


# -----------------------------------------------------------------------------
# Fused InceptionA kernel (per image)
# -----------------------------------------------------------------------------
def _inception_a_kernel(x_ref, w123_ref, b123_ref, w4_ref, b4_ref,
                        w33_ref, b33_ref, o_ref, h_pad, y4_pad):
    H, W = o_ref.shape[1], o_ref.shape[2]
    Cin = x_ref.shape[3]
    C3 = w123_ref.shape[1]      # 3 * mid  (streams 1-3, concatenated)
    C1 = w4_ref.shape[1]        # mid      (stream 4)

    x2d = x_ref[0].reshape(H * W, Cin)

    # --- 1x1 stage ------------------------------------------------------------
    # streams 1-3: relu(x @ W123 + b123)    (BN scale folded into W123)
    h = jnp.dot(x2d, w123_ref[...], preferred_element_type=jnp.float32)
    h = jnp.maximum(h + b123_ref[...], 0.0)
    # stream 4: linear part only (BN scale and the pool's 1/9 folded into W4);
    # pooling, bias and relu are applied afterwards.
    y4 = jnp.dot(x2d, w4_ref[...], preferred_element_type=jnp.float32)

    # --- place into zero-padded VMEM scratch (conv / pool zero padding) -------
    h_pad[...] = jnp.zeros_like(h_pad)
    y4_pad[...] = jnp.zeros_like(y4_pad)
    h_pad[1:H + 1, 1:W + 1, :] = h.reshape(H, W, C3).astype(h_pad.dtype)
    y4_pad[1:H + 1, 1:W + 1, :] = y4.reshape(H, W, C1)

    # --- 3x3 stage: block-diag 3x3 conv (s1-3) + 3x3 avg-pool sum (s4) --------
    acc3 = jnp.zeros((H * W, C3), jnp.float32)
    acc4 = jnp.zeros((H, W, C1), jnp.float32)
    for ky in range(3):
        for kx in range(3):
            win = h_pad[ky:ky + H, kx:kx + W, :]
            acc3 = acc3 + jnp.dot(win.reshape(H * W, C3),
                                  w33_ref[3 * ky + kx],
                                  preferred_element_type=jnp.float32)
            acc4 = acc4 + y4_pad[ky:ky + H, kx:kx + W, :]

    s123 = jnp.maximum(acc3 + b33_ref[...], 0.0).reshape(H, W, C3)
    s4 = jnp.maximum(acc4 + b4_ref[...], 0.0)

    # lane-dense concatenated output slab: [s1 | s2 | s3 | s4]
    o_ref[0, :, :, :C3] = s123.astype(o_ref.dtype)
    o_ref[0, :, :, C3:] = s4.astype(o_ref.dtype)


# -----------------------------------------------------------------------------
# BN folding / weight merging (free JAX glue, done once per call)
# -----------------------------------------------------------------------------
def _fold_bn(p, eps=1e-5):
    scale = p["gamma"] / jnp.sqrt(p["var"] + eps)          # (Cout,)
    bias = (p["b"] - p["mean"]) * scale + p["beta"]         # (Cout,)
    return scale, bias


def _prep_params(params, compute_dtype):
    mid = params["s4"]["w"].shape[0]

    w1_list, b1_list, w3_list, b3_list = [], [], [], []
    for s in ("s1", "s2", "s3"):
        p1, p2 = params[s]
        sc1, bi1 = _fold_bn(p1)
        w1_list.append(p1["w"][:, :, 0, 0].T * sc1)              # (Cin, mid)
        b1_list.append(bi1)
        sc2, bi2 = _fold_bn(p2)
        w3_list.append(jnp.transpose(p2["w"], (2, 3, 1, 0)) * sc2)  # (3,3,mid,mid)
        b3_list.append(bi2)

    w123 = jnp.concatenate(w1_list, axis=1)                      # (Cin, 3*mid)
    b123 = jnp.concatenate(b1_list).reshape(1, -1)               # (1, 3*mid)

    # block-diagonal merged 3x3 weights, flattened taps: (9, 3*mid, 3*mid)
    C3 = 3 * mid
    w33 = jnp.zeros((3, 3, C3, C3), jnp.float32)
    for i, w in enumerate(w3_list):
        w33 = w33.at[:, :, i * mid:(i + 1) * mid,
                     i * mid:(i + 1) * mid].set(w)
    w33 = w33.reshape(9, C3, C3)
    b33 = jnp.concatenate(b3_list).reshape(1, -1)                # (1, 3*mid)

    p4 = params["s4"]
    sc4, bi4 = _fold_bn(p4)
    w4 = p4["w"][:, :, 0, 0].T * (sc4 / 9.0)   # avg-pool's 1/9 folded into W4
    b4 = bi4.reshape(1, -1)

    cd = compute_dtype
    return (w123.astype(cd), b123.astype(jnp.float32),
            w4.astype(cd), b4.astype(jnp.float32),
            w33.astype(cd), b33.astype(jnp.float32), mid)


# -----------------------------------------------------------------------------
# Public forward
# -----------------------------------------------------------------------------
@functools.partial(jax.jit, static_argnames=("compute_dtype",))
def inception_a_forward(x_nchw, params, compute_dtype=jnp.float32):
    x = jnp.transpose(x_nchw, (0, 2, 3, 1))                      # NCHW -> NHWC
    N, H, W, Cin = x.shape
    w123, b123, w4, b4, w33, b33, mid = _prep_params(params, compute_dtype)
    C3, Cout = 3 * mid, 4 * mid

    out = pl.pallas_call(
        _inception_a_kernel,
        out_shape=jax.ShapeDtypeStruct((N, H, W, Cout), x_nchw.dtype),
        grid_spec=pltpu.PrefetchScalarGridSpec(
            num_scalar_prefetch=0,
            grid=(N,),
            in_specs=[
                pl.BlockSpec((1, H, W, Cin), lambda n: (n, 0, 0, 0)),
                pl.BlockSpec((Cin, C3), lambda n: (0, 0)),
                pl.BlockSpec((1, C3), lambda n: (0, 0)),
                pl.BlockSpec((Cin, mid), lambda n: (0, 0)),
                pl.BlockSpec((1, mid), lambda n: (0, 0)),
                pl.BlockSpec((9, C3, C3), lambda n: (0, 0, 0)),
                pl.BlockSpec((1, C3), lambda n: (0, 0)),
            ],
            out_specs=pl.BlockSpec((1, H, W, Cout), lambda n: (n, 0, 0, 0)),
            scratch_shapes=[
                pltpu.VMEM((H + 2, W + 2, C3), compute_dtype),   # padded h123
                pltpu.VMEM((H + 2, W + 2, mid), jnp.float32),    # padded y4
            ],
        ),
        compiler_params=pltpu.CompilerParams(
            dimension_semantics=("parallel",),
            vmem_limit_bytes=32 * 1024 * 1024,
        ),
    )(x.astype(compute_dtype), w123, b123, w4, b4, w33, b33)

    return jnp.transpose(out, (0, 3, 1, 2))                      # NHWC -> NCHW


# -----------------------------------------------------------------------------
# Parameter init (mimics ConvBlock = Conv2d + BatchNorm2d, eval mode)
# -----------------------------------------------------------------------------
def init_convblock_params(key, in_c, out_c, k):
    k1, k2, k3, k4, k5, k6 = jax.random.split(key, 6)
    return dict(
        w=0.1 * jax.random.normal(k1, (out_c, in_c, k, k), jnp.float32),
        b=0.05 * jax.random.normal(k2, (out_c,), jnp.float32),
        gamma=1.0 + 0.1 * jax.random.normal(k3, (out_c,), jnp.float32),
        beta=0.1 * jax.random.normal(k4, (out_c,), jnp.float32),
        mean=0.05 * jax.random.normal(k5, (out_c,), jnp.float32),
        var=1.0 + 0.1 * jnp.abs(jax.random.normal(k6, (out_c,), jnp.float32)),
    )


def init_inception_a_params(key, in_channels, out_channels):
    mid = out_channels // 4
    keys = jax.random.split(key, 7)
    return dict(
        s1=(init_convblock_params(keys[0], in_channels, mid, 1),
            init_convblock_params(keys[1], mid, mid, 3)),
        s2=(init_convblock_params(keys[2], in_channels, mid, 1),
            init_convblock_params(keys[3], mid, mid, 3)),
        s3=(init_convblock_params(keys[4], in_channels, mid, 1),
            init_convblock_params(keys[5], mid, mid, 3)),
        s4=init_convblock_params(keys[6], in_channels, mid, 1),
    )


# -----------------------------------------------------------------------------
# Pure-JAX reference (sanity check)
# -----------------------------------------------------------------------------
def _ref_convblock(x_nhwc, p, pad):
    w_hwio = jnp.transpose(p["w"], (2, 3, 1, 0))
    y = jax.lax.conv_general_dilated(
        x_nhwc, w_hwio, window_strides=(1, 1),
        padding=((pad, pad), (pad, pad)),
        dimension_numbers=("NHWC", "HWIO", "NHWC"))
    y = y + p["b"]
    y = (y - p["mean"]) / jnp.sqrt(p["var"] + 1e-5) * p["gamma"] + p["beta"]
    return jnp.maximum(y, 0.0)


def _ref_forward(x_nchw, params):
    x = jnp.transpose(x_nchw, (0, 2, 3, 1))
    outs = []
    for s in ("s1", "s2", "s3"):
        p1, p2 = params[s]
        h = _ref_convblock(x, p1, 0)
        h = _ref_convblock(h, p2, 1)
        outs.append(h)
    pooled = jax.lax.reduce_window(
        x, 0.0, jax.lax.add, (1, 3, 3, 1), (1, 1, 1, 1),
        padding=((0, 0), (1, 1), (1, 1), (0, 0))) / 9.0
    outs.append(_ref_convblock(pooled, params["s4"], 0))
    y = jnp.concatenate(outs, axis=-1)
    return jnp.transpose(y, (0, 3, 1, 2))


if __name__ == "__main__":
    key = jax.random.PRNGKey(0)
    k_x, k_p = jax.random.split(key)

    N, Cin, H, W = 2, 4, 16, 16
    out_channels = 16            # -> mid = 4 per stream, concat back to 16
    x = jax.random.normal(k_x, (N, Cin, H, W), jnp.float32)
    params = init_inception_a_params(k_p, Cin, out_channels)

    # f32 path: exact match against the pure-JAX reference.
    y = jax.block_until_ready(inception_a_forward(x, params))
    assert y.shape == (N, out_channels, H, W), y.shape

    y_ref = _ref_forward(x, params)
    max_err = float(jnp.max(jnp.abs(y - y_ref)))
    assert max_err < 1e-4, f"f32 mismatch vs reference: {max_err}"

    # bf16 activations/weights (f32 accumulate) perf path: loose tolerance.
    y_bf16 = jax.block_until_ready(
        inception_a_forward(x, params, compute_dtype=jnp.bfloat16))
    bf16_err = float(jnp.max(jnp.abs(y_bf16 - y_ref)))
    assert bf16_err < 1e-1, f"bf16 mismatch vs reference: {bf16_err}"

    print("KERNEL_OK")
</pallas_src>

<mosaic_0001>
module attributes {stable_mosaic.version = 11 : i64} {
  func.func @_inception_a_kernel(%arg0: i32, %arg1: memref<1x16x16x4xf32, #tpu.memory_space<vmem>>, %arg2: memref<4x12xf32, #tpu.memory_space<vmem>>, %arg3: memref<1x12xf32, #tpu.memory_space<vmem>>, %arg4: memref<4x4xf32, #tpu.memory_space<vmem>>, %arg5: memref<1x4xf32, #tpu.memory_space<vmem>>, %arg6: memref<9x12x12xf32, #tpu.memory_space<vmem>>, %arg7: memref<1x12xf32, #tpu.memory_space<vmem>>, %arg8: memref<1x16x16x16xf32, #tpu.memory_space<vmem>>, %arg9: memref<18x18x12xf32, #tpu.memory_space<vmem>>, %arg10: memref<18x18x4xf32, #tpu.memory_space<vmem>>) attributes {dimension_semantics = [#tpu.dimension_semantics<parallel>], iteration_bounds = array<i64: 2>, scalar_prefetch = 0 : i64, scratch_operands = 2 : i64, tpu.core_type = #tpu.core_type<tc>, window_params = [{transform_indices = @transform_0, window_bounds = array<i64: 1, 16, 16, 4>}, {pipeline_mode = #tpu.pipeline_mode<synchronous>, transform_indices = @transform_1, window_bounds = array<i64: 4, 12>}, {pipeline_mode = #tpu.pipeline_mode<synchronous>, transform_indices = @transform_2, window_bounds = array<i64: 1, 12>}, {pipeline_mode = #tpu.pipeline_mode<synchronous>, transform_indices = @transform_3, window_bounds = array<i64: 4, 4>}, {pipeline_mode = #tpu.pipeline_mode<synchronous>, transform_indices = @transform_4, window_bounds = array<i64: 1, 4>}, {pipeline_mode = #tpu.pipeline_mode<synchronous>, transform_indices = @transform_5, window_bounds = array<i64: 9, 12, 12>}, {pipeline_mode = #tpu.pipeline_mode<synchronous>, transform_indices = @transform_6, window_bounds = array<i64: 1, 12>}, {transform_indices = @transform_7, window_bounds = array<i64: 1, 16, 16, 16>}]} {
    %c0 = arith.constant 0 : index
    %c0_0 = arith.constant 0 : index
    %c0_1 = arith.constant 0 : index
    %c0_2 = arith.constant 0 : index
    %0 = vector.load %arg1[%c0, %c0_0, %c0_1, %c0_2] : memref<1x16x16x4xf32, #tpu.memory_space<vmem>>, vector<1x16x16x4xf32>
    %1 = vector.shape_cast %0 : vector<1x16x16x4xf32> to vector<16x16x4xf32>
    %2 = vector.shape_cast %1 : vector<16x16x4xf32> to vector<256x4xf32>
    %c0_3 = arith.constant 0 : index
    %c0_4 = arith.constant 0 : index
    %3 = vector.load %arg2[%c0_3, %c0_4] : memref<4x12xf32, #tpu.memory_space<vmem>>, vector<4x12xf32>
    %cst = arith.constant dense<0.000000e+00> : vector<256x12xf32>
    %4 = tpu.matmul %2, %3, %cst {dimension_numbers = #tpu.dot_dimension_numbers<[1], [0], [0], [1], [0, 0, 1, 1], [], []>} : vector<256x4xf32>, vector<4x12xf32>, vector<256x12xf32> -> vector<256x12xf32>
    %c0_5 = arith.constant 0 : index
    %c0_6 = arith.constant 0 : index
    %5 = vector.load %arg3[%c0_5, %c0_6] : memref<1x12xf32, #tpu.memory_space<vmem>>, vector<1x12xf32>
    %6 = vector.broadcast %5 : vector<1x12xf32> to vector<256x12xf32>
    %7 = arith.addf %4, %6 : vector<256x12xf32>
    %cst_7 = arith.constant 0.000000e+00 : f32
    %8 = vector.broadcast %cst_7 : f32 to vector<256x12xf32>
    %9 = arith.maximumf %7, %8 : vector<256x12xf32>
    %c0_8 = arith.constant 0 : index
    %c0_9 = arith.constant 0 : index
    %10 = vector.load %arg4[%c0_8, %c0_9] : memref<4x4xf32, #tpu.memory_space<vmem>>, vector<4x4xf32>
    %cst_10 = arith.constant dense<0.000000e+00> : vector<256x4xf32>
    %11 = tpu.matmul %2, %10, %cst_10 {dimension_numbers = #tpu.dot_dimension_numbers<[1], [0], [0], [1], [0, 0, 1, 1], [], []>} : vector<256x4xf32>, vector<4x4xf32>, vector<256x4xf32> -> vector<256x4xf32>
    %cst_11 = arith.constant 0.000000e+00 : f32
    %12 = vector.broadcast %cst_11 : f32 to vector<18x18x12xf32>
    %c0_12 = arith.constant 0 : index
    %c0_13 = arith.constant 0 : index
    %c0_14 = arith.constant 0 : index
    %13 = vector.load %arg9[%c0_12, %c0_13, %c0_14] : memref<18x18x12xf32, #tpu.memory_space<vmem>>, vector<18x18x12xf32>
    tpu.vector_store %arg9[%c0_12, %c0_13, %c0_14], %12 {strides = array<i32>} : memref<18x18x12xf32, #tpu.memory_space<vmem>>, vector<18x18x12xf32>,
    %cst_15 = arith.constant 0.000000e+00 : f32
    %14 = vector.broadcast %cst_15 : f32 to vector<18x18x4xf32>
    %c0_16 = arith.constant 0 : index
    %c0_17 = arith.constant 0 : index
    %c0_18 = arith.constant 0 : index
    %15 = vector.load %arg10[%c0_16, %c0_17, %c0_18] : memref<18x18x4xf32, #tpu.memory_space<vmem>>, vector<18x18x4xf32>
    tpu.vector_store %arg10[%c0_16, %c0_17, %c0_18], %14 {strides = array<i32>} : memref<18x18x4xf32, #tpu.memory_space<vmem>>, vector<18x18x4xf32>,
    %16 = vector.shape_cast %9 : vector<256x12xf32> to vector<16x16x12xf32>
    %c1 = arith.constant 1 : index
    %c1_19 = arith.constant 1 : index
    %c0_20 = arith.constant 0 : index
    %17 = vector.load %arg9[%c1, %c1_19, %c0_20] : memref<18x18x12xf32, #tpu.memory_space<vmem>>, vector<16x16x12xf32>
    tpu.vector_store %arg9[%c1, %c1_19, %c0_20], %16 {strides = array<i32>} : memref<18x18x12xf32, #tpu.memory_space<vmem>>, vector<16x16x12xf32>,
    %18 = vector.shape_cast %11 : vector<256x4xf32> to vector<16x16x4xf32>
    %c1_21 = arith.constant 1 : index
    %c1_22 = arith.constant 1 : index
    %c0_23 = arith.constant 0 : index
    %19 = vector.load %arg10[%c1_21, %c1_22, %c0_23] : memref<18x18x4xf32, #tpu.memory_space<vmem>>, vector<16x16x4xf32>
    tpu.vector_store %arg10[%c1_21, %c1_22, %c0_23], %18 {strides = array<i32>} : memref<18x18x4xf32, #tpu.memory_space<vmem>>, vector<16x16x4xf32>,
    %cst_24 = arith.constant 0.000000e+00 : f32
    %20 = vector.broadcast %cst_24 : f32 to vector<256x12xf32>
    %cst_25 = arith.constant 0.000000e+00 : f32
    %21 = vector.broadcast %cst_25 : f32 to vector<16x16x4xf32>
    %c0_26 = arith.constant 0 : index
    %c0_27 = arith.constant 0 : index
    %c0_28 = arith.constant 0 : index
    %22 = vector.load %arg9[%c0_26, %c0_27, %c0_28] : memref<18x18x12xf32, #tpu.memory_space<vmem>>, vector<16x16x12xf32>
    %23 = vector.shape_cast %22 : vector<16x16x12xf32> to vector<256x12xf32>
    %c0_29 = arith.constant 0 : index
    %c0_30 = arith.constant 0 : index
    %c0_31 = arith.constant 0 : index
    %24 = vector.load %arg6[%c0_29, %c0_30, %c0_31] : memref<9x12x12xf32, #tpu.memory_space<vmem>>, vector<1x12x12xf32>
    %25 = vector.shape_cast %24 : vector<1x12x12xf32> to vector<12x12xf32>
    %cst_32 = arith.constant dense<0.000000e+00> : vector<256x12xf32>
    %26 = tpu.matmul %23, %25, %cst_32 {dimension_numbers = #tpu.dot_dimension_numbers<[1], [0], [0], [1], [0, 0, 1, 1], [], []>} : vector<256x12xf32>, vector<12x12xf32>, vector<256x12xf32> -> vector<256x12xf32>
    %27 = arith.addf %20, %26 : vector<256x12xf32>
    %c0_33 = arith.constant 0 : index
    %c0_34 = arith.constant 0 : index
    %c0_35 = arith.constant 0 : index
    %28 = vector.load %arg10[%c0_33, %c0_34, %c0_35] : memref<18x18x4xf32, #tpu.memory_space<vmem>>, vector<16x16x4xf32>
    %29 = arith.addf %21, %28 : vector<16x16x4xf32>
    %c0_36 = arith.constant 0 : index
    %c1_37 = arith.constant 1 : index
    %c0_38 = arith.constant 0 : index
    %30 = vector.load %arg9[%c0_36, %c1_37, %c0_38] : memref<18x18x12xf32, #tpu.memory_space<vmem>>, vector<16x16x12xf32>
    %31 = vector.shape_cast %30 : vector<16x16x12xf32> to vector<256x12xf32>
    %c1_39 = arith.constant 1 : index
    %c0_40 = arith.constant 0 : index
    %c0_41 = arith.constant 0 : index
    %32 = vector.load %arg6[%c1_39, %c0_40, %c0_41] : memref<9x12x12xf32, #tpu.memory_space<vmem>>, vector<1x12x12xf32>
    %33 = vector.shape_cast %32 : vector<1x12x12xf32> to vector<12x12xf32>
    %cst_42 = arith.constant dense<0.000000e+00> : vector<256x12xf32>
    %34 = tpu.matmul %31, %33, %cst_42 {dimension_numbers = #tpu.dot_dimension_numbers<[1], [0], [0], [1], [0, 0, 1, 1], [], []>} : vector<256x12xf32>, vector<12x12xf32>, vector<256x12xf32> -> vector<256x12xf32>
    %35 = arith.addf %27, %34 : vector<256x12xf32>
    %c0_43 = arith.constant 0 : index
    %c1_44 = arith.constant 1 : index
    %c0_45 = arith.constant 0 : index
    %36 = vector.load %arg10[%c0_43, %c1_44, %c0_45] : memref<18x18x4xf32, #tpu.memory_space<vmem>>, vector<16x16x4xf32>
    %37 = arith.addf %29, %36 : vector<16x16x4xf32>
    %c0_46 = arith.constant 0 : index
    %c2 = arith.constant 2 : index
    %c0_47 = arith.constant 0 : index
    %38 = vector.load %arg9[%c0_46, %c2, %c0_47] : memref<18x18x12xf32, #tpu.memory_space<vmem>>, vector<16x16x12xf32>
    %39 = vector.shape_cast %38 : vector<16x16x12xf32> to vector<256x12xf32>
    %c2_48 = arith.constant 2 : index
    %c0_49 = arith.constant 0 : index
    %c0_50 = arith.constant 0 : index
    %40 = vector.load %arg6[%c2_48, %c0_49, %c0_50] : memref<9x12x12xf32, #tpu.memory_space<vmem>>, vector<1x12x12xf32>
    %41 = vector.shape_cast %40 : vector<1x12x12xf32> to vector<12x12xf32>
    %cst_51 = arith.constant dense<0.000000e+00> : vector<256x12xf32>
    %42 = tpu.matmul %39, %41, %cst_51 {dimension_numbers = #tpu.dot_dimension_numbers<[1], [0], [0], [1], [0, 0, 1, 1], [], []>} : vector<256x12xf32>, vector<12x12xf32>, vector<256x12xf32> -> vector<256x12xf32>
    %43 = arith.addf %35, %42 : vector<256x12xf32>
    %c0_52 = arith.constant 0 : index
    %c2_53 = arith.constant 2 : index
    %c0_54 = arith.constant 0 : index
    %44 = vector.load %arg10[%c0_52, %c2_53, %c0_54] : memref<18x18x4xf32, #tpu.memory_space<vmem>>, vector<16x16x4xf32>
    %45 = arith.addf %37, %44 : vector<16x16x4xf32>
    %c1_55 = arith.constant 1 : index
    %c0_56 = arith.constant 0 : index
    %c0_57 = arith.constant 0 : index
    %46 = vector.load %arg9[%c1_55, %c0_56, %c0_57] : memref<18x18x12xf32, #tpu.memory_space<vmem>>, vector<16x16x12xf32>
    %47 = vector.shape_cast %46 : vector<16x16x12xf32> to vector<256x12xf32>
    %c3 = arith.constant 3 : index
    %c0_58 = arith.constant 0 : index
    %c0_59 = arith.constant 0 : index
    %48 = vector.load %arg6[%c3, %c0_58, %c0_59] : memref<9x12x12xf32, #tpu.memory_space<vmem>>, vector<1x12x12xf32>
    %49 = vector.shape_cast %48 : vector<1x12x12xf32> to vector<12x12xf32>
    %cst_60 = arith.constant dense<0.000000e+00> : vector<256x12xf32>
    %50 = tpu.matmul %47, %49, %cst_60 {dimension_numbers = #tpu.dot_dimension_numbers<[1], [0], [0], [1], [0, 0, 1, 1], [], []>} : vector<256x12xf32>, vector<12x12xf32>, vector<256x12xf32> -> vector<256x12xf32>
    %51 = arith.addf %43, %50 : vector<256x12xf32>
    %c1_61 = arith.constant 1 : index
    %c0_62 = arith.constant 0 : index
    %c0_63 = arith.constant 0 : index
    %52 = vector.load %arg10[%c1_61, %c0_62, %c0_63] : memref<18x18x4xf32, #tpu.memory_space<vmem>>, vector<16x16x4xf32>
    %53 = arith.addf %45, %52 : vector<16x16x4xf32>
    %c1_64 = arith.constant 1 : index
    %c1_65 = arith.constant 1 : index
    %c0_66 = arith.constant 0 : index
    %54 = vector.load %arg9[%c1_64, %c1_65, %c0_66] : memref<18x18x12xf32, #tpu.memory_space<vmem>>, vector<16x16x12xf32>
    %55 = vector.shape_cast %54 : vector<16x16x12xf32> to vector<256x12xf32>
    %c4 = arith.constant 4 : index
    %c0_67 = arith.constant 0 : index
    %c0_68 = arith.constant 0 : index
    %56 = vector.load %arg6[%c4, %c0_67, %c0_68] : memref<9x12x12xf32, #tpu.memory_space<vmem>>, vector<1x12x12xf32>
    %57 = vector.shape_cast %56 : vector<1x12x12xf32> to vector<12x12xf32>
    %cst_69 = arith.constant dense<0.000000e+00> : vector<256x12xf32>
    %58 = tpu.matmul %55, %57, %cst_69 {dimension_numbers = #tpu.dot_dimension_numbers<[1], [0], [0], [1], [0, 0, 1, 1], [], []>} : vector<256x12xf32>, vector<12x12xf32>, vector<256x12xf32> -> vector<256x12xf32>
    %59 = arith.addf %51, %58 : vector<256x12xf32>
    %c1_70 = arith.constant 1 : index
    %c1_71 = arith.constant 1 : index
    %c0_72 = arith.constant 0 : index
    %60 = vector.load %arg10[%c1_70, %c1_71, %c0_72] : memref<18x18x4xf32, #tpu.memory_space<vmem>>, vector<16x16x4xf32>
    %61 = arith.addf %53, %60 : vector<16x16x4xf32>
    %c1_73 = arith.constant 1 : index
    %c2_74 = arith.constant 2 : index
    %c0_75 = arith.constant 0 : index
    %62 = vector.load %arg9[%c1_73, %c2_74, %c0_75] : memref<18x18x12xf32, #tpu.memory_space<vmem>>, vector<16x16x12xf32>
    %63 = vector.shape_cast %62 : vector<16x16x12xf32> to vector<256x12xf32>
    %c5 = arith.constant 5 : index
    %c0_76 = arith.constant 0 : index
    %c0_77 = arith.constant 0 : index
    %64 = vector.load %arg6[%c5, %c0_76, %c0_77] : memref<9x12x12xf32, #tpu.memory_space<vmem>>, vector<1x12x12xf32>
    %65 = vector.shape_cast %64 : vector<1x12x12xf32> to vector<12x12xf32>
    %cst_78 = arith.constant dense<0.000000e+00> : vector<256x12xf32>
    %66 = tpu.matmul %63, %65, %cst_78 {dimension_numbers = #tpu.dot_dimension_numbers<[1], [0], [0], [1], [0, 0, 1, 1], [], []>} : vector<256x12xf32>, vector<12x12xf32>, vector<256x12xf32> -> vector<256x12xf32>
    %67 = arith.addf %59, %66 : vector<256x12xf32>
    %c1_79 = arith.constant 1 : index
    %c2_80 = arith.constant 2 : index
    %c0_81 = arith.constant 0 : index
    %68 = vector.load %arg10[%c1_79, %c2_80, %c0_81] : memref<18x18x4xf32, #tpu.memory_space<vmem>>, vector<16x16x4xf32>
    %69 = arith.addf %61, %68 : vector<16x16x4xf32>
    %c2_82 = arith.constant 2 : index
    %c0_83 = arith.constant 0 : index
    %c0_84 = arith.constant 0 : index
    %70 = vector.load %arg9[%c2_82, %c0_83, %c0_84] : memref<18x18x12xf32, #tpu.memory_space<vmem>>, vector<16x16x12xf32>
    %71 = vector.shape_cast %70 : vector<16x16x12xf32> to vector<256x12xf32>
    %c6 = arith.constant 6 : index
    %c0_85 = arith.constant 0 : index
    %c0_86 = arith.constant 0 : index
    %72 = vector.load %arg6[%c6, %c0_85, %c0_86] : memref<9x12x12xf32, #tpu.memory_space<vmem>>, vector<1x12x12xf32>
    %73 = vector.shape_cast %72 : vector<1x12x12xf32> to vector<12x12xf32>
    %cst_87 = arith.constant dense<0.000000e+00> : vector<256x12xf32>
    %74 = tpu.matmul %71, %73, %cst_87 {dimension_numbers = #tpu.dot_dimension_numbers<[1], [0], [0], [1], [0, 0, 1, 1], [], []>} : vector<256x12xf32>, vector<12x12xf32>, vector<256x12xf32> -> vector<256x12xf32>
    %75 = arith.addf %67, %74 : vector<256x12xf32>
    %c2_88 = arith.constant 2 : index
    %c0_89 = arith.constant 0 : index
    %c0_90 = arith.constant 0 : index
    %76 = vector.load %arg10[%c2_88, %c0_89, %c0_90] : memref<18x18x4xf32, #tpu.memory_space<vmem>>, vector<16x16x4xf32>
    %77 = arith.addf %69, %76 : vector<16x16x4xf32>
    %c2_91 = arith.constant 2 : index
    %c1_92 = arith.constant 1 : index
    %c0_93 = arith.constant 0 : index
    %78 = vector.load %arg9[%c2_91, %c1_92, %c0_93] : memref<18x18x12xf32, #tpu.memory_space<vmem>>, vector<16x16x12xf32>
    %79 = vector.shape_cast %78 : vector<16x16x12xf32> to vector<256x12xf32>
    %c7 = arith.constant 7 : index
    %c0_94 = arith.constant 0 : index
    %c0_95 = arith.constant 0 : index
    %80 = vector.load %arg6[%c7, %c0_94, %c0_95] : memref<9x12x12xf32, #tpu.memory_space<vmem>>, vector<1x12x12xf32>
    %81 = vector.shape_cast %80 : vector<1x12x12xf32> to vector<12x12xf32>
    %cst_96 = arith.constant dense<0.000000e+00> : vector<256x12xf32>
    %82 = tpu.matmul %79, %81, %cst_96 {dimension_numbers = #tpu.dot_dimension_numbers<[1], [0], [0], [1], [0, 0, 1, 1], [], []>} : vector<256x12xf32>, vector<12x12xf32>, vector<256x12xf32> -> vector<256x12xf32>
    %83 = arith.addf %75, %82 : vector<256x12xf32>
    %c2_97 = arith.constant 2 : index
    %c1_98 = arith.constant 1 : index
    %c0_99 = arith.constant 0 : index
    %84 = vector.load %arg10[%c2_97, %c1_98, %c0_99] : memref<18x18x4xf32, #tpu.memory_space<vmem>>, vector<16x16x4xf32>
    %85 = arith.addf %77, %84 : vector<16x16x4xf32>
    %c2_100 = arith.constant 2 : index
    %c2_101 = arith.constant 2 : index
    %c0_102 = arith.constant 0 : index
    %86 = vector.load %arg9[%c2_100, %c2_101, %c0_102] : memref<18x18x12xf32, #tpu.memory_space<vmem>>, vector<16x16x12xf32>
    %87 = vector.shape_cast %86 : vector<16x16x12xf32> to vector<256x12xf32>
    %c8 = arith.constant 8 : index
    %c0_103 = arith.constant 0 : index
    %c0_104 = arith.constant 0 : index
    %88 = vector.load %arg6[%c8, %c0_103, %c0_104] : memref<9x12x12xf32, #tpu.memory_space<vmem>>, vector<1x12x12xf32>
    %89 = vector.shape_cast %88 : vector<1x12x12xf32> to vector<12x12xf32>
    %cst_105 = arith.constant dense<0.000000e+00> : vector<256x12xf32>
    %90 = tpu.matmul %87, %89, %cst_105 {dimension_numbers = #tpu.dot_dimension_numbers<[1], [0], [0], [1], [0, 0, 1, 1], [], []>} : vector<256x12xf32>, vector<12x12xf32>, vector<256x12xf32> -> vector<256x12xf32>
    %91 = arith.addf %83, %90 : vector<256x12xf32>
    %c2_106 = arith.constant 2 : index
    %c2_107 = arith.constant 2 : index
    %c0_108 = arith.constant 0 : index
    %92 = vector.load %arg10[%c2_106, %c2_107, %c0_108] : memref<18x18x4xf32, #tpu.memory_space<vmem>>, vector<16x16x4xf32>
    %93 = arith.addf %85, %92 : vector<16x16x4xf32>
    %c0_109 = arith.constant 0 : index
    %c0_110 = arith.constant 0 : index
    %94 = vector.load %arg7[%c0_109, %c0_110] : memref<1x12xf32, #tpu.memory_space<vmem>>, vector<1x12xf32>
    %95 = vector.broadcast %94 : vector<1x12xf32> to vector<256x12xf32>
    %96 = arith.addf %91, %95 : vector<256x12xf32>
    %cst_111 = arith.constant 0.000000e+00 : f32
    %97 = vector.broadcast %cst_111 : f32 to vector<256x12xf32>
    %98 = arith.maximumf %96, %97 : vector<256x12xf32>
    %99 = vector.shape_cast %98 : vector<256x12xf32> to vector<16x16x12xf32>
    %c0_112 = arith.constant 0 : index
    %c0_113 = arith.constant 0 : index
    %100 = vector.load %arg5[%c0_112, %c0_113] : memref<1x4xf32, #tpu.memory_space<vmem>>, vector<1x4xf32>
    %101 = vector.shape_cast %100 : vector<1x4xf32> to vector<1x1x4xf32>
    %102 = vector.broadcast %101 : vector<1x1x4xf32> to vector<16x16x4xf32>
    %103 = arith.addf %93, %102 : vector<16x16x4xf32>
    %cst_114 = arith.constant 0.000000e+00 : f32
    %104 = vector.broadcast %cst_114 : f32 to vector<16x16x4xf32>
    %105 = arith.maximumf %103, %104 : vector<16x16x4xf32>
    %c0_115 = arith.constant 0 : index
    %c0_116 = arith.constant 0 : index
    %c0_117 = arith.constant 0 : index
    %c0_118 = arith.constant 0 : index
    %106 = vector.load %arg8[%c0_115, %c0_116, %c0_117, %c0_118] : memref<1x16x16x16xf32, #tpu.memory_space<vmem>>, vector<1x16x16x12xf32>
    %107 = vector.shape_cast %106 : vector<1x16x16x12xf32> to vector<16x16x12xf32>
    %108 = vector.shape_cast %99 : vector<16x16x12xf32> to vector<1x16x16x12xf32>
    tpu.vector_store %arg8[%c0_115, %c0_116, %c0_117, %c0_118], %108 {strides = array<i32>} : memref<1x16x16x16xf32, #tpu.memory_space<vmem>>, vector<1x16x16x12xf32>,
    %c0_119 = arith.constant 0 : index
    %c0_120 = arith.constant 0 : index
    %c0_121 = arith.constant 0 : index
    %c12 = arith.constant 12 : index
    %109 = vector.load %arg8[%c0_119, %c0_120, %c0_121, %c12] : memref<1x16x16x16xf32, #tpu.memory_space<vmem>>, vector<1x16x16x4xf32>
    %110 = vector.shape_cast %109 : vector<1x16x16x4xf32> to vector<16x16x4xf32>
    %111 = vector.shape_cast %105 : vector<16x16x4xf32> to vector<1x16x16x4xf32>
    tpu.vector_store %arg8[%c0_119, %c0_120, %c0_121, %c12], %111 {strides = array<i32>} : memref<1x16x16x16xf32, #tpu.memory_space<vmem>>, vector<1x16x16x4xf32>,
    return
  }
  func.func @transform_0(%arg0: i32) -> (i32, i32, i32, i32) {
    %c0_i32 = arith.constant 0 : i32
    %c0_i32_0 = arith.constant 0 : i32
    %c0_i32_1 = arith.constant 0 : i32
    %c0_i32_2 = arith.constant 0 : i32
    return %arg0, %c0_i32, %c0_i32_0, %c0_i32_1 : i32, i32, i32, i32
  }
  func.func @transform_1(%arg0: i32) -> (i32, i32) {
    %c0_i32 = arith.constant 0 : i32
    %c0_i32_0 = arith.constant 0 : i32
    %c0_i32_1 = arith.constant 0 : i32
    return %c0_i32, %c0_i32_0 : i32, i32
  }
  func.func @transform_2(%arg0: i32) -> (i32, i32) {
    %c0_i32 = arith.constant 0 : i32
    %c0_i32_0 = arith.constant 0 : i32
    %c0_i32_1 = arith.constant 0 : i32
    return %c0_i32, %c0_i32_0 : i32, i32
  }
  func.func @transform_3(%arg0: i32) -> (i32, i32) {
    %c0_i32 = arith.constant 0 : i32
    %c0_i32_0 = arith.constant 0 : i32
    %c0_i32_1 = arith.constant 0 : i32
    return %c0_i32, %c0_i32_0 : i32, i32
  }
  func.func @transform_4(%arg0: i32) -> (i32, i32) {
    %c0_i32 = arith.constant 0 : i32
    %c0_i32_0 = arith.constant 0 : i32
    %c0_i32_1 = arith.constant 0 : i32
    return %c0_i32, %c0_i32_0 : i32, i32
  }
  func.func @transform_5(%arg0: i32) -> (i32, i32, i32) {
    %c0_i32 = arith.constant 0 : i32
    %c0_i32_0 = arith.constant 0 : i32
    %c0_i32_1 = arith.constant 0 : i32
    %c0_i32_2 = arith.constant 0 : i32
    return %c0_i32, %c0_i32_0, %c0_i32_1 : i32, i32, i32
  }
  func.func @transform_6(%arg0: i32) -> (i32, i32) {
    %c0_i32 = arith.constant 0 : i32
    %c0_i32_0 = arith.constant 0 : i32
    %c0_i32_1 = arith.constant 0 : i32
    return %c0_i32, %c0_i32_0 : i32, i32
  }
  func.func @transform_7(%arg0: i32) -> (i32, i32, i32, i32) {
    %c0_i32 = arith.constant 0 : i32
    %c0_i32_0 = arith.constant 0 : i32
    %c0_i32_1 = arith.constant 0 : i32
    %c0_i32_2 = arith.constant 0 : i32
    return %arg0, %c0_i32, %c0_i32_0, %c0_i32_1 : i32, i32, i32, i32
  }
}

</mosaic_0001>

<bundles_post_ra>
// kernel: inception_a_forward.1
= control target key start
LH: loop header
LB: loop body
LE: loop exit
PB: predicated region body
PF: predicated region fallthrough
CT: control target
= control target key end

     0   :  { %s7262_s24 = smov 0   ;;  %s8791_s0 = inlined_call_operand.vmem [shape: f32[2,16,16,4], index: 0, kind: input, shape index: {}]   ;;  %s8792_s1 = inlined_call_operand.vmem [shape: f32[4,12], index: 1, kind: input, shape index: {}]   ;;  %s8793_s2 = inlined_call_operand.vmem [shape: f32[1,12], index: 2, kind: input, shape index: {}]   ;;  %s8794_s3 = inlined_call_operand.vmem [shape: f32[4,4], index: 3, kind: input, shape index: {}]   ;;  %s8795_s4 = inlined_call_operand.vmem [shape: f32[1,4], index: 4, kind: input, shape index: {}]   ;;  %s8796_s5 = inlined_call_operand.vmem [shape: f32[9,12,12], index: 5, kind: input, shape index: {}]   ;;  %s8797_s6 = inlined_call_operand.vmem [shape: f32[1,12], index: 6, kind: input, shape index: {}]   ;;  %s8798_s7 = inlined_call_operand.vmem [shape: f32[2,16,16,16], index: 7, kind: output, shape index: {}]  }
   0x1 LB: > { %s5505_s25 = sadd.s32 4294967295, %s7217_s24   ;;  %p5509_p0 = scmp.ge.s32.totalorder %s7217_s24, 1  ;;  %s7217_s24 = sphi %s7262_s24, %s17_s24  }
   0x2   : > { %p237_p1 = scmp.lt.s32.totalorder %s7217_s24, 3 }
   0x4   : > { %p238_p2 = pnand %p5509_p0, %p237_p1 }
   0x6   : > { %241 = sbr.rel (%p238_p2) target bundleno = 784 (0x310), region = 48 }
   0xd   : > { %v311_v0 = vld [vmem:[%s8792_s1] sm:$0xf]  ;;  %vm416_vm0 = vcmask 1043456   ;;  %p269_p3 = scmp.lt.s32.totalorder %s5505_s25, 1  ;;  %v5720_v3 = vld [vmem:[%s8796_s5 + $0x48] sm:$0xf] }
   0xe   : > { %6272 = vmatprep.subr.msk.mxu0 %vm416_vm0, %v311_v0  ;;  %6894 = vmatprep.subr.msk.mxu1 %vm416_vm0, %v311_v0  ;;  %v677_v1 = vld [vmem:[%s8794_s3] sm:$0xf]  ;;  %vm7219_vm1 = vmmov 1   ;;  %vm319_vm3 = vcmask 31744   ;;  %vm906_vm4 = vcmask 97280   ;;  %vm909_vm5 = vcmask 91136  }
   0xf   : > { %v5719_v2 = vld [vmem:[%s8796_s5 + $0x40] sm:$0xff]  ;;  %6273 = vmatpush3.msk.msra.mxu0 %vm416_vm0, %v311_v0  ;;  %s8878_s25 = smov (!%p269_p3, %s5505_s25), 1  ;;  %6895 = vmatpush3.msk.msra.mxu1 %vm416_vm0, %v311_v0  ;;  %vm7290_vm2 = vmpackc.low %vm416_vm0, %vm7219_vm1  ;;  %v7220_v38 = vmov 0.0   ;;  %v5581_v39 = vld [vmem:[%s8796_s5 + $0x10] sm:$0xff]  ;;  %vm964_vm6 = vcmask 25600   ;;  %s7221_s29 = smov 12  }
  0x10   : > { %6322 = vmatprep.subr.msk.mxu1 %vm416_vm0, %v677_v1  ;;  %v6864_v4 = vpack.c.bf16 %v5720_v3, %v5719_v2  ;;  %s5898_s11 = sshll.u32 %s8878_s25, 8  ;;  %912 = vst.msk [vmem:[#allocation2 + $0x20] sm:$0xff] %vm906_vm4, %v7220_v38  ;;  %907 = vst.msk [vmem:[#allocation2] sm:$0xff] %vm906_vm4, %v7220_v38  ;;  %v5582_v40 = vld [vmem:[%s8796_s5 + $0x18] sm:$0xf]  ;;  %v5754_v44 = vld [vmem:[%s8796_s5 + $0x50] sm:$0xff] }
  0x11   : > { %s7300_s14 = scalar_lea.vmem %s8791_s0, %s5898_s11  ;;  %908 = vst.msk [vmem:[#allocation2 + $0x8] sm:$0xff] %vm906_vm4, %v7220_v38  ;;  %911 = vst.msk [vmem:[#allocation2 + $0x18] sm:$0xff] %vm906_vm4, %v7220_v38  ;;  %v6840_v41 = vpack.c.bf16 %v5582_v40, %v5581_v39  ;;  %v5755_v45 = vld [vmem:[%s8796_s5 + $0x58] sm:$0xf]  ;;  %v1115_v47 = vld [vmem:[%s8796_s5] sm:$0xff]  ;;  %s8589_s18 = scalar_lea.vmem %s8798_s7, %s5898_s11  ;;  %vm5417_vm7 = vcmask 130144  }
  0x12   : > { %6866 = vmatprep.subr.msk.bf16.mxu0 %vm7290_vm2, %v6864_v4  ;;  %v7305_v6 = vld [vmem:[%s7300_s14] sm:$0xff]  ;;  %v7308_v7 = vld [vmem:[%s7300_s14 + $0x8] sm:$0xff]  ;;  %v7311_v8 = vld [vmem:[%s7300_s14 + $0x10] sm:$0xff]  ;;  %914 = vst.msk [vmem:[#allocation2 + $0x30] sm:$0xff] %vm906_vm4, %v7220_v38  ;;  %v7661_v46 = vpack.c.bf16 %v5755_v45, %v5754_v44 }
  0x13   : > { %6274 = vmatprep.mubr.msk.f32.mxu0 %vm319_vm3, %v7305_v6  ;;  %v7320_v9 = vld [vmem:[%s7300_s14 + $0x18] sm:$0xff]  ;;  %v283_v10 = vld [vmem:[%s7300_s14 + $0x20] sm:$0xff]  ;;  %v7329_v12 = vld [vmem:[%s7300_s14 + $0x88] sm:$0xff]  ;;  %915 = vst.msk [vmem:[#allocation2 + $0x38] sm:$0xff] %vm906_vm4, %v7220_v38 }
  0x14   : > { %6275 = vmatmul.mubr.msk.f32.vlgmr.msra.gmra.mrb[0].mxu0 %vm319_vm3, %v7308_v7  ;;  %v7326_v11 = vld [vmem:[%s7300_s14 + $0x80] sm:$0xff]  ;;  %v7336_v13 = vld [vmem:[%s7300_s14 + $0x90] sm:$0xff]  ;;  %v284_v14 = vld [vmem:[%s7300_s14 + $0x28] sm:$0xff]  ;;  %917 = vst.msk [vmem:[#allocation2 + $0x48] sm:$0xff] %vm906_vm4, %v7220_v38 }
  0x15   : > { %6277 = vmatprep.mubr.msk.f32.mxu0 %vm319_vm3, %v7311_v8  ;;  %6869 = vmatpush3.bf16.msk.msra.mxu0 %vm7290_vm2, %v6864_v4  ;;  %v285_v15 = vld [vmem:[%s7300_s14 + $0x30] sm:$0xff]  ;;  %v7346_v16 = vld [vmem:[%s7300_s14 + $0x98] sm:$0xff]  ;;  %v7350_v17 = vld [vmem:[%s7300_s14 + $0xa0] sm:$0xff]  ;;  %918 = vst.msk [vmem:[#allocation2 + $0x50] sm:$0xff] %vm906_vm4, %v7220_v38 }
  0x16   : > { %6298 = vmatprep.mubr.msk.f32.mxu1 %vm319_vm3, %v7326_v11  ;;  %v286_v18 = vld [vmem:[%s7300_s14 + $0x38] sm:$0xff]  ;;  %v287_v19 = vld [vmem:[%s7300_s14 + $0x40] sm:$0xff]  ;;  %v300_v20 = vld [vmem:[%s7300_s14 + $0xa8] sm:$0xff]  ;;  %920 = vst.msk [vmem:[#allocation2 + $0x60] sm:$0xff] %vm906_vm4, %v7220_v38  ;;  %6872 = vmatprep.subr.msk.bf16.mxu0 %vm7290_vm2, %v7661_v46 }
  0x17   : > { %6299 = vmatmul.mubr.msk.f32.vlgmr.msra.gmra.mrb[0].mxu1 %vm319_vm3, %v7329_v12  ;;  %v301_v21 = vld [vmem:[%s7300_s14 + $0xb0] sm:$0xff]  ;;  %v288_v22 = vld [vmem:[%s7300_s14 + $0x48] sm:$0xff]  ;;  %v302_v24 = vld [vmem:[%s7300_s14 + $0xb8] sm:$0xff]  ;;  %921 = vst.msk [vmem:[#allocation2 + $0x68] sm:$0xff] %vm906_vm4, %v7220_v38 }
  0x18   : > { %6278 = vmatmul.mubr.msk.f32.gmra.mrb[2].mxu0 %vm319_vm3, %v7320_v9  ;;  %6301 = vmatprep.mubr.msk.f32.mxu1 %vm319_vm3, %v7336_v13  ;;  %v289_v23 = vld [vmem:[%s7300_s14 + $0x50] sm:$0xff]  ;;  %v303_v25 = vld [vmem:[%s7300_s14 + $0xc0] sm:$0xff]  ;;  %v290_v26 = vld [vmem:[%s7300_s14 + $0x58] sm:$0xff]  ;;  %923 = vst.msk [vmem:[#allocation2 + $0x78] sm:$0xff] %vm906_vm4, %v7220_v38 }
  0x19   : > { %6280 = vmatprep.mubr.msk.f32.mxu0 %vm319_vm3, %v283_v10  ;;  %6323 = vmatpush3.msk.msra.mxu1 %vm416_vm0, %v677_v1  ;;  %v291_v27 = vld [vmem:[%s7300_s14 + $0x60] sm:$0xff]  ;;  %v304_v28 = vld [vmem:[%s7300_s14 + $0xc8] sm:$0xff]  ;;  %v7378_v29 = vld [vmem:[%s7300_s14 + $0xd0] sm:$0xff]  ;;  %924 = vst.msk [vmem:[#allocation2 + $0x80] sm:$0xff] %vm906_vm4, %v7220_v38 }
  0x1a   : > { %v292_v30 = vld [vmem:[%s7300_s14 + $0x68] sm:$0xff]  ;;  %v293_v31 = vld [vmem:[%s7300_s14 + $0x70] sm:$0xff]  ;;  %v7388_v32 = vld [vmem:[%s7300_s14 + $0xd8] sm:$0xff]  ;;  %926 = vst.msk [vmem:[#allocation2 + $0x90] sm:$0xff] %vm906_vm4, %v7220_v38  ;;  %6842 = vmatprep.subr.msk.bf16.mxu1 %vm7290_vm2, %v6840_v41 }
  0x1b   : > { %6302 = vmatmul.mubr.msk.f32.gmra.mrb[2].mxu1 %vm319_vm3, %v7346_v16  ;;  %v7391_v33 = vld [vmem:[%s7300_s14 + $0xe0] sm:$0xff]  ;;  %v294_v34 = vld [vmem:[%s7300_s14 + $0x78] sm:$0xff]  ;;  %v7401_v35 = vld [vmem:[%s7300_s14 + $0xe8] sm:$0xff]  ;;  %927 = vst.msk [vmem:[#allocation2 + $0x98] sm:$0xff] %vm906_vm4, %v7220_v38 }
  0x1c   : > { %6281 = vmatmul.mubr.msk.f32.gmra.mrb[4].mxu0 %vm319_vm3, %v284_v14  ;;  %6304 = vmatprep.mubr.msk.f32.mxu1 %vm319_vm3, %v7350_v17  ;;  %v7404_v36 = vld [vmem:[%s7300_s14 + $0xf0] sm:$0xff]  ;;  %v7412_v37 = vld [vmem:[%s7300_s14 + $0xf8] sm:$0xff]  ;;  %929 = vst.msk [vmem:[#allocation2 + $0xa8] sm:$0xff] %vm906_vm4, %v7220_v38  ;;  %930 = vst.msk [vmem:[#allocation2 + $0xb0] sm:$0xff] %vm906_vm4, %v7220_v38 }
  0x1d   : > { %6283 = vmatprep.mubr.msk.f32.mxu0 %vm319_vm3, %v285_v15  ;;  %932 = vst.msk [vmem:[#allocation2 + $0xc0] sm:$0xff] %vm906_vm4, %v7220_v38  ;;  %933 = vst.msk [vmem:[#allocation2 + $0xc8] sm:$0xff] %vm906_vm4, %v7220_v38  ;;  %v1181_v42 = vld [vmem:[#allocation2 + $0x1] sm:$0xff]  ;;  %v7679_v50 = vld [vmem:[%s8793_s2] ss:$0 sm:$0xff] }
  0x1e   : > { %935 = vst.msk [vmem:[#allocation2 + $0xd8] sm:$0xff] %vm906_vm4, %v7220_v38  ;;  %936 = vst.msk [vmem:[#allocation2 + $0xe0] sm:$0xff] %vm906_vm4, %v7220_v38  ;;  %v1116_v48 = vld [vmem:[%s8796_s5 + $0x8] sm:$0xf]  ;;  %v5649_v61 = vld [vmem:[%s8796_s5 + $0x20] sm:$0xff] }
  0x1f   : > { %6305 = vmatmul.mubr.msk.f32.gmra.mrb[4].mxu1 %vm319_vm3, %v300_v20  ;;  %938 = vst.msk [vmem:[#allocation2 + $0xf0] sm:$0xff] %vm906_vm4, %v7220_v38  ;;  %939 = vst.msk [vmem:[#allocation2 + $0xf8] sm:$0xff] %vm906_vm4, %v7220_v38  ;;  %v6846_v49 = vpack.c.bf16 %v1116_v48, %v1115_v47  ;;  %v5650_v62 = vld [vmem:[%s8796_s5 + $0x28] sm:$0xf] }
  0x20   : > { %6284 = vmatmul.mubr.msk.f32.gmra.mrb[6].mxu0 %vm319_vm3, %v286_v18  ;;  %6307 = vmatprep.mubr.msk.f32.mxu1 %vm319_vm3, %v301_v21  ;;  %941 = vst.msk [vmem:[#allocation2 + $0x108] sm:$0xff] %vm906_vm4, %v7220_v38  ;;  %942 = vst.msk [vmem:[#allocation2 + $0x110] sm:$0xff] %vm906_vm4, %v7220_v38  ;;  %v7694_v2 = vpack.c.bf16 %v5650_v62, %v5649_v61 }
  0x21   : > { %6286 = vmatprep.mubr.msk.f32.mxu0 %vm319_vm3, %v287_v19  ;;  %944 = vst.msk [vmem:[#allocation2 + $0x120] sm:$0xff] %vm906_vm4, %v7220_v38  ;;  %945 = vst.msk [vmem:[#allocation2 + $0x128] sm:$0xff] %vm906_vm4, %v7220_v38 }
  0x22   : > { %947 = vst.msk [vmem:[#allocation2 + $0x138] sm:$0xff] %vm906_vm4, %v7220_v38  ;;  %948 = vst.msk [vmem:[#allocation2 + $0x140] sm:$0xff] %vm906_vm4, %v7220_v38 }
  0x23   : > { %6308 = vmatmul.mubr.msk.f32.gmra.mrb[6].mxu1 %vm319_vm3, %v302_v24  ;;  %950 = vst.msk [vmem:[#allocation2 + $0x150] sm:$0xff] %vm906_vm4, %v7220_v38  ;;  %951 = vst.msk [vmem:[#allocation2 + $0x158] sm:$0xff] %vm906_vm4, %v7220_v38 }
  0x24   : > { %6287 = vmatmul.mubr.msk.f32.gmra.mrb[8].mxu0 %vm319_vm3, %v288_v22  ;;  %6310 = vmatprep.mubr.msk.f32.mxu1 %vm319_vm3, %v303_v25  ;;  %953 = vst.msk [vmem:[#allocation2 + $0x168] sm:$0xff] %vm906_vm4, %v7220_v38  ;;  %954 = vst.msk [vmem:[#allocation2 + $0x170] sm:$0xff] %vm906_vm4, %v7220_v38 }
  0x25   : > { %6289 = vmatprep.mubr.msk.f32.mxu0 %vm319_vm3, %v289_v23  ;;  %956 = vst.msk [vmem:[#allocation2 + $0x180] sm:$0xff] %vm906_vm4, %v7220_v38  ;;  %957 = vst.msk [vmem:[#allocation2 + $0x188] sm:$0xff] %vm906_vm4, %v7220_v38 }
  0x26   : > { %959 = vst.msk [vmem:[#allocation2 + $0x198] sm:$0xff] %vm906_vm4, %v7220_v38  ;;  %960 = vst.msk [vmem:[#allocation2 + $0x1a0] sm:$0xff] %vm906_vm4, %v7220_v38 }
  0x27   : > { %6311 = vmatmul.mubr.msk.f32.gmra.mrb[8].mxu1 %vm319_vm3, %v304_v28  ;;  %962 = vst.msk [vmem:[#allocation3] sm:$0xff] %vm319_vm3, %v7220_v38  ;;  %963 = vst.msk [vmem:[#allocation3 + $0x8] sm:$0xff] %vm319_vm3, %v7220_v38 }
  0x28   : > { %6290 = vmatmul.mubr.msk.f32.gmra.mrb[10].mxu0 %vm319_vm3, %v290_v26  ;;  %6313 = vmatprep.mubr.msk.f32.mxu1 %vm319_vm3, %v7378_v29  ;;  %966 = vst.msk [vmem:[#allocation3 + $0x18] sm:$0xff] %vm319_vm3, %v7220_v38  ;;  %967 = vst.msk [vmem:[#allocation3 + $0x20] sm:$0xff] %vm319_vm3, %v7220_v38 }
  0x29   : > { %6292 = vmatprep.mubr.msk.f32.mxu0 %vm319_vm3, %v291_v27  ;;  %969 = vst.msk [vmem:[#allocation3 + $0x30] sm:$0xff] %vm319_vm3, %v7220_v38  ;;  %970 = vst.msk [vmem:[#allocation3 + $0x38] sm:$0xff] %vm319_vm3, %v7220_v38 }
  0x2a   : > { %972 = vst.msk [vmem:[#allocation3 + $0x48] sm:$0xff] %vm319_vm3, %v7220_v38  ;;  %973 = vst.msk [vmem:[#allocation3 + $0x50] sm:$0xff] %vm319_vm3, %v7220_v38 }
  0x2b   : > { %6314 = vmatmul.mubr.msk.f32.gmra.mrb[10].mxu1 %vm319_vm3, %v7388_v32  ;;  %975 = vst.msk [vmem:[#allocation3 + $0x60] sm:$0xff] %vm319_vm3, %v7220_v38  ;;  %976 = vst.msk [vmem:[#allocation3 + $0x68] sm:$0xff] %vm319_vm3, %v7220_v38 }
  0x2c   : > { %6293 = vmatmul.mubr.msk.f32.gmra.mrb[12].mxu0 %vm319_vm3, %v292_v30  ;;  %6316 = vmatprep.mubr.msk.f32.mxu1 %vm319_vm3, %v7391_v33  ;;  %978 = vst.msk [vmem:[#allocation3 + $0x78] sm:$0xff] %vm319_vm3, %v7220_v38  ;;  %979 = vst.msk [vmem:[#allocation3 + $0x80] sm:$0xff] %vm319_vm3, %v7220_v38 }
  0x2d   : > { %6295 = vmatprep.mubr.msk.f32.mxu0 %vm319_vm3, %v293_v31  ;;  %981 = vst.msk [vmem:[#allocation3 + $0x90] sm:$0xff] %vm319_vm3, %v7220_v38  ;;  %982 = vst.msk [vmem:[#allocation3 + $0x98] sm:$0xff] %vm319_vm3, %v7220_v38 }
  0x2e   : > { %984 = vst.msk [vmem:[#allocation3 + $0xa8] sm:$0xff] %vm319_vm3, %v7220_v38  ;;  %985 = vst.msk [vmem:[#allocation3 + $0xb0] sm:$0xff] %vm319_vm3, %v7220_v38 }
  0x2f   : > { %6317 = vmatmul.mubr.msk.f32.gmra.mrb[12].mxu1 %vm319_vm3, %v7401_v35  ;;  %987 = vst.msk [vmem:[#allocation3 + $0xc0] sm:$0xff] %vm319_vm3, %v7220_v38  ;;  %988 = vst.msk [vmem:[#allocation3 + $0xc8] sm:$0xff] %vm319_vm3, %v7220_v38 }
  0x30   : > { %6296 = vmatmul.mubr.msk.f32.gmra.mrb[14].mxu0 %vm319_vm3, %v294_v34  ;;  %6319 = vmatprep.mubr.msk.f32.mxu1 %vm319_vm3, %v7404_v36  ;;  %990 = vst.msk [vmem:[#allocation3 + $0xd8] sm:$0xff] %vm319_vm3, %v7220_v38  ;;  %991 = vst.msk [vmem:[#allocation3 + $0xe0] sm:$0xff] %vm319_vm3, %v7220_v38 }
  0x31   : > { %993 = vst.msk [vmem:[#allocation3 + $0xf0] sm:$0xff] %vm319_vm3, %v7220_v38  ;;  %994 = vst.msk [vmem:[#allocation3 + $0xf8] sm:$0xff] %vm319_vm3, %v7220_v38 }
  0x32   : > { %996 = vst.msk [vmem:[#allocation3 + $0x108] sm:$0xff] %vm319_vm3, %v7220_v38  ;;  %997 = vst.msk [vmem:[#allocation3 + $0x110] sm:$0xff] %vm319_vm3, %v7220_v38 }
  0x33   : > { %6320 = vmatmul.mubr.msk.f32.gmra.mrb[14].mxu1 %vm319_vm3, %v7412_v37  ;;  %999 = vst.msk [vmem:[#allocation3 + $0x120] sm:$0xff] %vm319_vm3, %v7220_v38  ;;  %1000 = vst.msk [vmem:[#allocation3 + $0x128] sm:$0xff] %vm319_vm3, %v7220_v38 }
  0x34   : > { %6324 = vmatprep.mubr.msk.f32.mxu1 %vm319_vm3, %v7305_v6  ;;  %1002 = vst.msk [vmem:[#allocation3 + $0x138] sm:$0xff] %vm319_vm3, %v7220_v38  ;;  %1003 = vst.msk [vmem:[#allocation3 + $0x140] sm:$0xff] %vm319_vm3, %v7220_v38 }
  0x35   : > { %1005 = vst.msk [vmem:[#allocation3 + $0x150] sm:$0xff] %vm319_vm3, %v7220_v38  ;;  %1006 = vst.msk [vmem:[#allocation3 + $0x158] sm:$0xff] %vm319_vm3, %v7220_v38 }
  0x36   : > { %1008 = vst.msk [vmem:[#allocation3 + $0x168] sm:$0xff] %vm319_vm3, %v7220_v38  ;;  %1009 = vst.msk [vmem:[#allocation3 + $0x170] sm:$0xff] %vm319_vm3, %v7220_v38 }
  0x37   : > { %6325 = vmatmul.mubr.msk.f32.vlgmr.msra.gmra.mrb[16].mxu1 %vm319_vm3, %v7308_v7  ;;  %1011 = vst.msk [vmem:[#allocation3 + $0x180] sm:$0xff] %vm319_vm3, %v7220_v38  ;;  %1012 = vst.msk [vmem:[#allocation3 + $0x188] sm:$0xff] %vm319_vm3, %v7220_v38 }
  0x38   : > { %6327 = vmatprep.mubr.msk.f32.mxu1 %vm319_vm3, %v7311_v8  ;;  %1014 = vst.msk [vmem:[#allocation3 + $0x198] sm:$0xff] %vm319_vm3, %v7220_v38  ;;  %1015 = vst.msk [vmem:[#allocation3 + $0x1a0] sm:$0xff] %vm319_vm3, %v7220_v38  ;;  %6845 = vmatpush3.bf16.msk.msra.mxu1 %vm7290_vm2, %v6840_v41 }
  0x39   : > { %913 = vst.msk [vmem:[#allocation2 + $0x28] sm:$0x3] %vm909_vm5, %v7220_v38  ;;  %910 = vst.msk [vmem:[#allocation2 + $0x10] sm:$0x3] %vm909_vm5, %v7220_v38  ;;  %6848 = vmatprep.subr.msk.bf16.mxu1 %vm7290_vm2, %v6846_v49 }
  0x3a   : > { %916 = vst.msk [vmem:[#allocation2 + $0x40] sm:$0x3] %vm909_vm5, %v7220_v38  ;;  %919 = vst.msk [vmem:[#allocation2 + $0x58] sm:$0x3] %vm909_vm5, %v7220_v38 }
  0x3b   : > { %6328 = vmatmul.mubr.msk.f32.gmra.mrb[18].mxu1 %vm319_vm3, %v7320_v9  ;;  %922 = vst.msk [vmem:[#allocation2 + $0x70] sm:$0x3] %vm909_vm5, %v7220_v38  ;;  %925 = vst.msk [vmem:[#allocation2 + $0x88] sm:$0x3] %vm909_vm5, %v7220_v38 }
  0x3c   : > { %6330 = vmatprep.mubr.msk.f32.mxu1 %vm319_vm3, %v283_v10  ;;  %928 = vst.msk [vmem:[#allocation2 + $0xa0] sm:$0x3] %vm909_vm5, %v7220_v38  ;;  %931 = vst.msk [vmem:[#allocation2 + $0xb8] sm:$0x3] %vm909_vm5, %v7220_v38 }
  0x3d   : > { %934 = vst.msk [vmem:[#allocation2 + $0xd0] sm:$0x3] %vm909_vm5, %v7220_v38  ;;  %937 = vst.msk [vmem:[#allocation2 + $0xe8] sm:$0x3] %vm909_vm5, %v7220_v38 }
  0x3e   : > { %940 = vst.msk [vmem:[#allocation2 + $0x100] sm:$0x3] %vm909_vm5, %v7220_v38  ;;  %943 = vst.msk [vmem:[#allocation2 + $0x118] sm:$0x3] %vm909_vm5, %v7220_v38 }
  0x3f   : > { %6331 = vmatmul.mubr.msk.f32.gmra.mrb[20].mxu1 %vm319_vm3, %v284_v14  ;;  %946 = vst.msk [vmem:[#allocation2 + $0x130] sm:$0x3] %vm909_vm5, %v7220_v38  ;;  %949 = vst.msk [vmem:[#allocation2 + $0x148] sm:$0x3] %vm909_vm5, %v7220_v38 }
  0x40   : > { %6333 = vmatprep.mubr.msk.f32.mxu1 %vm319_vm3, %v285_v15  ;;  %952 = vst.msk [vmem:[#allocation2 + $0x160] sm:$0x3] %vm909_vm5, %v7220_v38  ;;  %955 = vst.msk [vmem:[#allocation2 + $0x178] sm:$0x3] %vm909_vm5, %v7220_v38  ;;  %v1182_v43 = vld [vmem:[#allocation2 + $0x9] sm:$0xff] }
  0x41   : > { %958 = vst.msk [vmem:[#allocation2 + $0x190] sm:$0x3] %vm909_vm5, %v7220_v38  ;;  %961 = vst.msk [vmem:[#allocation2 + $0x1a8] sm:$0x3] %vm909_vm5, %v7220_v38 }
  0x42   : > { %968 = vst.msk [vmem:[#allocation3 + $0x28] sm:$0x3] %vm964_vm6, %v7220_v38  ;;  %965 = vst.msk [vmem:[#allocation3 + $0x10] sm:$0x3] %vm964_vm6, %v7220_v38 }
  0x43   : > { %6334 = vmatmul.mubr.msk.f32.gmra.mrb[22].mxu1 %vm319_vm3, %v286_v18  ;;  %971 = vst.msk [vmem:[#allocation3 + $0x40] sm:$0x3] %vm964_vm6, %v7220_v38  ;;  %974 = vst.msk [vmem:[#allocation3 + $0x58] sm:$0x3] %vm964_vm6, %v7220_v38 }
  0x44   : > { %6336 = vmatprep.mubr.msk.f32.mxu1 %vm319_vm3, %v287_v19  ;;  %977 = vst.msk [vmem:[#allocation3 + $0x70] sm:$0x3] %vm964_vm6, %v7220_v38  ;;  %980 = vst.msk [vmem:[#allocation3 + $0x88] sm:$0x3] %vm964_vm6, %v7220_v38 }
  0x45   : > { %983 = vst.msk [vmem:[#allocation3 + $0xa0] sm:$0x3] %vm964_vm6, %v7220_v38  ;;  %986 = vst.msk [vmem:[#allocation3 + $0xb8] sm:$0x3] %vm964_vm6, %v7220_v38 }
  0x46   : > { %989 = vst.msk [vmem:[#allocation3 + $0xd0] sm:$0x3] %vm964_vm6, %v7220_v38  ;;  %992 = vst.msk [vmem:[#allocation3 + $0xe8] sm:$0x3] %vm964_vm6, %v7220_v38 }
  0x47   : > { %6337 = vmatmul.mubr.msk.f32.gmra.mrb[24].mxu1 %vm319_vm3, %v288_v22  ;;  %995 = vst.msk [vmem:[#allocation3 + $0x100] sm:$0x3] %vm964_vm6, %v7220_v38  ;;  %998 = vst.msk [vmem:[#allocation3 + $0x118] sm:$0x3] %vm964_vm6, %v7220_v38 }
  0x48   : > { %6339 = vmatprep.mubr.msk.f32.mxu1 %vm319_vm3, %v289_v23  ;;  %1001 = vst.msk [vmem:[#allocation3 + $0x130] sm:$0x3] %vm964_vm6, %v7220_v38  ;;  %1004 = vst.msk [vmem:[#allocation3 + $0x148] sm:$0x3] %vm964_vm6, %v7220_v38 }
  0x49   : > { %1007 = vst.msk [vmem:[#allocation3 + $0x160] sm:$0x3] %vm964_vm6, %v7220_v38  ;;  %1010 = vst.msk [vmem:[#allocation3 + $0x178] sm:$0x3] %vm964_vm6, %v7220_v38 }
  0x4a   : > { %1013 = vst.msk [vmem:[#allocation3 + $0x190] sm:$0x3] %vm964_vm6, %v7220_v38  ;;  %1016 = vst.msk [vmem:[#allocation3 + $0x1a8] sm:$0x3] %vm964_vm6, %v7220_v38 }
  0x4b   : > { %6340 = vmatmul.mubr.msk.f32.gmra.mrb[26].mxu1 %vm319_vm3, %v290_v26 }
  0x4c   : > { %6342 = vmatprep.mubr.msk.f32.mxu1 %vm319_vm3, %v291_v27 }
  0x4f   : > { %6343 = vmatmul.mubr.msk.f32.gmra.mrb[28].mxu1 %vm319_vm3, %v292_v30 }
  0x50   : > { %6345 = vmatprep.mubr.msk.f32.mxu1 %vm319_vm3, %v293_v31 }
  0x53   : > { %6346 = vmatmul.mubr.msk.f32.gmra.mrb[30].mxu1 %vm319_vm3, %v294_v34 }
  0x54   : > { %6348 = vmatprep.mubr.msk.f32.mxu1 %vm319_vm3, %v7326_v11 }
  0x57   : > { %6349 = vmatmul.mubr.msk.f32.gmra.mrb[32].mxu1 %vm319_vm3, %v7329_v12 }
  0x58   : > { %6351 = vmatprep.mubr.msk.f32.mxu1 %vm319_vm3, %v7336_v13 }
  0x5b   : > { %6352 = vmatmul.mubr.msk.f32.gmra.mrb[34].mxu1 %vm319_vm3, %v7346_v16  ;;  %v5789_v16 = vld [vmem:[%s8796_s5 + $0x60] sm:$0xff] }
  0x5c   : > { %6354 = vmatprep.mubr.msk.f32.mxu1 %vm319_vm3, %v7350_v17  ;;  %v5790_v17 = vld [vmem:[%s8796_s5 + $0x68] sm:$0xf] }
  0x5f   : > { %6355 = vmatmul.mubr.msk.f32.gmra.mrb[36].mxu1 %vm319_vm3, %v300_v20 }
  0x60   : > { %6357 = vmatprep.mubr.msk.f32.mxu1 %vm319_vm3, %v301_v21 }
  0x63   : > { %6358 = vmatmul.mubr.msk.f32.gmra.mrb[38].mxu1 %vm319_vm3, %v302_v24 }
  0x64   : > { %6360 = vmatprep.mubr.msk.f32.mxu1 %vm319_vm3, %v303_v25 }
  0x67   : > { %6361 = vmatmul.mubr.msk.f32.gmra.mrb[40].mxu1 %vm319_vm3, %v304_v28  ;;  %v7716_v28 = vpack.c.bf16 %v5790_v17, %v5789_v16 }
  0x68   : > { %6363 = vmatprep.mubr.msk.f32.mxu1 %vm319_vm3, %v7378_v29 }
  0x6b   : > { %6364 = vmatmul.mubr.msk.f32.gmra.mrb[42].mxu1 %vm319_vm3, %v7388_v32 }
  0x6c   : > { %6366 = vmatprep.mubr.msk.f32.mxu1 %vm319_vm3, %v7391_v33 }
  0x6f   : > { %6367 = vmatmul.mubr.msk.f32.gmra.mrb[44].mxu1 %vm319_vm3, %v7401_v35 }
  0x70   : > { %6369 = vmatprep.mubr.msk.f32.mxu1 %vm319_vm3, %v7404_v36 }
  0x73   : > { %6370 = vmatmul.mubr.msk.f32.gmra.mrb[46].mxu1 %vm319_vm3, %v7412_v37 }
  0x74   : > { %6376 = vmatprep.mubr.msk.f32.mxu1 %vm906_vm4, %v1181_v42 }
  0x77   : > { %6377 = vmatmul.mubr.msk.f32.vlgmr.msra.gmra.mrb[48].mxu1 %vm906_vm4, %v1182_v43 }
  0x78   : > { %6851 = vmatpush3.bf16.msk.msra.mxu1 %vm7290_vm2, %v6846_v49 }
  0x79   : > { %6854 = vmatprep.subr.msk.bf16.mxu1 %vm7290_vm2, %v7694_v2 }
  0xe7   : > { %v6276_v51 = vpop.f32.mrb[0].mxu0 }
  0xe8   : > { %v492_v52 = vadd.f32 %v6276_v51, %v7679_v50  ;;  %v486_v53 = vpop.f32.mrb[1].mxu0 }
  0xe9   : > { %v487_v54 = vadd.f32 %v7679_v50, %v486_v53 }
  0xea   : > { %v646_v55 = vmax.f32 %v492_v52, 0.0  ;;  %v6300_v60 = vpop.f32.mrb[0].mxu1 }
  0xeb   : > { %v645_v56 = vmax.f32 %v487_v54, 0.0  ;;  %v6279_v57 = vpop.f32.mrb[2].mxu0  ;;  %v572_v0 = vadd.f32 %v6300_v60, %v7679_v50  ;;  %v566_v1 = vpop.f32.mrb[1].mxu1 }
  0xec   : > { %1019 = vst.msk [vmem:[#allocation2 + $0x21] sm:$0xff] %vm906_vm4, %v646_v55  ;;  %v502_v58 = vadd.f32 %v6279_v57, %v7679_v50  ;;  %v496_v59 = vpop.f32.mrb[3].mxu0  ;;  %v567_v4 = vadd.f32 %v7679_v50, %v566_v1 }
  0xed   : > { %1018 = vst.msk [vmem:[#allocation2 + $0x19] sm:$0xff] %vm906_vm4, %v645_v56  ;;  %v497_v63 = vadd.f32 %v7679_v50, %v496_v59  ;;  %v662_v8 = vmax.f32 %v572_v0, 0.0 }
  0xee   : > { %v648_v3 = vmax.f32 %v502_v58, 0.0  ;;  %v661_v11 = vmax.f32 %v567_v4, 0.0  ;;  %v6303_v12 = vpop.f32.mrb[2].mxu1 }
  0xef   : > { %v647_v6 = vmax.f32 %v497_v63, 0.0  ;;  %v6282_v7 = vpop.f32.mrb[4].mxu0  ;;  %1035 = vst.msk [vmem:[#allocation2 + $0xe1] sm:$0xff] %vm906_vm4, %v662_v8  ;;  %v582_v14 = vadd.f32 %v6303_v12, %v7679_v50  ;;  %v576_v15 = vpop.f32.mrb[3].mxu1 }
  0xf0   : > { %1021 = vst.msk [vmem:[#allocation2 + $0x39] sm:$0xff] %vm906_vm4, %v648_v3  ;;  %v512_v9 = vadd.f32 %v6282_v7, %v7679_v50  ;;  %v506_v10 = vpop.f32.mrb[5].mxu0  ;;  %1034 = vst.msk [vmem:[#allocation2 + $0xd9] sm:$0xff] %vm906_vm4, %v661_v11  ;;  %v577_v19 = vadd.f32 %v7679_v50, %v576_v15 }
  0xf1   : > { %1020 = vst.msk [vmem:[#allocation2 + $0x31] sm:$0xff] %vm906_vm4, %v647_v6  ;;  %v507_v13 = vadd.f32 %v7679_v50, %v506_v10  ;;  %v664_v22 = vmax.f32 %v582_v14, 0.0 }
  0xf2   : > { %v650_v18 = vmax.f32 %v512_v9, 0.0  ;;  %v663_v26 = vmax.f32 %v577_v19, 0.0  ;;  %v6306_v27 = vpop.f32.mrb[4].mxu1 }
  0xf3   : > { %v649_v20 = vmax.f32 %v507_v13, 0.0  ;;  %v6285_v21 = vpop.f32.mrb[6].mxu0  ;;  %v1184_v30 = vld [vmem:[#allocation2 + $0x21] sm:$0xff]  ;;  %1037 = vst.msk [vmem:[#allocation2 + $0xf9] sm:$0xff] %vm906_vm4, %v664_v22  ;;  %v592_v31 = vadd.f32 %v6306_v27, %v7679_v50  ;;  %v586_v32 = vpop.f32.mrb[5].mxu1 }
  0xf4   : > { %1023 = vst.msk [vmem:[#allocation2 + $0x51] sm:$0xff] %vm906_vm4, %v650_v18  ;;  %v522_v23 = vadd.f32 %v6285_v21, %v7679_v50  ;;  %v516_v24 = vpop.f32.mrb[7].mxu0  ;;  %v1183_v25 = vld [vmem:[#allocation2 + $0x19] sm:$0xff]  ;;  %1036 = vst.msk [vmem:[#allocation2 + $0xf1] sm:$0xff] %vm906_vm4, %v663_v26  ;;  %v587_v34 = vadd.f32 %v7679_v50, %v586_v32 }
  0xf5   : > { %1022 = vst.msk [vmem:[#allocation2 + $0x49] sm:$0xff] %vm906_vm4, %v649_v20  ;;  %v517_v29 = vadd.f32 %v7679_v50, %v516_v24  ;;  %6379 = vmatprep.mubr.msk.f32.mxu1 %vm906_vm4, %v1183_v25  ;;  %6584 = vmatprep.mubr.msk.f32.mxu0 %vm906_vm4, %v1183_v25  ;;  %v666_v37 = vmax.f32 %v592_v31, 0.0 }
  0xf6   : > { %v652_v33 = vmax.f32 %v522_v23, 0.0  ;;  %6380 = vmatmul.mubr.msk.f32.gmra.mrb[50].mxu1 %vm906_vm4, %v1184_v30  ;;  %6585 = vmatmul.mubr.msk.f32.vlgmr.msra.gmra.mrb[16].mxu0 %vm906_vm4, %v1184_v30  ;;  %v665_v42 = vmax.f32 %v587_v34, 0.0  ;;  %v6309_v43 = vpop.f32.mrb[6].mxu1 }
  0xf7   : > { %v651_v35 = vmax.f32 %v517_v29, 0.0  ;;  %6875 = vmatpush3.bf16.msk.msra.mxu0 %vm7290_vm2, %v7661_v46  ;;  %v6288_v36 = vpop.f32.mrb[8].mxu0  ;;  %v1186_v45 = vld [vmem:[#allocation2 + $0x39] sm:$0xff]  ;;  %1039 = vst.msk [vmem:[#allocation2 + $0x111] sm:$0xff] %vm906_vm4, %v666_v37  ;;  %v602_v46 = vadd.f32 %v6309_v43, %v7679_v50  ;;  %v596_v47 = vpop.f32.mrb[7].mxu1 }
  0xf8   : > { %1025 = vst.msk [vmem:[#allocation2 + $0x69] sm:$0xff] %vm906_vm4, %v652_v33  ;;  %v532_v39 = vadd.f32 %v6288_v36, %v7679_v50  ;;  %v526_v40 = vpop.f32.mrb[9].mxu0  ;;  %v1185_v41 = vld [vmem:[#allocation2 + $0x31] sm:$0xff]  ;;  %6878 = vmatprep.subr.msk.bf16.mxu0 %vm7290_vm2, %v7716_v28  ;;  %1038 = vst.msk [vmem:[#allocation2 + $0x109] sm:$0xff] %vm906_vm4, %v665_v42  ;;  %v597_v49 = vadd.f32 %v7679_v50, %v596_v47  ;;  %v1199_v47 = vld [vmem:[#allocation2 + $0xd9] sm:$0xff] }
  0xf9   : > { %1024 = vst.msk [vmem:[#allocation2 + $0x61] sm:$0xff] %vm906_vm4, %v651_v35  ;;  %v527_v44 = vadd.f32 %v7679_v50, %v526_v40  ;;  %6382 = vmatprep.mubr.msk.f32.mxu1 %vm906_vm4, %v1185_v41  ;;  %6587 = vmatprep.mubr.msk.f32.mxu0 %vm906_vm4, %v1185_v41  ;;  %v668_v53 = vmax.f32 %v602_v46, 0.0 }
  0xfa   : > { %v654_v48 = vmax.f32 %v532_v39, 0.0  ;;  %6383 = vmatmul.mubr.msk.f32.gmra.mrb[52].mxu1 %vm906_vm4, %v1186_v45  ;;  %6588 = vmatmul.mubr.msk.f32.gmra.mrb[18].mxu0 %vm906_vm4, %v1186_v45  ;;  %v667_v57 = vmax.f32 %v597_v49, 0.0  ;;  %v6312_v58 = vpop.f32.mrb[8].mxu1  ;;  %v1200_v49 = vld [vmem:[#allocation2 + $0xe1] sm:$0xff] }
  0xfb   : > { %v653_v51 = vmax.f32 %v527_v44, 0.0  ;;  %v6291_v52 = vpop.f32.mrb[10].mxu0  ;;  %v1188_v60 = vld [vmem:[#allocation2 + $0x51] sm:$0xff]  ;;  %1041 = vst.msk [vmem:[#allocation2 + $0x129] sm:$0xff] %vm906_vm4, %v668_v53  ;;  %v612_v61 = vadd.f32 %v6312_v58, %v7679_v50  ;;  %v606_v62 = vpop.f32.mrb[9].mxu1 }
  0xfc   : > { %1027 = vst.msk [vmem:[#allocation2 + $0x81] sm:$0xff] %vm906_vm4, %v654_v48  ;;  %v542_v54 = vadd.f32 %v6291_v52, %v7679_v50  ;;  %v536_v55 = vpop.f32.mrb[11].mxu0  ;;  %v1187_v56 = vld [vmem:[#allocation2 + $0x49] sm:$0xff]  ;;  %1040 = vst.msk [vmem:[#allocation2 + $0x121] sm:$0xff] %vm906_vm4, %v667_v57  ;;  %v607_v0 = vadd.f32 %v7679_v50, %v606_v62  ;;  %v1201_v48 = vld [vmem:[#allocation2 + $0xf1] sm:$0xff] }
  0xfd   : > { %1026 = vst.msk [vmem:[#allocation2 + $0x79] sm:$0xff] %vm906_vm4, %v653_v51  ;;  %v537_v59 = vadd.f32 %v7679_v50, %v536_v55  ;;  %6385 = vmatprep.mubr.msk.f32.mxu1 %vm906_vm4, %v1187_v56  ;;  %6590 = vmatprep.mubr.msk.f32.mxu0 %vm906_vm4, %v1187_v56  ;;  %v670_v4 = vmax.f32 %v612_v61, 0.0  ;;  %v1202_v52 = vld [vmem:[#allocation2 + $0xf9] sm:$0xff] }
  0xfe   : > { %v656_v63 = vmax.f32 %v542_v54, 0.0  ;;  %6386 = vmatmul.mubr.msk.f32.gmra.mrb[54].mxu1 %vm906_vm4, %v1188_v60  ;;  %6591 = vmatmul.mubr.msk.f32.gmra.mrb[20].mxu0 %vm906_vm4, %v1188_v60  ;;  %v669_v9 = vmax.f32 %v607_v0, 0.0  ;;  %v6315_v10 = vpop.f32.mrb[10].mxu1  ;;  %v1204_v54 = vld [vmem:[#allocation2 + $0x111] sm:$0xff]  ;;  %v1083_v62 = vld [vmem:[#allocation2] sm:$0xff] }
  0xff   : > { %v655_v1 = vmax.f32 %v537_v59, 0.0  ;;  %v6294_v3 = vpop.f32.mrb[12].mxu0  ;;  %v1190_v12 = vld [vmem:[#allocation2 + $0x69] sm:$0xff]  ;;  %1043 = vst.msk [vmem:[#allocation2 + $0x141] sm:$0xff] %vm906_vm4, %v670_v4  ;;  %v622_v13 = vadd.f32 %v6315_v10, %v7679_v50  ;;  %v616_v14 = vpop.f32.mrb[11].mxu1  ;;  %v7848_v10 = vld [vmem:[#allocation2 + $0x1a] sm:$0xff] }
 0x100   : > { %1029 = vst.msk [vmem:[#allocation2 + $0x99] sm:$0xff] %vm906_vm4, %v656_v63  ;;  %v552_v6 = vadd.f32 %v6294_v3, %v7679_v50  ;;  %v546_v7 = vpop.f32.mrb[13].mxu0  ;;  %v1189_v8 = vld [vmem:[#allocation2 + $0x61] sm:$0xff]  ;;  %1042 = vst.msk [vmem:[#allocation2 + $0x139] sm:$0xff] %vm906_vm4, %v669_v9  ;;  %v617_v16 = vadd.f32 %v7679_v50, %v616_v14  ;;  %v1203_v51 = vld [vmem:[#allocation2 + $0x109] sm:$0xff] }
 0x101   : > { %1028 = vst.msk [vmem:[#allocation2 + $0x91] sm:$0xff] %vm906_vm4, %v655_v1  ;;  %v547_v11 = vadd.f32 %v7679_v50, %v546_v7  ;;  %6388 = vmatprep.mubr.msk.f32.mxu1 %vm906_vm4, %v1189_v8  ;;  %6593 = vmatprep.mubr.msk.f32.mxu0 %vm906_vm4, %v1189_v8  ;;  %v672_v19 = vmax.f32 %v622_v13, 0.0  ;;  %v5684_v0 = vld [vmem:[%s8796_s5 + $0x30] sm:$0xff]  ;;  %v5685_v1 = vld [vmem:[%s8796_s5 + $0x38] sm:$0xf]  ;;  %v1084_v3 = vld [vmem:[#allocation2 + $0x8] sm:$0xff] }
 0x102   : > { %v658_v15 = vmax.f32 %v552_v6, 0.0  ;;  %6389 = vmatmul.mubr.msk.f32.gmra.mrb[56].mxu1 %vm906_vm4, %v1190_v12  ;;  %6594 = vmatmul.mubr.msk.f32.gmra.mrb[22].mxu0 %vm906_vm4, %v1190_v12  ;;  %v671_v23 = vmax.f32 %v617_v16, 0.0  ;;  %v6318_v24 = vpop.f32.mrb[12].mxu1  ;;  %v1206_v56 = vld [vmem:[#allocation2 + $0x129] sm:$0xff]  ;;  %v5825_v7 = vld [vmem:[%s8796_s5 + $0x78] sm:$0xf]  ;;  %v7844_v8 = vpack.c.bf16 %v5685_v1, %v5684_v0 }
 0x103   : > { %v657_v17 = vmax.f32 %v547_v11, 0.0  ;;  %v6297_v18 = vpop.f32.mrb[14].mxu0  ;;  %v1192_v26 = vld [vmem:[#allocation2 + $0x81] sm:$0xff]  ;;  %1045 = vst.msk [vmem:[#allocation2 + $0x159] sm:$0xff] %vm906_vm4, %v672_v19  ;;  %v632_v27 = vadd.f32 %v6318_v24, %v7679_v50  ;;  %v626_v29 = vpop.f32.mrb[13].mxu1  ;;  %v5824_v6 = vld [vmem:[%s8796_s5 + $0x70] sm:$0xff] }
 0x104   : > { %1031 = vst.msk [vmem:[#allocation2 + $0xb1] sm:$0xff] %vm906_vm4, %v658_v15  ;;  %v562_v20 = vadd.f32 %v6297_v18, %v7679_v50  ;;  %v556_v21 = vpop.f32.mrb[15].mxu0  ;;  %v1191_v22 = vld [vmem:[#allocation2 + $0x79] sm:$0xff]  ;;  %1044 = vst.msk [vmem:[#allocation2 + $0x151] sm:$0xff] %vm906_vm4, %v671_v23  ;;  %v627_v31 = vadd.f32 %v7679_v50, %v626_v29  ;;  %v1205_v53 = vld [vmem:[#allocation2 + $0x121] sm:$0xff]  ;;  %v7856_v11 = vpack.c.bf16 %v5825_v7, %v5824_v6 }
 0x105   : > { %1030 = vst.msk [vmem:[#allocation2 + $0xa9] sm:$0xff] %vm906_vm4, %v657_v17  ;;  %v557_v25 = vadd.f32 %v7679_v50, %v556_v21  ;;  %6391 = vmatprep.mubr.msk.f32.mxu1 %vm906_vm4, %v1191_v22  ;;  %6596 = vmatprep.mubr.msk.f32.mxu0 %vm906_vm4, %v1191_v22  ;;  %v674_v33 = vmax.f32 %v632_v27, 0.0  ;;  %v1085_v9 = vld [vmem:[#allocation2 + $0x18] sm:$0xff]  ;;  %v1086_v12 = vld [vmem:[#allocation2 + $0x20] sm:$0xff]  ;;  %v7866_v14 = vld [vmem:[#allocation2 + $0x30] sm:$0xff] }
 0x106   : > { %v660_v30 = vmax.f32 %v562_v20, 0.0  ;;  %6392 = vmatmul.mubr.msk.f32.gmra.mrb[58].mxu1 %vm906_vm4, %v1192_v26  ;;  %6597 = vmatmul.mubr.msk.f32.gmra.mrb[24].mxu0 %vm906_vm4, %v1192_v26  ;;  %v673_v35 = vmax.f32 %v627_v31, 0.0  ;;  %v6321_v36 = vpop.f32.mrb[14].mxu1  ;;  %v1208_v58 = vld [vmem:[#allocation2 + $0x141] sm:$0xff]  ;;  %v7880_v15 = vld [vmem:[#allocation2 + $0x38] sm:$0xff]  ;;  %v7890_v17 = vld [vmem:[#allocation2 + $0x4a] sm:$0xff] }
 0x107   : > { %v659_v32 = vmax.f32 %v557_v25, 0.0  ;;  %v1194_v37 = vld [vmem:[#allocation2 + $0x99] sm:$0xff]  ;;  %1047 = vst.msk [vmem:[#allocation2 + $0x171] sm:$0xff] %vm906_vm4, %v674_v33  ;;  %v642_v39 = vadd.f32 %v6321_v36, %v7679_v50  ;;  %v636_v40 = vpop.f32.mrb[15].mxu1  ;;  %v7858_v13 = vld [vmem:[#allocation2 + $0x22] sm:$0xff]  ;;  %v7932_v19 = vld [vmem:[#allocation2 + $0x50] sm:$0xff] }
 0x108   : > { %1033 = vst.msk [vmem:[#allocation2 + $0xc9] sm:$0xff] %vm906_vm4, %v660_v30  ;;  %v1193_v34 = vld [vmem:[#allocation2 + $0x91] sm:$0xff]  ;;  %1046 = vst.msk [vmem:[#allocation2 + $0x169] sm:$0xff] %vm906_vm4, %v673_v35  ;;  %v637_v41 = vadd.f32 %v7679_v50, %v636_v40  ;;  %v1207_v55 = vld [vmem:[#allocation2 + $0x139] sm:$0xff] }
 0x109   : > { %1032 = vst.msk [vmem:[#allocation2 + $0xc1] sm:$0xff] %vm906_vm4, %v659_v32  ;;  %6394 = vmatprep.mubr.msk.f32.mxu1 %vm906_vm4, %v1193_v34  ;;  %6599 = vmatprep.mubr.msk.f32.mxu0 %vm906_vm4, %v1193_v34  ;;  %v676_v42 = vmax.f32 %v642_v39, 0.0  ;;  %v7882_v16 = vld [vmem:[#allocation2 + $0x3a] sm:$0xff]  ;;  %v7934_v20 = vld [vmem:[#allocation2 + $0x52] sm:$0xff]  ;;  %v7943_v22 = vld [vmem:[#allocation2 + $0x62] sm:$0xff] }
 0x10a   : > { %6395 = vmatmul.mubr.msk.f32.gmra.mrb[60].mxu1 %vm906_vm4, %v1194_v37  ;;  %6600 = vmatmul.mubr.msk.f32.gmra.mrb[26].mxu0 %vm906_vm4, %v1194_v37  ;;  %v675_v44 = vmax.f32 %v637_v41, 0.0  ;;  %v1210_v60 = vld [vmem:[#allocation2 + $0x159] sm:$0xff]  ;;  %v6326_v18 = vpop.f32.mrb[16].mxu1  ;;  %v7951_v24 = vld [vmem:[#allocation2 + $0x68] sm:$0xff]  ;;  %v1117_v30 = vld [vmem:[#allocation3] sm:$0xff] }
 0x10b   : > { %v1196_v45 = vld [vmem:[#allocation2 + $0xb1] sm:$0xff]  ;;  %1049 = vst.msk [vmem:[#allocation2 + $0x189] sm:$0xff] %vm906_vm4, %v676_v42  ;;  %v7941_v21 = vld [vmem:[#allocation2 + $0x60] sm:$0xff]  ;;  %v747_v23 = vpop.f32.mrb[17].mxu1 }
 0x10c   : > { %v1195_v43 = vld [vmem:[#allocation2 + $0xa9] sm:$0xff]  ;;  %1048 = vst.msk [vmem:[#allocation2 + $0x181] sm:$0xff] %vm906_vm4, %v675_v44  ;;  %v1209_v57 = vld [vmem:[#allocation2 + $0x151] sm:$0xff]  ;;  %v7961_v27 = vld [vmem:[#allocation2 + $0x7a] sm:$0xff] }
 0x10d   : > { %6397 = vmatprep.mubr.msk.f32.mxu1 %vm906_vm4, %v1195_v43  ;;  %6602 = vmatprep.mubr.msk.f32.mxu0 %vm906_vm4, %v1195_v43  ;;  %1052 = vst.msk [vmem:[#allocation3 + $0x21] sm:$0xff] %vm319_vm3, %v6326_v18  ;;  %1051 = vst.msk [vmem:[#allocation3 + $0x19] sm:$0xff] %vm319_vm3, %v747_v23  ;;  %v7953_v25 = vld [vmem:[#allocation2 + $0x6a] sm:$0xff]  ;;  %v7959_v26 = vld [vmem:[#allocation2 + $0x78] sm:$0xff] }
 0x10e   : > { %6398 = vmatmul.mubr.msk.f32.gmra.mrb[62].mxu1 %vm906_vm4, %v1196_v45  ;;  %6603 = vmatmul.mubr.msk.f32.gmra.mrb[28].mxu0 %vm906_vm4, %v1196_v45  ;;  %v1212_v63 = vld [vmem:[#allocation2 + $0x171] sm:$0xff]  ;;  %v6329_v38 = vpop.f32.mrb[18].mxu1  ;;  %v7968_v32 = vld [vmem:[#allocation2 + $0x80] sm:$0xff] }
 0x10f   : > { %v1198_v50 = vld [vmem:[#allocation2 + $0xc9] sm:$0xff]  ;;  %1054 = vst.msk [vmem:[#allocation3 + $0x39] sm:$0xff] %vm319_vm3, %v6329_v38  ;;  %v757_v29 = vpop.f32.mrb[19].mxu1  ;;  %v1864_v31 = vld [vmem:[#allocation3 + $0x1] sm:$0xff]  ;;  %v7984_v39 = vld [vmem:[#allocation2 + $0x9a] sm:$0xff] }
 0x110   : > { %v1197_v46 = vld [vmem:[#allocation2 + $0xc1] sm:$0xff]  ;;  %v1211_v59 = vld [vmem:[#allocation2 + $0x169] sm:$0xff]  ;;  %1053 = vst.msk [vmem:[#allocation3 + $0x31] sm:$0xff] %vm319_vm3, %v757_v29  ;;  %v1896_v34 = vadd.f32 %v1864_v31, %v1117_v30  ;;  %v7978_v36 = vld [vmem:[#allocation2 + $0x92] sm:$0xff] }
 0x111   : > { %6400 = vmatprep.mubr.msk.f32.mxu1 %vm906_vm4, %v1197_v46  ;;  %6605 = vmatprep.mubr.msk.f32.mxu0 %vm906_vm4, %v1197_v46  ;;  %v7970_v33 = vld [vmem:[#allocation2 + $0x82] sm:$0xff]  ;;  %v7976_v35 = vld [vmem:[#allocation2 + $0x90] sm:$0xff]  ;;  %v1118_v45 = vld [vmem:[#allocation3 + $0x8] sm:$0xff] }
 0x112   : > { %6401 = vmatmul.mubr.msk.f32.gmra.mrb[64].mxu1 %vm906_vm4, %v1198_v50  ;;  %6606 = vmatmul.mubr.msk.f32.gmra.mrb[30].mxu0 %vm906_vm4, %v1198_v50  ;;  %v2869_v4 = vld [vmem:[#allocation2 + $0x189] sm:$0xff]  ;;  %v2319_v37 = vld [vmem:[#allocation3 + $0x2] sm:$0xff]  ;;  %v6332_v40 = vpop.f32.mrb[20].mxu1  ;;  %v8007_v0 = vld [vmem:[#allocation2 + $0xc0] sm:$0xff] }
 0x113   : > { %6403 = vmatprep.mubr.msk.f32.mxu1 %vm906_vm4, %v1199_v47  ;;  %6608 = vmatprep.mubr.msk.f32.mxu0 %vm906_vm4, %v1199_v47  ;;  %v2868_v61 = vld [vmem:[#allocation2 + $0x181] sm:$0xff]  ;;  %v2351_v41 = vadd.f32 %v2319_v37, %v1896_v34  ;;  %1056 = vst.msk [vmem:[#allocation3 + $0x51] sm:$0xff] %vm319_vm3, %v6332_v40  ;;  %v767_v42 = vpop.f32.mrb[21].mxu1  ;;  %v7987_v46 = vld [vmem:[#allocation2 + $0x98] sm:$0xff] }
 0x114   : > { %v2774_v43 = vld [vmem:[#allocation3 + $0x18] sm:$0xff]  ;;  %1055 = vst.msk [vmem:[#allocation3 + $0x49] sm:$0xff] %vm319_vm3, %v767_v42  ;;  %v3685_v18 = vld [vmem:[#allocation3 + $0x22] sm:$0xff]  ;;  %v7174_v5 = vld [vmem:[#allocation2 + $0x60] sm:$0xff] }
 0x115   : > { %v3229_v44 = vld [vmem:[#allocation3 + $0x19] sm:$0xff]  ;;  %v2806_v50 = vadd.f32 %v2774_v43, %v2351_v41 }
 0x116   : > { %6404 = vmatmul.mubr.msk.f32.gmra.mrb[66].mxu1 %vm906_vm4, %v1200_v49  ;;  %6609 = vmatmul.mubr.msk.f32.gmra.mrb[32].mxu0 %vm906_vm4, %v1200_v49  ;;  %v7989_v47 = vld [vmem:[#allocation2 + $0xa8] sm:$0xff]  ;;  %v1898_v49 = vadd.f32 %v3229_v44, %v2774_v43  ;;  %v8025_v43 = vld [vmem:[#allocation2 + $0xd8] sm:$0xff] }
 0x117   : > { %6406 = vmatprep.mubr.msk.f32.mxu1 %vm906_vm4, %v1201_v48  ;;  %6611 = vmatprep.mubr.msk.f32.mxu0 %vm906_vm4, %v1201_v48  ;;  %v1865_v48 = vld [vmem:[#allocation3 + $0x9] sm:$0xff]  ;;  %v8013_v6 = vld [vmem:[#allocation2 + $0xc2] sm:$0xff]  ;;  %v8023_v42 = vld [vmem:[#allocation2 + $0xca] sm:$0xff] }
 0x118   : > { %v5051_v31 = vld [vmem:[#allocation3 + $0x32] sm:$0xff] }
 0x119   : > { %v4142_v37 = vld [vmem:[#allocation3 + $0x38] sm:$0xff] }
 0x11a   : > { %6407 = vmatmul.mubr.msk.f32.gmra.mrb[68].mxu1 %vm906_vm4, %v1202_v52  ;;  %6612 = vmatmul.mubr.msk.f32.gmra.mrb[34].mxu0 %vm906_vm4, %v1202_v52  ;;  %v3684_v52 = vld [vmem:[#allocation3 + $0x1a] sm:$0xff] }
 0x11b   : > { %6409 = vmatprep.mubr.msk.f32.mxu1 %vm906_vm4, %v1203_v51  ;;  %6614 = vmatprep.mubr.msk.f32.mxu0 %vm906_vm4, %v1203_v51  ;;  %v7996_v51 = vld [vmem:[#allocation2 + $0xaa] sm:$0xff] }
 0x11c   : > { %v4597_v40 = vld [vmem:[#allocation3 + $0x39] sm:$0xff] }
 0x11d   : > { %v8021_v41 = vld [vmem:[#allocation2 + $0xc8] sm:$0xff] }
 0x11e   : > { %6410 = vmatmul.mubr.msk.f32.gmra.mrb[70].mxu1 %vm906_vm4, %v1204_v54  ;;  %6615 = vmatmul.mubr.msk.f32.gmra.mrb[36].mxu0 %vm906_vm4, %v1204_v54  ;;  %v2320_v54 = vld [vmem:[#allocation3 + $0xa] sm:$0xff] }
 0x11f   : > { %6412 = vmatprep.mubr.msk.f32.mxu1 %vm906_vm4, %v1205_v53  ;;  %6617 = vmatprep.mubr.msk.f32.mxu0 %vm906_vm4, %v1205_v53  ;;  %v1897_v53 = vadd.f32 %v1865_v48, %v1118_v45  ;;  %v1901_v48 = vadd.f32 %v4597_v40, %v4142_v37 }
 0x122   : > { %6413 = vmatmul.mubr.msk.f32.gmra.mrb[72].mxu1 %vm906_vm4, %v1206_v56  ;;  %6618 = vmatmul.mubr.msk.f32.gmra.mrb[38].mxu0 %vm906_vm4, %v1206_v56  ;;  %v3261_v56 = vadd.f32 %v3229_v44, %v2806_v50 }
 0x123   : > { %6415 = vmatprep.mubr.msk.f32.mxu1 %vm906_vm4, %v1207_v55  ;;  %6620 = vmatprep.mubr.msk.f32.mxu0 %vm906_vm4, %v1207_v55  ;;  %v6335_v55 = vpop.f32.mrb[22].mxu1 }
 0x124   : > { %1058 = vst.msk [vmem:[#allocation3 + $0x69] sm:$0xff] %vm319_vm3, %v6335_v55  ;;  %v3716_v1 = vadd.f32 %v3684_v52, %v3261_v56  ;;  %v777_v7 = vpop.f32.mrb[23].mxu1  ;;  %v4143_v55 = vld [vmem:[#allocation3 + $0x48] sm:$0xff] }
 0x125   : > { %1057 = vst.msk [vmem:[#allocation3 + $0x61] sm:$0xff] %vm319_vm3, %v777_v7  ;;  %v6338_v23 = vpop.f32.mrb[24].mxu1  ;;  %v4144_v7 = vld [vmem:[#allocation3 + $0x50] sm:$0xff] }
 0x126   : > { %6416 = vmatmul.mubr.msk.f32.gmra.mrb[74].mxu1 %vm906_vm4, %v1208_v58  ;;  %6621 = vmatmul.mubr.msk.f32.gmra.mrb[40].mxu0 %vm906_vm4, %v1208_v58  ;;  %v4141_v58 = vld [vmem:[#allocation3 + $0x30] sm:$0xff]  ;;  %1060 = vst.msk [vmem:[#allocation3 + $0x81] sm:$0xff] %vm319_vm3, %v6338_v23  ;;  %v8048_v23 = vld [vmem:[#allocation2 + $0xf0] sm:$0xff] }
 0x127   : > { %6418 = vmatprep.mubr.msk.f32.mxu1 %vm906_vm4, %v1209_v57  ;;  %6623 = vmatprep.mubr.msk.f32.mxu0 %vm906_vm4, %v1209_v57  ;;  %v2353_v57 = vadd.f32 %v3684_v52, %v1898_v49  ;;  %v4173_v38 = vadd.f32 %v4141_v58, %v3716_v1  ;;  %v8031_v49 = vld [vmem:[#allocation2 + $0xda] sm:$0xff]  ;;  %v787_v52 = vpop.f32.mrb[25].mxu1  ;;  %8832 = vst [vmem:[#allocation7_spill] sm:$0xff] %v8048_v23 }
 0x128   : > { %8829 = vst [vmem:[#allocation4_spill] sm:$0xff] %v8031_v49  ;;  %1059 = vst.msk [vmem:[#allocation3 + $0x79] sm:$0xff] %vm319_vm3, %v787_v52 }
 0x12a   : > { %6419 = vmatmul.mubr.msk.f32.gmra.mrb[76].mxu1 %vm906_vm4, %v1210_v60  ;;  %6624 = vmatmul.mubr.msk.f32.gmra.mrb[42].mxu0 %vm906_vm4, %v1210_v60  ;;  %v2775_v60 = vld [vmem:[#allocation3 + $0x20] sm:$0xff] }
 0x12b   : > { %6421 = vmatprep.mubr.msk.f32.mxu1 %vm906_vm4, %v1211_v59  ;;  %6626 = vmatprep.mubr.msk.f32.mxu0 %vm906_vm4, %v1211_v59  ;;  %v2352_v59 = vadd.f32 %v2320_v54, %v1897_v53  ;;  %v5052_v54 = vld [vmem:[#allocation3 + $0x3a] sm:$0xff] }
 0x12e   : > { %6422 = vmatmul.mubr.msk.f32.gmra.mrb[78].mxu1 %vm906_vm4, %v1212_v63  ;;  %6627 = vmatmul.mubr.msk.f32.gmra.mrb[44].mxu0 %vm906_vm4, %v1212_v63  ;;  %v8005_v63 = vld [vmem:[#allocation2 + $0xb2] sm:$0xff] }
 0x12f   : > { %6629 = vmatprep.mubr.msk.f32.mxu0 %vm906_vm4, %v2868_v61  ;;  %6428 = vmatprep.mubr.msk.f32.mxu1 %vm906_vm4, %v1083_v62  ;;  %v3230_v61 = vld [vmem:[#allocation3 + $0x21] sm:$0xff] }
 0x130   : > { %v8003_v62 = vld [vmem:[#allocation2 + $0xb0] sm:$0xff] }
 0x132   : > { %6429 = vmatmul.mubr.msk.f32.vlgmr.msra.gmra.mrb[48].mxu1 %vm906_vm4, %v1084_v3  ;;  %6630 = vmatmul.mubr.msk.f32.gmra.mrb[46].mxu0 %vm906_vm4, %v2869_v4  ;;  %v2808_v3 = vadd.f32 %v4141_v58, %v2353_v57  ;;  %v1899_v4 = vadd.f32 %v3230_v61, %v2775_v60  ;;  %v8037_v57 = vld [vmem:[#allocation2 + $0xe0] sm:$0xff] }
 0x133   : > { %6431 = vmatprep.mubr.msk.f32.mxu1 %vm906_vm4, %v1085_v9  ;;  %6636 = vmatprep.mubr.msk.f32.mxu0 %vm906_vm4, %v7848_v10  ;;  %v4596_v9 = vld [vmem:[#allocation3 + $0x31] sm:$0xff]  ;;  %8830 = vst [vmem:[#allocation5_spill] sm:$0xff] %v8037_v57 }
 0x134   : > { %6857 = vmatpush3.bf16.msk.msra.mxu1 %vm7290_vm2, %v7694_v2  ;;  %v7873_v2 = vld [vmem:[#allocation2 + $0x32] sm:$0xff]  ;;  %v3263_v29 = vadd.f32 %v4596_v9, %v2808_v3  ;;  %v2354_v30 = vadd.f32 %v3685_v18, %v1899_v4  ;;  %v4628_v44 = vadd.f32 %v4596_v9, %v4173_v38  ;;  %v1900_v56 = vadd.f32 %v4596_v9, %v4141_v58  ;;  %v8044_v58 = vld [vmem:[%s8795_s4] ss:$0 sm:$0xff] }
 0x135   : > { %6860 = vmatprep.subr.msk.bf16.mxu1 %vm7290_vm2, %v7844_v8  ;;  %v4598_v4 = vld [vmem:[#allocation3 + $0x49] sm:$0xff]  ;;  %v2356_v9 = vadd.f32 %v5052_v54, %v1901_v48  ;;  %v5054_v48 = vld [vmem:[#allocation3 + $0x52] sm:$0xff] }
 0x136   : > { %6432 = vmatmul.mubr.msk.f32.gmra.mrb[50].mxu1 %vm906_vm4, %v1086_v12  ;;  %6637 = vmatmul.mubr.msk.f32.vlgmr.msra.gmra.mrb[16].mxu0 %vm906_vm4, %v7858_v13  ;;  %v2807_v12 = vadd.f32 %v2775_v60, %v2352_v59  ;;  %v3718_v45 = vadd.f32 %v5051_v31, %v3263_v29  ;;  %v2809_v50 = vadd.f32 %v4142_v37, %v2354_v30  ;;  %v6341_v59 = vpop.f32.mrb[26].mxu1 }
 0x137   : > { %6881 = vmatpush3.bf16.msk.msra.mxu0 %vm7290_vm2, %v7716_v28  ;;  %6434 = vmatprep.mubr.msk.f32.mxu1 %vm906_vm4, %v7866_v14  ;;  %v7888_v28 = vld [vmem:[#allocation2 + $0x48] sm:$0xff]  ;;  %v5083_v60 = vadd.f32 %v5051_v31, %v4628_v44  ;;  %1062 = vst.msk [vmem:[#allocation3 + $0x99] sm:$0xff] %vm319_vm3, %v6341_v59  ;;  %v1902_v44 = vadd.f32 %v4598_v4, %v4143_v55 }
 0x138   : > { %6639 = vmatprep.mubr.msk.f32.mxu0 %vm906_vm4, %v7873_v2  ;;  %6884 = vmatprep.subr.msk.bf16.mxu0 %vm7290_vm2, %v7856_v11  ;;  %v3262_v34 = vadd.f32 %v3230_v61, %v2807_v12  ;;  %v4175_v61 = vadd.f32 %v4143_v55, %v3718_v45  ;;  %v3264_v1 = vadd.f32 %v4597_v40, %v2809_v50  ;;  %v797_v45 = vpop.f32.mrb[27].mxu1  ;;  %v5053_v50 = vld [vmem:[#allocation3 + $0x4a] sm:$0xff] }
 0x139   : > { %v2355_v12 = vadd.f32 %v5051_v31, %v1900_v56  ;;  %v5193_v38 = vadd.f32 %v8044_v58, %v5083_v60  ;;  %v2811_v52 = vadd.f32 %v4144_v7, %v2356_v9  ;;  %1061 = vst.msk [vmem:[#allocation3 + $0x91] sm:$0xff] %vm319_vm3, %v797_v45  ;;  %v6344_v59 = vpop.f32.mrb[28].mxu1  ;;  %v4601_v9 = vld [vmem:[#allocation3 + $0x69] sm:$0xff] }
 0x13a   : > { %6435 = vmatmul.mubr.msk.f32.gmra.mrb[52].mxu1 %vm906_vm4, %v7880_v15  ;;  %6640 = vmatmul.mubr.msk.f32.gmra.mrb[18].mxu0 %vm906_vm4, %v7882_v16  ;;  %v3717_v53 = vadd.f32 %v3685_v18, %v3262_v34  ;;  %v8046_v18 = vld [vmem:[#allocation2 + $0xe2] sm:$0xff]  ;;  %v4630_v29 = vadd.f32 %v4598_v4, %v4175_v61  ;;  %v3719_v30 = vadd.f32 %v5052_v54, %v3264_v1 }
 0x13b   : > { %6437 = vmatprep.mubr.msk.f32.mxu1 %vm906_vm4, %v7888_v28  ;;  %6642 = vmatprep.mubr.msk.f32.mxu0 %vm906_vm4, %v7890_v17  ;;  %8831 = vst [vmem:[#allocation6_spill] sm:$0xff] %v8046_v18  ;;  %v4599_v34 = vld [vmem:[#allocation3 + $0x51] sm:$0xff]  ;;  %v5225_v56 = vmax.f32 %v5193_v38, 0.0  ;;  %1064 = vst.msk [vmem:[#allocation3 + $0xb1] sm:$0xff] %vm319_vm3, %v6344_v59 }
 0x13c   : > { %v4174_v3 = vadd.f32 %v4142_v37, %v3717_v53  ;;  %v8055_v37 = vld [vmem:[#allocation2 + $0xf2] sm:$0xff]  ;;  %v2810_v53 = vadd.f32 %v4143_v55, %v2355_v12  ;;  %v5085_v60 = vadd.f32 %v5053_v50, %v4630_v29  ;;  %v4176_v61 = vadd.f32 %v4144_v7, %v3719_v30  ;;  %v807_v30 = vpop.f32.mrb[29].mxu1 }
 0x13d   : > { %8833 = vst [vmem:[#allocation8_spill] sm:$0xff] %v8055_v37  ;;  %v1903_v1 = vadd.f32 %v4599_v34, %v4144_v7  ;;  %v4145_v12 = vld [vmem:[#allocation3 + $0x60] sm:$0xff]  ;;  %5321 = vrot.lane.b32.xlu0 %v5225_v56, %s7221_s29  ;;  %1063 = vst.msk [vmem:[#allocation3 + $0xa9] sm:$0xff] %vm319_vm3, %v807_v30  ;;  %v6347_v56 = vpop.f32.mrb[30].mxu1 }
 0x13e   : > { %6438 = vmatmul.mubr.msk.f32.gmra.mrb[54].mxu1 %vm906_vm4, %v7932_v19  ;;  %6643 = vmatmul.mubr.msk.f32.gmra.mrb[20].mxu0 %vm906_vm4, %v7934_v20  ;;  %v4629_v31 = vadd.f32 %v4597_v40, %v4174_v3  ;;  %v3266_v3 = vadd.f32 %v4599_v34, %v2811_v52  ;;  %v3265_v55 = vadd.f32 %v4598_v4, %v2810_v53  ;;  %v8075_v4 = vld [vmem:[#allocation2 + $0x10a] sm:$0xff] }
 0x13f   : > { %6440 = vmatprep.mubr.msk.f32.mxu1 %vm906_vm4, %v7941_v21  ;;  %6645 = vmatprep.mubr.msk.f32.mxu0 %vm906_vm4, %v7943_v22  ;;  %v5195_v7 = vadd.f32 %v8044_v58, %v5085_v60  ;;  %v4631_v38 = vadd.f32 %v4599_v34, %v4176_v61  ;;  %v2358_v29 = vadd.f32 %v5054_v48, %v1903_v1  ;;  %v4600_v53 = vld [vmem:[#allocation3 + $0x61] sm:$0xff] }
 0x140   : > { %v5084_v40 = vadd.f32 %v5052_v54, %v4629_v31  ;;  %8837 = vst [vmem:[#allocation12_spill] sm:$0xff] %v8075_v4  ;;  %v3721_v45 = vadd.f32 %v5054_v48, %v3266_v3  ;;  %v5056_v31 = vld [vmem:[#allocation3 + $0x6a] sm:$0xff]  ;;  %v3720_v52 = vadd.f32 %v5053_v50, %v3265_v55  ;;  %v8083_v1 = vld [vmem:[#allocation2 + $0x110] sm:$0xff]  ;;  %1066 = vst.msk [vmem:[#allocation3 + $0xc9] sm:$0xff] %vm319_vm3, %v6347_v56 }
 0x141   : > { %v5227_v34 = vmax.f32 %v5195_v7, 0.0  ;;  %v5086_v59 = vadd.f32 %v5054_v48, %v4631_v38  ;;  %v5055_v55 = vld [vmem:[#allocation3 + $0x62] sm:$0xff] }
 0x142   : > { %6441 = vmatmul.mubr.msk.f32.gmra.mrb[56].mxu1 %vm906_vm4, %v7951_v24  ;;  %6646 = vmatmul.mubr.msk.f32.gmra.mrb[22].mxu0 %vm906_vm4, %v7953_v25  ;;  %v4177_v3 = vadd.f32 %v4145_v12, %v3720_v52  ;;  %v4602_v52 = vld [vmem:[#allocation3 + $0x79] sm:$0xff] }
 0x143   : > { %6443 = vmatprep.mubr.msk.f32.mxu1 %vm906_vm4, %v7959_v26  ;;  %6648 = vmatprep.mubr.msk.f32.mxu0 %vm906_vm4, %v7961_v27  ;;  %v5196_v48 = vadd.f32 %v8044_v58, %v5086_v59 }
 0x144   : > { %5325 = vrot.lane.b32.xlu1 %v5227_v34, %s7221_s29 }
 0x146   : > { %6444 = vmatmul.mubr.msk.f32.gmra.mrb[58].mxu1 %vm906_vm4, %v7968_v32  ;;  %6649 = vmatmul.mubr.msk.f32.gmra.mrb[24].mxu0 %vm906_vm4, %v7970_v33 }
 0x147   : > { %6446 = vmatprep.mubr.msk.f32.mxu1 %vm906_vm4, %v7976_v35  ;;  %6651 = vmatprep.mubr.msk.f32.mxu0 %vm906_vm4, %v7978_v36 }
 0x14a   : > { %6447 = vmatmul.mubr.msk.f32.gmra.mrb[60].mxu1 %vm906_vm4, %v7987_v46  ;;  %6652 = vmatmul.mubr.msk.f32.gmra.mrb[26].mxu0 %vm906_vm4, %v7984_v39 }
 0x14b   : > { %6449 = vmatprep.mubr.msk.f32.mxu1 %vm906_vm4, %v7989_v47  ;;  %6654 = vmatprep.mubr.msk.f32.mxu0 %vm906_vm4, %v7996_v51 }
 0x14e   : > { %6450 = vmatmul.mubr.msk.f32.gmra.mrb[62].mxu1 %vm906_vm4, %v8003_v62  ;;  %6655 = vmatmul.mubr.msk.f32.gmra.mrb[28].mxu0 %vm906_vm4, %v8005_v63 }
 0x14f   : > { %6452 = vmatprep.mubr.msk.f32.mxu1 %vm906_vm4, %v8007_v0  ;;  %6657 = vmatprep.mubr.msk.f32.mxu0 %vm906_vm4, %v8013_v6 }
 0x152   : > { %6453 = vmatmul.mubr.msk.f32.gmra.mrb[64].mxu1 %vm906_vm4, %v8021_v41  ;;  %6658 = vmatmul.mubr.msk.f32.gmra.mrb[30].mxu0 %vm906_vm4, %v8023_v42 }
 0x153   : > { %6455 = vmatprep.mubr.msk.f32.mxu1 %vm906_vm4, %v8025_v43  ;;  %6660 = vmatprep.mubr.msk.f32.mxu0 %vm906_vm4, %v8031_v49  ;;  %v2357_v49 = vadd.f32 %v5053_v50, %v1902_v44  ;;  %v5194_v44 = vadd.f32 %v8044_v58, %v5084_v40 }
 0x155   : > { %v2812_v61 = vadd.f32 %v4145_v12, %v2357_v49  ;;  %v5226_v40 = vmax.f32 %v5194_v44, 0.0  ;;  %v4603_v49 = vld [vmem:[#allocation3 + $0x81] sm:$0xff]  ;;  %v4632_v44 = vadd.f32 %v4600_v53, %v4177_v3  ;;  %v8105_v3 = vld [vmem:[#allocation2 + $0x128] sm:$0xff] }
 0x156   : > { %6456 = vmatmul.mubr.msk.f32.gmra.mrb[66].mxu1 %vm906_vm4, %v8037_v57  ;;  %6661 = vmatmul.mubr.msk.f32.gmra.mrb[32].mxu0 %vm906_vm4, %v8046_v18  ;;  %v4146_v18 = vld [vmem:[#allocation3 + $0x68] sm:$0xff] }
 0x157   : > { %6458 = vmatprep.mubr.msk.f32.mxu1 %vm906_vm4, %v8048_v23  ;;  %6663 = vmatprep.mubr.msk.f32.mxu0 %vm906_vm4, %v8055_v37  ;;  %v8063_v23 = vld [vmem:[#allocation2 + $0xf8] sm:$0xff]  ;;  %v8067_v37 = vld [vmem:[#allocation2 + $0x108] sm:$0xff]  ;;  %v1905_v54 = vadd.f32 %v4601_v9, %v4146_v18  ;;  %v2813_v60 = vadd.f32 %v4146_v18, %v2358_v29  ;;  %v4178_v50 = vadd.f32 %v4146_v18, %v3721_v45 }
 0x158   : > { %8834 = vst [vmem:[#allocation9_spill] sm:$0xff] %v8063_v23  ;;  %v8065_v57 = vld [vmem:[#allocation2 + $0xfa] sm:$0xff]  ;;  %8836 = vst [vmem:[#allocation11_spill] sm:$0xff] %v8067_v37  ;;  %v3267_v38 = vadd.f32 %v4600_v53, %v2812_v61  ;;  %v1904_v29 = vadd.f32 %v4600_v53, %v4145_v12  ;;  %v8096_v18 = vld [vmem:[#allocation2 + $0x122] sm:$0xff]  ;;  %v5228_v12 = vmax.f32 %v5196_v48, 0.0  ;;  %5323 = vrot.lane.b32.xlu0 %v5226_v40, %s7221_s29 }
 0x159   : > { %8835 = vst [vmem:[#allocation10_spill] sm:$0xff] %v8065_v57  ;;  %v3268_v7 = vadd.f32 %v4601_v9, %v2813_v60  ;;  %8839 = vst [vmem:[#allocation14_spill] sm:$0xff] %v8096_v18  ;;  %v4633_v30 = vadd.f32 %v4601_v9, %v4178_v50  ;;  %v4147_v45 = vld [vmem:[#allocation3 + $0x78] sm:$0xff]  ;;  %v5087_v53 = vadd.f32 %v5055_v55, %v4632_v44  ;;  %v5058_v48 = vld [vmem:[#allocation3 + $0x82] sm:$0xff] }
 0x15a   : > { %6459 = vmatmul.mubr.msk.f32.gmra.mrb[68].mxu1 %vm906_vm4, %v8063_v23  ;;  %6664 = vmatmul.mubr.msk.f32.gmra.mrb[34].mxu0 %vm906_vm4, %v8065_v57  ;;  %v4148_v57 = vld [vmem:[#allocation3 + $0x80] sm:$0xff]  ;;  %v3722_v60 = vadd.f32 %v5055_v55, %v3267_v38  ;;  %v2359_v61 = vadd.f32 %v5055_v55, %v1904_v29  ;;  %v1906_v38 = vadd.f32 %v4602_v52, %v4147_v45  ;;  %v8116_v40 = vld [vmem:[#allocation2 + $0x13a] sm:$0xff] }
 0x15b   : > { %6461 = vmatprep.mubr.msk.f32.mxu1 %vm906_vm4, %v8067_v37  ;;  %6666 = vmatprep.mubr.msk.f32.mxu0 %vm906_vm4, %v8075_v4  ;;  %v2360_v37 = vadd.f32 %v5056_v31, %v1905_v54  ;;  %v8086_v23 = vld [vmem:[#allocation2 + $0x112] sm:$0xff]  ;;  %v8088_v4 = vld [vmem:[#allocation2 + $0x120] sm:$0xff]  ;;  %v817_v54 = vpop.f32.mrb[31].mxu1  ;;  %v3723_v59 = vadd.f32 %v5056_v31, %v3268_v7  ;;  %v5088_v9 = vadd.f32 %v5056_v31, %v4633_v30 }
 0x15c   : > { %8838 = vst [vmem:[#allocation13_spill] sm:$0xff] %v8086_v23  ;;  %1065 = vst.msk [vmem:[#allocation3 + $0xc1] sm:$0xff] %vm319_vm3, %v817_v54  ;;  %v6350_v56 = vpop.f32.mrb[32].mxu1  ;;  %v1907_v50 = vadd.f32 %v4603_v49, %v4148_v57  ;;  %5327 = vrot.lane.b32.xlu1 %v5228_v12, %s7221_s29  ;;  %v2814_v7 = vadd.f32 %v4147_v45, %v2359_v61  ;;  %v8114_v31 = vld [vmem:[#allocation2 + $0x138] sm:$0xff]  ;;  %v5197_v30 = vadd.f32 %v8044_v58, %v5087_v53 }
 0x15d   : > { %v2815_v34 = vadd.f32 %v4148_v57, %v2360_v37  ;;  %1068 = vst.msk [vmem:[#allocation3 + $0xe1] sm:$0xff] %vm319_vm3, %v6350_v56  ;;  %v4180_v54 = vadd.f32 %v4148_v57, %v3723_v59  ;;  %8841 = vst [vmem:[#allocation16_spill] sm:$0xff] %v8114_v31  ;;  %v827_v55 = vpop.f32.mrb[33].mxu1  ;;  %v5198_v29 = vadd.f32 %v8044_v58, %v5088_v9  ;;  %v5057_v57 = vld [vmem:[#allocation3 + $0x7a] sm:$0xff] }
 0x15e   : > { %6462 = vmatmul.mubr.msk.f32.gmra.mrb[70].mxu1 %vm906_vm4, %v8083_v1  ;;  %6667 = vmatmul.mubr.msk.f32.gmra.mrb[36].mxu0 %vm906_vm4, %v8086_v23  ;;  %v8107_v23 = vld [vmem:[#allocation2 + $0x12a] sm:$0xff]  ;;  %8842 = vst [vmem:[#allocation17_spill] sm:$0xff] %v8116_v40  ;;  %1067 = vst.msk [vmem:[#allocation3 + $0xd9] sm:$0xff] %vm319_vm3, %v827_v55  ;;  %v3269_v59 = vadd.f32 %v4602_v52, %v2814_v7  ;;  %v5229_v9 = vmax.f32 %v5197_v30, 0.0  ;;  %v8143_v7 = vld [vmem:[#allocation2 + $0x152] sm:$0xff] }
 0x15f   : > { %6464 = vmatprep.mubr.msk.f32.mxu1 %vm906_vm4, %v8088_v4  ;;  %6669 = vmatprep.mubr.msk.f32.mxu0 %vm906_vm4, %v8096_v18  ;;  %v3270_v37 = vadd.f32 %v4603_v49, %v2815_v34  ;;  %8840 = vst [vmem:[#allocation15_spill] sm:$0xff] %v8107_v23  ;;  %v4179_v18 = vadd.f32 %v4147_v45, %v3722_v60  ;;  %v6353_v45 = vpop.f32.mrb[34].mxu1  ;;  %v8125_v56 = vld [vmem:[#allocation3 + $0x98] sm:$0xff]  ;;  %v8127_v60 = vld [vmem:[#allocation2 + $0x140] sm:$0xff]  ;;  %v5230_v61 = vmax.f32 %v5198_v29, 0.0  ;;  %8846 = vst [vmem:[#allocation21_spill] sm:$0xff] %v8143_v7 }
 0x160   : > { %v4635_v34 = vadd.f32 %v4603_v49, %v4180_v54  ;;  %8843 = vst [vmem:[#allocation18_spill] sm:$0xff] %v8127_v60  ;;  %1070 = vst.msk [vmem:[#allocation3 + $0xf9] sm:$0xff] %vm319_vm3, %v6353_v45  ;;  %v8133_v55 = vld [vmem:[#allocation3 + $0x99] sm:$0xff]  ;;  %v3724_v49 = vadd.f32 %v5057_v57, %v3269_v59  ;;  %v2361_v54 = vadd.f32 %v5057_v57, %v1906_v38  ;;  %5329 = vrot.lane.b32.xlu0 %v5229_v9, %s7221_s29 }
 0x161   : > { %v3725_v44 = vadd.f32 %v5058_v48, %v3270_v37  ;;  %v4634_v12 = vadd.f32 %v4602_v52, %v4179_v18  ;;  %v2362_v37 = vadd.f32 %v5058_v48, %v1907_v50  ;;  %v8135_v18 = vld [vmem:[#allocation3 + $0x90] sm:$0xff]  ;;  %v8141_v52 = vld [vmem:[#allocation2 + $0x150] sm:$0xff]  ;;  %v837_v50 = vpop.f32.mrb[35].mxu1  ;;  %5331 = vrot.lane.b32.xlu1 %v5230_v61, %s7221_s29  ;;  %v8174_v9 = vld [vmem:[#allocation2 + $0x168] sm:$0xff] }
 0x162   : > { %6465 = vmatmul.mubr.msk.f32.gmra.mrb[72].mxu1 %vm906_vm4, %v8105_v3  ;;  %6670 = vmatmul.mubr.msk.f32.gmra.mrb[38].mxu0 %vm906_vm4, %v8107_v23  ;;  %v8131_v23 = vld [vmem:[#allocation2 + $0x142] sm:$0xff]  ;;  %8845 = vst [vmem:[#allocation20_spill] sm:$0xff] %v8141_v52  ;;  %1069 = vst.msk [vmem:[#allocation3 + $0xf1] sm:$0xff] %vm319_vm3, %v837_v50  ;;  %v4181_v45 = vadd.f32 %v8135_v18, %v3724_v49  ;;  %v8176_v50 = vld [vmem:[#allocation2 + $0x16a] sm:$0xff] }
 0x163   : > { %6467 = vmatprep.mubr.msk.f32.mxu1 %vm906_vm4, %v8114_v31  ;;  %6672 = vmatprep.mubr.msk.f32.mxu0 %vm906_vm4, %v8116_v40  ;;  %v4182_v53 = vadd.f32 %v8125_v56, %v3725_v44  ;;  %8844 = vst [vmem:[#allocation19_spill] sm:$0xff] %v8131_v23  ;;  %v5090_v40 = vadd.f32 %v5058_v48, %v4635_v34  ;;  %v8154_v44 = vld [vmem:[#allocation3 + $0x9a] sm:$0xff]  ;;  %8849 = vst [vmem:[#allocation24_spill] sm:$0xff] %v8174_v9 }
 0x164   : > { %v5089_v31 = vadd.f32 %v5057_v57, %v4634_v12  ;;  %v2817_v29 = vadd.f32 %v8125_v56, %v2362_v37  ;;  %v6356_v57 = vpop.f32.mrb[36].mxu1  ;;  %v8161_v12 = vld [vmem:[#allocation3 + $0x91] sm:$0xff]  ;;  %8850 = vst [vmem:[#allocation25_spill] sm:$0xff] %v8176_v50 }
 0x165   : > { %v4637_v48 = vadd.f32 %v8133_v55, %v4182_v53  ;;  %v5200_v38 = vadd.f32 %v8044_v58, %v5090_v40  ;;  %1072 = vst.msk [vmem:[#allocation3 + $0x111] sm:$0xff] %vm319_vm3, %v6356_v57  ;;  %v2816_v40 = vadd.f32 %v8135_v18, %v2361_v54  ;;  %v8167_v53 = vld [vmem:[#allocation2 + $0x15a] sm:$0xff]  ;;  %v4636_v61 = vadd.f32 %v8161_v12, %v4181_v45 }
 0x166   : > { %6468 = vmatmul.mubr.msk.f32.gmra.mrb[74].mxu1 %vm906_vm4, %v8127_v60  ;;  %6673 = vmatmul.mubr.msk.f32.gmra.mrb[40].mxu0 %vm906_vm4, %v8131_v23  ;;  %v5199_v30 = vadd.f32 %v8044_v58, %v5089_v31  ;;  %v3272_v59 = vadd.f32 %v8133_v55, %v2817_v29  ;;  %v8165_v31 = vld [vmem:[#allocation2 + $0x158] sm:$0xff]  ;;  %8848 = vst [vmem:[#allocation23_spill] sm:$0xff] %v8167_v53  ;;  %v5059_v29 = vld [vmem:[#allocation3 + $0x92] sm:$0xff]  ;;  %v3324_v60 = vld [vmem:[#allocation2 + $0x18a] sm:$0xff] }
 0x167   : > { %6470 = vmatprep.mubr.msk.f32.mxu1 %vm906_vm4, %v8141_v52  ;;  %6675 = vmatprep.mubr.msk.f32.mxu0 %vm906_vm4, %v8143_v7  ;;  %v5092_v34 = vadd.f32 %v8154_v44, %v4637_v48  ;;  %8847 = vst [vmem:[#allocation22_spill] sm:$0xff] %v8165_v31  ;;  %v5232_v37 = vmax.f32 %v5200_v38, 0.0  ;;  %v847_v48 = vpop.f32.mrb[37].mxu1  ;;  %v3271_v38 = vadd.f32 %v8161_v12, %v2816_v40  ;;  %v8188_v7 = vld [vmem:[#allocation2 + $0x170] sm:$0xff] }
 0x168   : > { %v5231_v49 = vmax.f32 %v5199_v30, 0.0  ;;  %v3727_v57 = vadd.f32 %v8154_v44, %v3272_v59  ;;  %1071 = vst.msk [vmem:[#allocation3 + $0x109] sm:$0xff] %vm319_vm3, %v847_v48  ;;  %v5091_v30 = vadd.f32 %v5059_v29, %v4636_v61  ;;  %v6359_v45 = vpop.f32.mrb[38].mxu1  ;;  %8851 = vst [vmem:[#allocation26_spill] sm:$0xff] %v8188_v7  ;;  %v4607_v48 = vld [vmem:[#allocation3 + $0xb1] sm:$0xff] }
 0x169   : > { %v5202_v54 = vadd.f32 %v8044_v58, %v5092_v34  ;;  %v1928_v34 = vld [vmem:[#allocation2 + $0x2] sm:$0xff]  ;;  %5335 = vrot.lane.b32.xlu1 %v5232_v37, %s7221_s29  ;;  %1074 = vst.msk [vmem:[#allocation3 + $0x129] sm:$0xff] %vm319_vm3, %v6359_v45  ;;  %v4606_v45 = vld [vmem:[#allocation3 + $0xa9] sm:$0xff] }
 0x16a   : > { %6471 = vmatmul.mubr.msk.f32.gmra.mrb[76].mxu1 %vm906_vm4, %v8165_v31  ;;  %6676 = vmatmul.mubr.msk.f32.gmra.mrb[42].mxu0 %vm906_vm4, %v8167_v53  ;;  %v8186_v53 = vld [vmem:[#allocation3 + $0xb0] sm:$0xff]  ;;  %v5201_v61 = vadd.f32 %v8044_v58, %v5091_v30  ;;  %v4151_v31 = vld [vmem:[#allocation3 + $0xa8] sm:$0xff] }
 0x16b   : > { %6473 = vmatprep.mubr.msk.f32.mxu1 %vm906_vm4, %v8174_v9  ;;  %6678 = vmatprep.mubr.msk.f32.mxu0 %vm906_vm4, %v8176_v50  ;;  %v5234_v59 = vmax.f32 %v5202_v54, 0.0  ;;  %v4184_v40 = vadd.f32 %v8186_v53, %v3727_v57  ;;  %v3726_v9 = vadd.f32 %v5059_v29, %v3271_v38  ;;  %v8194_v50 = vld [vmem:[#allocation2 + $0x172] sm:$0xff]  ;;  %v3323_v37 = vld [vmem:[#allocation2 + $0x182] sm:$0xff]  ;;  %v1929_v57 = vld [vmem:[#allocation2 + $0xa] sm:$0xff] }
 0x16c   : > { %5333 = vrot.lane.b32.xlu0 %v5231_v49, %s7221_s29  ;;  %8852 = vst [vmem:[#allocation27_spill] sm:$0xff] %v8194_v50  ;;  %v857_v49 = vpop.f32.mrb[39].mxu1  ;;  %v5233_v38 = vmax.f32 %v5201_v61, 0.0  ;;  %v5062_v30 = vld [vmem:[#allocation3 + $0xb2] sm:$0xff] }
 0x16d   : > { %v4639_v54 = vadd.f32 %v4607_v48, %v4184_v40  ;;  %v4183_v23 = vadd.f32 %v4151_v31, %v3726_v9  ;;  %1073 = vst.msk [vmem:[#allocation3 + $0x121] sm:$0xff] %vm319_vm3, %v857_v49  ;;  %v6362_v52 = vpop.f32.mrb[40].mxu1  ;;  %5339 = vrot.lane.b32.xlu1 %v5234_v59, %s7221_s29  ;;  %v5859_v9 = vld [vmem:[%s8796_s5 + $0x80] sm:$0xff] }
 0x16e   : > { %6474 = vmatmul.mubr.msk.f32.gmra.mrb[78].mxu1 %vm906_vm4, %v8188_v7  ;;  %6679 = vmatmul.mubr.msk.f32.gmra.mrb[44].mxu0 %vm906_vm4, %v8194_v50  ;;  %1076 = vst.msk [vmem:[#allocation3 + $0x141] sm:$0xff] %vm319_vm3, %v6362_v52  ;;  %v5061_v40 = vld [vmem:[#allocation3 + $0xaa] sm:$0xff]  ;;  %v867_v61 = vpop.f32.mrb[41].mxu1  ;;  %v1909_v52 = vadd.f32 %v8133_v55, %v8125_v56 }
 0x16f   : > { %6681 = vmatprep.mubr.msk.f32.mxu0 %vm906_vm4, %v3323_v37  ;;  %6480 = vmatprep.mubr.msk.f32.mxu1 %vm906_vm4, %v1928_v34  ;;  %v5094_v7 = vadd.f32 %v5062_v30, %v4639_v54  ;;  %v4638_v50 = vadd.f32 %v4606_v45, %v4183_v23  ;;  %v5860_v34 = vld [vmem:[%s8796_s5 + $0x88] sm:$0xf]  ;;  %1075 = vst.msk [vmem:[#allocation3 + $0x139] sm:$0xff] %vm319_vm3, %v867_v61  ;;  %v6365_v49 = vpop.f32.mrb[42].mxu1  ;;  %v4608_v54 = vld [vmem:[#allocation3 + $0xc1] sm:$0xff] }
 0x170   : > { %5337 = vrot.lane.b32.xlu0 %v5233_v38, %s7221_s29  ;;  %v1908_v37 = vadd.f32 %v8161_v12, %v8135_v18  ;;  %1078 = vst.msk [vmem:[#allocation3 + $0x159] sm:$0xff] %vm319_vm3, %v6365_v49  ;;  %v877_v55 = vpop.f32.mrb[43].mxu1  ;;  %v4609_v12 = vld [vmem:[#allocation3 + $0xc9] sm:$0xff]  ;;  %v4611_v49 = vld [vmem:[#allocation3 + $0xe1] sm:$0xff] }
 0x171   : > { %v5204_v59 = vadd.f32 %v8044_v58, %v5094_v7  ;;  %v5093_v23 = vadd.f32 %v5061_v40, %v4638_v50  ;;  %v2364_v7 = vadd.f32 %v8154_v44, %v1909_v52  ;;  %1077 = vst.msk [vmem:[#allocation3 + $0x151] sm:$0xff] %vm319_vm3, %v877_v55  ;;  %v1911_v44 = vadd.f32 %v4607_v48, %v8186_v53  ;;  %v5064_v38 = vld [vmem:[#allocation3 + $0xca] sm:$0xff] }
 0x172   : > { %6481 = vmatmul.mubr.msk.f32.vlgmr.msra.gmra.mrb[48].mxu1 %vm906_vm4, %v1929_v57  ;;  %6682 = vmatmul.mubr.msk.f32.gmra.mrb[46].mxu0 %vm906_vm4, %v3324_v60  ;;  %v8228_v60 = vpack.c.bf16 %v5860_v34, %v5859_v9  ;;  %v2363_v50 = vadd.f32 %v5059_v29, %v1908_v37  ;;  %v5063_v9 = vld [vmem:[#allocation3 + $0xc2] sm:$0xff] }
 0x173   : > { %6483 = vmatprep.mubr.msk.f32.mxu1 %vm906_vm4, %v7848_v10  ;;  %6688 = vmatprep.mubr.msk.f32.mxu0 %vm906_vm4, %v7866_v14  ;;  %v5203_v10 = vadd.f32 %v8044_v58, %v5093_v23  ;;  %v5236_v14 = vmax.f32 %v5204_v59, 0.0  ;;  %v2366_v57 = vadd.f32 %v5062_v30, %v1911_v44  ;;  %v4156_v37 = vld [vmem:[#allocation3 + $0xe0] sm:$0xff] }
 0x174   : > { %6863 = vmatpush3.bf16.msk.msra.mxu1 %vm7290_vm2, %v7844_v8  ;;  %v2819_v8 = vadd.f32 %v8186_v53, %v2364_v7  ;;  %v2818_v18 = vadd.f32 %v4151_v31, %v2363_v50  ;;  %v4153_v53 = vld [vmem:[#allocation3 + $0xc0] sm:$0xff] }
 0x175   : > { %v5235_v56 = vmax.f32 %v5203_v10, 0.0  ;;  %5343 = vrot.lane.b32.xlu1 %v5236_v14, %s7221_s29  ;;  %v1912_v23 = vadd.f32 %v4608_v54, %v4153_v53  ;;  %v4155_v10 = vld [vmem:[#allocation3 + $0xd8] sm:$0xff] }
 0x176   : > { %6484 = vmatmul.mubr.msk.f32.gmra.mrb[50].mxu1 %vm906_vm4, %v7858_v13  ;;  %6689 = vmatmul.mubr.msk.f32.vlgmr.msra.gmra.mrb[16].mxu0 %vm906_vm4, %v7880_v15  ;;  %v6368_v13 = vpop.f32.mrb[44].mxu1  ;;  %v4154_v15 = vld [vmem:[#allocation3 + $0xc8] sm:$0xff]  ;;  %v3273_v29 = vadd.f32 %v4606_v45, %v2818_v18  ;;  %v1915_v18 = vadd.f32 %v4611_v49, %v4156_v37 }
 0x177   : > { %6887 = vmatpush3.bf16.msk.msra.mxu0 %vm7290_vm2, %v7856_v11  ;;  %6486 = vmatprep.mubr.msk.f32.mxu1 %vm906_vm4, %v7873_v2  ;;  %v1910_v11 = vadd.f32 %v4606_v45, %v4151_v31  ;;  %1080 = vst.msk [vmem:[#allocation3 + $0x171] sm:$0xff] %vm319_vm3, %v6368_v13  ;;  %v3274_v2 = vadd.f32 %v4607_v48, %v2819_v8  ;;  %v887_v31 = vpop.f32.mrb[45].mxu1 }
 0x178   : > { %6691 = vmatprep.mubr.msk.f32.mxu0 %vm906_vm4, %v7888_v28  ;;  %6890 = vmatprep.subr.msk.bf16.mxu0 %vm7290_vm2, %v8228_v60  ;;  %v3728_v45 = vadd.f32 %v5061_v40, %v3273_v29  ;;  %v2821_v34 = vadd.f32 %v4154_v15, %v2366_v57  ;;  %1079 = vst.msk [vmem:[#allocation3 + $0x169] sm:$0xff] %vm319_vm3, %v887_v31  ;;  %v4158_v31 = vld [vmem:[#allocation3 + $0xf8] sm:$0xff] }
 0x179   : > { %5341 = vrot.lane.b32.xlu0 %v5235_v56, %s7221_s29  ;;  %v2365_v28 = vadd.f32 %v5061_v40, %v1910_v11  ;;  %v3729_v48 = vadd.f32 %v5062_v30, %v3274_v2  ;;  %v2367_v40 = vadd.f32 %v5063_v9, %v1912_v23  ;;  %v6371_v56 = vpop.f32.mrb[46].mxu1  ;;  %v5066_v11 = vld [vmem:[#allocation3 + $0xe2] sm:$0xff] }
 0x17a   : > { %6487 = vmatmul.mubr.msk.f32.gmra.mrb[52].mxu1 %vm906_vm4, %v7882_v16  ;;  %6692 = vmatmul.mubr.msk.f32.gmra.mrb[18].mxu0 %vm906_vm4, %v7932_v19  ;;  %v1913_v16 = vadd.f32 %v4609_v12, %v4154_v15  ;;  %v4185_v19 = vadd.f32 %v4153_v53, %v3728_v45  ;;  %v3276_v52 = vadd.f32 %v4609_v12, %v2821_v34 }
 0x17b   : > { %6489 = vmatprep.mubr.msk.f32.mxu1 %vm906_vm4, %v7890_v17  ;;  %6694 = vmatprep.mubr.msk.f32.mxu0 %vm906_vm4, %v7941_v21  ;;  %v2820_v59 = vadd.f32 %v4153_v53, %v2365_v28  ;;  %v4186_v61 = vadd.f32 %v4154_v15, %v3729_v48  ;;  %v4610_v21 = vld [vmem:[#allocation3 + $0xd9] sm:$0xff]  ;;  %1082 = vst.msk [vmem:[#allocation3 + $0x189] sm:$0xff] %vm319_vm3, %v6371_v56  ;;  %v4615_v56 = vld [vmem:[#allocation3 + $0x111] sm:$0xff] }
 0x17c   : > { %v2368_v30 = vadd.f32 %v5064_v38, %v1913_v16  ;;  %v4640_v7 = vadd.f32 %v4608_v54, %v4185_v19  ;;  %v3731_v50 = vadd.f32 %v5064_v38, %v3276_v52  ;;  %v1914_v2 = vadd.f32 %v4610_v21, %v4155_v10  ;;  %v4613_v16 = vld [vmem:[#allocation3 + $0xf9] sm:$0xff]  ;;  %v4612_v19 = vld [vmem:[#allocation3 + $0xf1] sm:$0xff] }
 0x17d   : > { %v3275_v17 = vadd.f32 %v4608_v54, %v2820_v59  ;;  %v4641_v14 = vadd.f32 %v4609_v12, %v4186_v61 }
 0x17e   : > { %6490 = vmatmul.mubr.msk.f32.gmra.mrb[54].mxu1 %vm906_vm4, %v7934_v20  ;;  %6695 = vmatmul.mubr.msk.f32.gmra.mrb[20].mxu0 %vm906_vm4, %v7951_v24  ;;  %v2823_v8 = vadd.f32 %v4156_v37, %v2368_v30  ;;  %v2822_v20 = vadd.f32 %v4155_v10, %v2367_v40  ;;  %v897_v24 = vpop.f32.mrb[47].mxu1  ;;  %v5095_v13 = vadd.f32 %v5063_v9, %v4640_v7 }
 0x17f   : > { %6492 = vmatprep.mubr.msk.f32.mxu1 %vm906_vm4, %v7943_v22  ;;  %6697 = vmatprep.mubr.msk.f32.mxu0 %vm906_vm4, %v7959_v26  ;;  %v3730_v55 = vadd.f32 %v5063_v9, %v3275_v17  ;;  %v5096_v44 = vadd.f32 %v5064_v38, %v4641_v14  ;;  %v4188_v15 = vadd.f32 %v4156_v37, %v3731_v50  ;;  %v5065_v26 = vld [vmem:[#allocation3 + $0xda] sm:$0xff]  ;;  %v4160_v50 = vld [vmem:[#allocation3 + $0x110] sm:$0xff] }
 0x180   : > { %1081 = vst.msk [vmem:[#allocation3 + $0x181] sm:$0xff] %vm319_vm3, %v897_v24  ;;  %v3278_v12 = vadd.f32 %v4611_v49, %v2823_v8  ;;  %v3277_v29 = vadd.f32 %v4610_v21, %v2822_v20  ;;  %v5205_v54 = vadd.f32 %v8044_v58, %v5095_v13  ;;  %v2370_v38 = vadd.f32 %v5066_v11, %v1915_v18  ;;  %v4159_v18 = vld [vmem:[#allocation3 + $0x108] sm:$0xff] }
 0x181   : > { %v4187_v22 = vadd.f32 %v4155_v10, %v3730_v55  ;;  %v5206_v53 = vadd.f32 %v8044_v58, %v5096_v44  ;;  %v4643_v57 = vadd.f32 %v4611_v49, %v4188_v15  ;;  %v2369_v59 = vadd.f32 %v5065_v26, %v1914_v2  ;;  %v5068_v49 = vld [vmem:[#allocation3 + $0xfa] sm:$0xff]  ;;  %v4614_v24 = vld [vmem:[#allocation3 + $0x109] sm:$0xff] }
 0x182   : > { %6493 = vmatmul.mubr.msk.f32.gmra.mrb[56].mxu1 %vm906_vm4, %v7953_v25  ;;  %6698 = vmatmul.mubr.msk.f32.gmra.mrb[22].mxu0 %vm906_vm4, %v7968_v32  ;;  %v3733_v25 = vadd.f32 %v5066_v11, %v3278_v12  ;;  %v3732_v48 = vadd.f32 %v5065_v26, %v3277_v29  ;;  %v4157_v32 = vld [vmem:[#allocation3 + $0xf0] sm:$0xff]  ;;  %v5237_v9 = vmax.f32 %v5205_v54, 0.0  ;;  %v2825_v52 = vadd.f32 %v4158_v31, %v2370_v38  ;;  %v4162_v29 = vld [vmem:[#allocation3 + $0x128] sm:$0xff] }
 0x183   : > { %6495 = vmatprep.mubr.msk.f32.mxu1 %vm906_vm4, %v7961_v27  ;;  %6700 = vmatprep.mubr.msk.f32.mxu0 %vm906_vm4, %v7976_v35  ;;  %v4642_v28 = vadd.f32 %v4610_v21, %v4187_v22  ;;  %v5238_v45 = vmax.f32 %v5206_v53, 0.0  ;;  %v5098_v34 = vadd.f32 %v5066_v11, %v4643_v57  ;;  %v2824_v37 = vadd.f32 %v4157_v32, %v2369_v59  ;;  %v5067_v21 = vld [vmem:[#allocation3 + $0xf2] sm:$0xff]  ;;  %v5069_v2 = vld [vmem:[#allocation3 + $0x10a] sm:$0xff] }
 0x184   : > { %v4190_v35 = vadd.f32 %v4158_v31, %v3733_v25  ;;  %v4189_v23 = vadd.f32 %v4157_v32, %v3732_v48  ;;  %5345 = vrot.lane.b32.xlu0 %v5237_v9, %s7221_s29  ;;  %v1917_v40 = vadd.f32 %v4613_v16, %v4158_v31  ;;  %v1916_v55 = vadd.f32 %v4612_v19, %v4157_v32  ;;  %v5070_v11 = vld [vmem:[#allocation3 + $0x112] sm:$0xff]  ;;  %v4617_v53 = vld [vmem:[#allocation3 + $0x129] sm:$0xff]  ;;  %v4161_v48 = vld [vmem:[#allocation3 + $0x120] sm:$0xff] }
 0x185   : > { %v5097_v27 = vadd.f32 %v5065_v26, %v4642_v28  ;;  %v5208_v61 = vadd.f32 %v8044_v58, %v5098_v34  ;;  %5347 = vrot.lane.b32.xlu1 %v5238_v45, %s7221_s29  ;;  %v3279_v30 = vadd.f32 %v4612_v19, %v2824_v37  ;;  %v1918_v57 = vadd.f32 %v4614_v24, %v4159_v18  ;;  %v5072_v34 = vld [vmem:[#allocation3 + $0x12a] sm:$0xff] }
 0x186   : > { %6496 = vmatmul.mubr.msk.f32.gmra.mrb[58].mxu1 %vm906_vm4, %v7970_v33  ;;  %6701 = vmatmul.mubr.msk.f32.gmra.mrb[24].mxu0 %vm906_vm4, %v7987_v46  ;;  %v4645_v46 = vadd.f32 %v4613_v16, %v4190_v35  ;;  %v4644_v10 = vadd.f32 %v4612_v19, %v4189_v23  ;;  %v2371_v13 = vadd.f32 %v5067_v21, %v1916_v55  ;;  %v8854_v23 = vld [vmem:[#allocation4_spill] sm:$0xff] }
 0x187   : > { %6498 = vmatprep.mubr.msk.f32.mxu1 %vm906_vm4, %v7978_v36  ;;  %6703 = vmatprep.mubr.msk.f32.mxu0 %vm906_vm4, %v7989_v47  ;;  %v5207_v33 = vadd.f32 %v8044_v58, %v5097_v27  ;;  %v5240_v17 = vmax.f32 %v5208_v61, 0.0  ;;  %v3280_v36 = vadd.f32 %v4613_v16, %v2825_v52  ;;  %v3734_v20 = vadd.f32 %v5067_v21, %v3279_v30  ;;  %v4616_v27 = vld [vmem:[#allocation3 + $0x121] sm:$0xff] }
 0x188   : > { %v5100_v14 = vadd.f32 %v5068_v49, %v4645_v46  ;;  %v5099_v7 = vadd.f32 %v5067_v21, %v4644_v10  ;;  %v2826_v54 = vadd.f32 %v4159_v18, %v2371_v13  ;;  %v2373_v32 = vadd.f32 %v5069_v2, %v1918_v57  ;;  %v8855_v61 = vld [vmem:[#allocation7_spill] sm:$0xff]  ;;  %v4166_v57 = vld [vmem:[#allocation3 + $0x158] sm:$0xff] }
 0x189   : > { %v5239_v47 = vmax.f32 %v5207_v33, 0.0  ;;  %v3735_v8 = vadd.f32 %v5068_v49, %v3280_v36  ;;  %5351 = vrot.lane.b32.xlu1 %v5240_v17, %s7221_s29  ;;  %v1921_v59 = vadd.f32 %v4617_v53, %v4162_v29 }
 0x18a   : > { %6499 = vmatmul.mubr.msk.f32.gmra.mrb[60].mxu1 %vm906_vm4, %v7984_v39  ;;  %6704 = vmatmul.mubr.msk.f32.gmra.mrb[26].mxu0 %vm906_vm4, %v8003_v62  ;;  %v2372_v39 = vadd.f32 %v5068_v49, %v1917_v40  ;;  %v5210_v62 = vadd.f32 %v8044_v58, %v5100_v14  ;;  %v5209_v44 = vadd.f32 %v8044_v58, %v5099_v7  ;;  %v4164_v49 = vld [vmem:[#allocation3 + $0x140] sm:$0xff]  ;;  %v8857_v14 = vld [vmem:[#allocation9_spill] sm:$0xff] }
 0x18b   : > { %6501 = vmatprep.mubr.msk.f32.mxu1 %vm906_vm4, %v7996_v51  ;;  %6706 = vmatprep.mubr.msk.f32.mxu0 %vm906_vm4, %v8007_v0  ;;  %v4192_v15 = vadd.f32 %v4160_v50, %v3735_v8  ;;  %v4191_v51 = vadd.f32 %v4159_v18, %v3734_v20  ;;  %v1919_v0 = vadd.f32 %v4615_v56, %v4160_v50  ;;  %v4163_v8 = vld [vmem:[#allocation3 + $0x138] sm:$0xff]  ;;  %v8858_v20 = vld [vmem:[#allocation8_spill] sm:$0xff]  ;;  %v8859_v18 = vld [vmem:[#allocation11_spill] sm:$0xff] }
 0x18c   : > { %5349 = vrot.lane.b32.xlu0 %v5239_v47, %s7221_s29  ;;  %v2827_v22 = vadd.f32 %v4160_v50, %v2372_v39  ;;  %v5242_v26 = vmax.f32 %v5210_v62, 0.0  ;;  %v5241_v12 = vmax.f32 %v5209_v44, 0.0  ;;  %v2828_v16 = vadd.f32 %v4161_v48, %v2373_v32  ;;  %v8856_v47 = vld [vmem:[#allocation6_spill] sm:$0xff] }
 0x18d   : > { %v4647_v28 = vadd.f32 %v4615_v56, %v4192_v15  ;;  %v4646_v25 = vadd.f32 %v4614_v24, %v4191_v51  ;;  %v2376_v17 = vadd.f32 %v5072_v34, %v1921_v59  ;;  %v1920_v40 = vadd.f32 %v4616_v27, %v4161_v48  ;;  %v5074_v15 = vld [vmem:[#allocation3 + $0x142] sm:$0xff]  ;;  %v5076_v59 = vld [vmem:[#allocation3 + $0x15a] sm:$0xff] }
 0x18e   : > { %6502 = vmatmul.mubr.msk.f32.gmra.mrb[62].mxu1 %vm906_vm4, %v8005_v63  ;;  %6707 = vmatmul.mubr.msk.f32.gmra.mrb[28].mxu0 %vm906_vm4, %v8021_v41  ;;  %v3282_v31 = vadd.f32 %v4615_v56, %v2827_v22  ;;  %v3281_v63 = vadd.f32 %v4614_v24, %v2826_v54  ;;  %v2374_v41 = vadd.f32 %v5070_v11, %v1919_v0  ;;  %v4619_v56 = vld [vmem:[#allocation3 + $0x141] sm:$0xff] }
 0x18f   : > { %6504 = vmatprep.mubr.msk.f32.mxu1 %vm906_vm4, %v8013_v6  ;;  %6709 = vmatprep.mubr.msk.f32.mxu0 %vm906_vm4, %v8025_v43  ;;  %v5102_v38 = vadd.f32 %v5070_v11, %v4647_v28  ;;  %v5101_v45 = vadd.f32 %v5069_v2, %v4646_v25  ;;  %v8853_v6 = vld [vmem:[#allocation5_spill] sm:$0xff]  ;;  %v3283_v10 = vadd.f32 %v4616_v27, %v2828_v16  ;;  %v8861_v25 = vld [vmem:[#allocation12_spill] sm:$0xff] }
 0x190   : > { %5355 = vrot.lane.b32.xlu1 %v5242_v26, %s7221_s29  ;;  %5353 = vrot.lane.b32.xlu0 %v5241_v12, %s7221_s29  ;;  %v3737_v9 = vadd.f32 %v5070_v11, %v3282_v31  ;;  %v3736_v43 = vadd.f32 %v5069_v2, %v3281_v63  ;;  %v2829_v35 = vadd.f32 %v4162_v29, %v2374_v41  ;;  %v4618_v2 = vld [vmem:[#allocation3 + $0x139] sm:$0xff] }
 0x191   : > { %v5212_v19 = vadd.f32 %v8044_v58, %v5102_v38  ;;  %v5211_v52 = vadd.f32 %v8044_v58, %v5101_v45  ;;  %v2831_v39 = vadd.f32 %v4164_v49, %v2376_v17  ;;  %v1923_v26 = vadd.f32 %v4619_v56, %v4164_v49  ;;  %v8860_v12 = vld [vmem:[#allocation10_spill] sm:$0xff]  ;;  %v8862_v16 = vld [vmem:[#allocation13_spill] sm:$0xff] }
 0x192   : > { %6505 = vmatmul.mubr.msk.f32.gmra.mrb[64].mxu1 %vm906_vm4, %v8023_v42  ;;  %6710 = vmatmul.mubr.msk.f32.gmra.mrb[30].mxu0 %vm906_vm4, %v8853_v6  ;;  %v4194_v37 = vadd.f32 %v4162_v29, %v3737_v9  ;;  %v4193_v33 = vadd.f32 %v4161_v48, %v3736_v43  ;;  %v5071_v42 = vld [vmem:[#allocation3 + $0x122] sm:$0xff]  ;;  %v3284_v46 = vadd.f32 %v4617_v53, %v2829_v35  ;;  %v4621_v28 = vld [vmem:[#allocation3 + $0x159] sm:$0xff]  ;;  %v4165_v43 = vld [vmem:[#allocation3 + $0x150] sm:$0xff] }
 0x193   : > { %6507 = vmatprep.mubr.msk.f32.mxu1 %vm906_vm4, %v8854_v23  ;;  %6712 = vmatprep.mubr.msk.f32.mxu0 %vm906_vm4, %v8855_v61  ;;  %v5244_v21 = vmax.f32 %v5212_v19, 0.0  ;;  %v5243_v36 = vmax.f32 %v5211_v52, 0.0  ;;  %v3738_v55 = vadd.f32 %v5071_v42, %v3283_v10  ;;  %v2375_v62 = vadd.f32 %v5071_v42, %v1920_v40  ;;  %v5073_v48 = vld [vmem:[#allocation3 + $0x13a] sm:$0xff]  ;;  %v4620_v61 = vld [vmem:[#allocation3 + $0x151] sm:$0xff] }
 0x194   : > { %v4649_v30 = vadd.f32 %v4617_v53, %v4194_v37  ;;  %v4648_v7 = vadd.f32 %v4616_v27, %v4193_v33  ;;  %v3739_v50 = vadd.f32 %v5072_v34, %v3284_v46  ;;  %v3286_v22 = vadd.f32 %v4619_v56, %v2831_v39  ;;  %v8863_v52 = vld [vmem:[#allocation14_spill] sm:$0xff]  ;;  %v8864_v37 = vld [vmem:[#allocation16_spill] sm:$0xff] }
 0x195   : > { %5359 = vrot.lane.b32.xlu1 %v5244_v21, %s7221_s29  ;;  %5357 = vrot.lane.b32.xlu0 %v5243_v36, %s7221_s29  ;;  %v4195_v11 = vadd.f32 %v4163_v8, %v3738_v55  ;;  %v2830_v0 = vadd.f32 %v4163_v8, %v2375_v62  ;;  %v2378_v32 = vadd.f32 %v5074_v15, %v1923_v26  ;;  %v4623_v10 = vld [vmem:[#allocation3 + $0x171] sm:$0xff] }
 0x196   : > { %6508 = vmatmul.mubr.msk.f32.gmra.mrb[66].mxu1 %vm906_vm4, %v8856_v47  ;;  %6713 = vmatmul.mubr.msk.f32.gmra.mrb[32].mxu0 %vm906_vm4, %v8857_v14  ;;  %v5104_v24 = vadd.f32 %v5072_v34, %v4649_v30  ;;  %v5103_v44 = vadd.f32 %v5071_v42, %v4648_v7  ;;  %v4196_v13 = vadd.f32 %v4164_v49, %v3739_v50  ;;  %v4168_v49 = vld [vmem:[#allocation3 + $0x170] sm:$0xff]  ;;  %v8865_v50 = vld [vmem:[#allocation15_spill] sm:$0xff] }
 0x197   : > { %6510 = vmatprep.mubr.msk.f32.mxu1 %vm906_vm4, %v8858_v20  ;;  %6715 = vmatprep.mubr.msk.f32.mxu0 %vm906_vm4, %v8859_v18  ;;  %v4650_v54 = vadd.f32 %v4618_v2, %v4195_v11  ;;  %v3741_v63 = vadd.f32 %v5074_v15, %v3286_v22  ;;  %v3285_v41 = vadd.f32 %v4618_v2, %v2830_v0  ;;  %v5075_v47 = vld [vmem:[#allocation3 + $0x152] sm:$0xff]  ;;  %v4170_v22 = vld [vmem:[#allocation3 + $0x188] sm:$0xff] }
 0x198   : > { %v5214_v51 = vadd.f32 %v8044_v58, %v5104_v24  ;;  %v5213_v29 = vadd.f32 %v8044_v58, %v5103_v44  ;;  %v4651_v53 = vadd.f32 %v4619_v56, %v4196_v13  ;;  %v1922_v9 = vadd.f32 %v4618_v2, %v4163_v8  ;;  %v8866_v56 = vld [vmem:[#allocation18_spill] sm:$0xff]  ;;  %v5078_v55 = vld [vmem:[#allocation3 + $0x172] sm:$0xff] }
 0x199   : > { %v4198_v34 = vadd.f32 %v4166_v57, %v3741_v63  ;;  %v3740_v6 = vadd.f32 %v5073_v48, %v3285_v41  ;;  %v2833_v27 = vadd.f32 %v4166_v57, %v2378_v32  ;;  %v1925_v35 = vadd.f32 %v4621_v28, %v4166_v57  ;;  %v8867_v24 = vld [vmem:[#allocation17_spill] sm:$0xff]  ;;  %v8868_v39 = vld [vmem:[#allocation20_spill] sm:$0xff]  ;;  %v8870_v57 = vld [vmem:[#allocation22_spill] sm:$0xff] }
 0x19a   : > { %6511 = vmatmul.mubr.msk.f32.gmra.mrb[68].mxu1 %vm906_vm4, %v8860_v12  ;;  %6716 = vmatmul.mubr.msk.f32.gmra.mrb[34].mxu0 %vm906_vm4, %v8083_v1  ;;  %v5246_v31 = vmax.f32 %v5214_v51, 0.0  ;;  %v5245_v38 = vmax.f32 %v5213_v29, 0.0  ;;  %v5106_v45 = vadd.f32 %v5074_v15, %v4651_v53  ;;  %v5105_v1 = vadd.f32 %v5073_v48, %v4650_v54  ;;  %v4167_v15 = vld [vmem:[#allocation3 + $0x168] sm:$0xff]  ;;  %v8871_v41 = vld [vmem:[#allocation21_spill] sm:$0xff]  ;;  %v8872_v32 = vld [vmem:[#allocation24_spill] sm:$0xff] }
 0x19b   : > { %6513 = vmatprep.mubr.msk.f32.mxu1 %vm906_vm4, %v8861_v25  ;;  %6718 = vmatprep.mubr.msk.f32.mxu0 %vm906_vm4, %v8088_v4  ;;  %v2377_v19 = vadd.f32 %v5073_v48, %v1922_v9  ;;  %v4653_v33 = vadd.f32 %v4621_v28, %v4198_v34  ;;  %v4197_v42 = vadd.f32 %v4165_v43, %v3740_v6  ;;  %v4622_v51 = vld [vmem:[#allocation3 + $0x169] sm:$0xff] }
 0x19c   : > { %5363 = vrot.lane.b32.xlu1 %v5246_v31, %s7221_s29  ;;  %v5216_v4 = vadd.f32 %v8044_v58, %v5106_v45  ;;  %v5215_v23 = vadd.f32 %v8044_v58, %v5105_v1  ;;  %v3288_v46 = vadd.f32 %v4621_v28, %v2833_v27  ;;  %5361 = vrot.lane.b32.xlu0 %v5245_v38, %s7221_s29  ;;  %v8869_v54 = vld [vmem:[#allocation19_spill] sm:$0xff]  ;;  %v8383_v27 = vld [vmem:[%s8795_s4] ss:$0 sm:$0xff] }
 0x19d   : > { %v2832_v21 = vadd.f32 %v4165_v43, %v2377_v19  ;;  %v2380_v36 = vadd.f32 %v5076_v59, %v1925_v35  ;;  %v5108_v30 = vadd.f32 %v5076_v59, %v4653_v33  ;;  %v4652_v40 = vadd.f32 %v4620_v61, %v4197_v42  ;;  %v5077_v25 = vld [vmem:[#allocation3 + $0x16a] sm:$0xff]  ;;  %v4624_v42 = vld [vmem:[#allocation3 + $0x181] sm:$0xff] }
 0x19e   : > { %6514 = vmatmul.mubr.msk.f32.gmra.mrb[70].mxu1 %vm906_vm4, %v8862_v16  ;;  %6719 = vmatmul.mubr.msk.f32.gmra.mrb[36].mxu0 %vm906_vm4, %v8105_v3  ;;  %v5248_v3 = vmax.f32 %v5216_v4, 0.0  ;;  %v5247_v17 = vmax.f32 %v5215_v23, 0.0  ;;  %v3743_v14 = vadd.f32 %v5076_v59, %v3288_v46  ;;  %v1924_v7 = vadd.f32 %v4620_v61, %v4165_v43  ;;  %v4625_v48 = vld [vmem:[#allocation3 + $0x189] sm:$0xff]  ;;  %v4169_v43 = vld [vmem:[#allocation3 + $0x180] sm:$0xff] }
 0x19f   : > { %6516 = vmatprep.mubr.msk.f32.mxu1 %vm906_vm4, %v8863_v52  ;;  %6721 = vmatprep.mubr.msk.f32.mxu0 %vm906_vm4, %v8864_v37  ;;  %v3287_v8 = vadd.f32 %v4620_v61, %v2832_v21  ;;  %v2835_v20 = vadd.f32 %v4168_v49, %v2380_v36  ;;  %v1927_v18 = vadd.f32 %v4623_v10, %v4168_v49  ;;  %v5080_v59 = vld [vmem:[#allocation3 + $0x18a] sm:$0xff]  ;;  %v8874_v61 = vld [vmem:[#allocation26_spill] sm:$0xff] }
 0x1a0   : > { %v5218_v62 = vadd.f32 %v8044_v58, %v5108_v30  ;;  %v5107_v44 = vadd.f32 %v5075_v47, %v4652_v40  ;;  %v4200_v13 = vadd.f32 %v4168_v49, %v3743_v14  ;;  %5367 = vrot.lane.b32.xlu1 %v5248_v3, %s7221_s29  ;;  %5365 = vrot.lane.b32.xlu0 %v5247_v17, %s7221_s29  ;;  %v8873_v23 = vld [vmem:[#allocation23_spill] sm:$0xff]  ;;  %v8390_v19 = vld [vmem:[#allocation2 + $0x180] sm:$0xff]  ;;  %v4172_v46 = vld [vmem:[#allocation3 + $0x1a0] sm:$0xff] }
 0x1a1   : > { %v3742_v11 = vadd.f32 %v5075_v47, %v3287_v8  ;;  %v3290_v2 = vadd.f32 %v4623_v10, %v2835_v20  ;;  %v2379_v0 = vadd.f32 %v5075_v47, %v1924_v7  ;;  %v2382_v53 = vadd.f32 %v5078_v55, %v1927_v18  ;;  %v8875_v49 = vld [vmem:[#allocation25_spill] sm:$0xff]  ;;  %v3779_v21 = vld [vmem:[#allocation2 + $0x198] sm:$0xff] }
 0x1a2   : > { %6517 = vmatmul.mubr.msk.f32.gmra.mrb[72].mxu1 %vm906_vm4, %v8865_v50  ;;  %6722 = vmatmul.mubr.msk.f32.gmra.mrb[38].mxu0 %vm906_vm4, %v8866_v56  ;;  %v5250_v26 = vmax.f32 %v5218_v62, 0.0  ;;  %v5217_v12 = vadd.f32 %v8044_v58, %v5107_v44  ;;  %v4655_v29 = vadd.f32 %v4623_v10, %v4200_v13  ;;  %v1926_v1 = vadd.f32 %v4622_v51, %v4167_v15  ;;  %v5079_v47 = vld [vmem:[#allocation3 + $0x182] sm:$0xff]  ;;  %v8397_v7 = vld [vmem:[#allocation2 + $0x188] sm:$0xff]  ;;  %v3780_v13 = vld [vmem:[#allocation2 + $0x1a0] sm:$0xff] }
 0x1a3   : > { %6519 = vmatprep.mubr.msk.f32.mxu1 %vm906_vm4, %v8867_v24  ;;  %6724 = vmatprep.mubr.msk.f32.mxu0 %vm906_vm4, %v8868_v39  ;;  %v4199_v28 = vadd.f32 %v4167_v15, %v3742_v11  ;;  %v3745_v31 = vadd.f32 %v5078_v55, %v3290_v2  ;;  %v2834_v63 = vadd.f32 %v4167_v15, %v2379_v0  ;;  %v4627_v14 = vld [vmem:[#allocation3 + $0x1a1] sm:$0xff]  ;;  %v4171_v62 = vld [vmem:[#allocation3 + $0x198] sm:$0xff] }
 0x1a4   : > { %v5249_v58 = vmax.f32 %v5217_v12, 0.0  ;;  %v5110_v38 = vadd.f32 %v5078_v55, %v4655_v29  ;;  %v2837_v45 = vadd.f32 %v4170_v22, %v2382_v53  ;;  %5371 = vrot.lane.b32.xlu1 %v5250_v26, %s7221_s29  ;;  %v2381_v4 = vadd.f32 %v5077_v25, %v1926_v1  ;;  %v8876_v55 = vld [vmem:[#allocation27_spill] sm:$0xff]  ;;  %v7165_v12 = vld [vmem:[#allocation2 + $0x20] sm:$0xff]  ;;  %v5081_v53 = vld [vmem:[#allocation3 + $0x19a] sm:$0xff] }
 0x1a5   : > { %v4654_v9 = vadd.f32 %v4622_v51, %v4199_v28  ;;  %v4202_v34 = vadd.f32 %v4170_v22, %v3745_v31  ;;  %v3289_v6 = vadd.f32 %v4622_v51, %v2834_v63  ;;  %v5082_v24 = vld [vmem:[#allocation3 + $0x1a2] sm:$0xff]  ;;  %v4626_v22 = vld [vmem:[#allocation3 + $0x199] sm:$0xff] }
 0x1a6   : > { %6520 = vmatmul.mubr.msk.f32.gmra.mrb[74].mxu1 %vm906_vm4, %v8869_v54  ;;  %6725 = vmatmul.mubr.msk.f32.gmra.mrb[40].mxu0 %vm906_vm4, %v8870_v57  ;;  %v5220_v35 = vadd.f32 %v8383_v27, %v5110_v38  ;;  %v3292_v16 = vadd.f32 %v4625_v48, %v2837_v45  ;;  %v2836_v17 = vadd.f32 %v4169_v43, %v2381_v4  ;;  %v7164_v44 = vld [vmem:[#allocation2 + $0x18] sm:$0xff]  ;;  %v7166_v54 = vld [vmem:[#allocation2 + $0x30] sm:$0xff]  ;;  %v7170_v45 = vld [vmem:[#allocation2 + $0x48] sm:$0xff] }
 0x1a7   : > { %6522 = vmatprep.mubr.msk.f32.mxu1 %vm906_vm4, %v8871_v41  ;;  %6727 = vmatprep.mubr.msk.f32.mxu0 %vm906_vm4, %v8872_v32  ;;  %v5109_v52 = vadd.f32 %v5077_v25, %v4654_v9  ;;  %v4657_v37 = vadd.f32 %v4625_v48, %v4202_v34  ;;  %v3744_v33 = vadd.f32 %v5077_v25, %v3289_v6  ;;  %v7167_v28 = vld [vmem:[#allocation2 + $0x31] sm:$0xff]  ;;  %v7169_v38 = vld [vmem:[#allocation2 + $0x39] sm:$0xff]  ;;  %v7171_v9 = vld [vmem:[#allocation2 + $0x49] sm:$0xff] }
 0x1a8   : > { %5369 = vrot.lane.b32.xlu0 %v5249_v58, %s7221_s29  ;;  %v5252_v10 = vmax.f32 %v5220_v35, 0.0  ;;  %v3747_v3 = vadd.f32 %v5080_v59, %v3292_v16  ;;  %v3291_v56 = vadd.f32 %v4624_v42, %v2836_v17  ;;  %v7168_v58 = vld [vmem:[#allocation2 + $0x38] sm:$0xff]  ;;  %v7180_v4 = vld [vmem:[#allocation2 + $0x80] sm:$0xff] }
 0x1a9   : > { %v5219_v36 = vadd.f32 %v8383_v27, %v5109_v52  ;;  %v5112_v30 = vadd.f32 %v5080_v59, %v4657_v37  ;;  %v4201_v40 = vadd.f32 %v4169_v43, %v3744_v33  ;;  %v7172_v59 = vld [vmem:[#allocation2 + $0x50] sm:$0xff]  ;;  %v7176_v43 = vld [vmem:[#allocation2 + $0x68] sm:$0xff]  ;;  %v7178_v35 = vld [vmem:[#allocation2 + $0x78] sm:$0xff] }
 0x1aa   : > { %6523 = vmatmul.mubr.msk.f32.gmra.mrb[76].mxu1 %vm906_vm4, %v8873_v23  ;;  %6728 = vmatmul.mubr.msk.f32.gmra.mrb[42].mxu0 %vm906_vm4, %v8874_v61  ;;  %v4204_v50 = vadd.f32 %v4172_v46, %v3747_v3  ;;  %v3746_v11 = vadd.f32 %v5079_v47, %v3291_v56  ;;  %v7173_v6 = vld [vmem:[#allocation2 + $0x51] sm:$0xff]  ;;  %v7179_v16 = vld [vmem:[#allocation2 + $0x79] sm:$0xff]  ;;  %v7181_v23 = vld [vmem:[#allocation2 + $0x81] sm:$0xff] }
 0x1ab   : > { %6525 = vmatprep.mubr.msk.f32.mxu1 %vm906_vm4, %v8875_v49  ;;  %6730 = vmatprep.mubr.msk.f32.mxu0 %vm906_vm4, %v8390_v19  ;;  %v5251_v8 = vmax.f32 %v5219_v36, 0.0  ;;  %v5222_v20 = vadd.f32 %v8383_v27, %v5112_v30  ;;  %v4656_v18 = vadd.f32 %v4624_v42, %v4201_v40  ;;  %v7182_v52 = vld [vmem:[#allocation2 + $0x90] sm:$0xff]  ;;  %v7184_v33 = vld [vmem:[#allocation2 + $0x98] sm:$0xff]  ;;  %v7186_v46 = vld [vmem:[#allocation2 + $0xa8] sm:$0xff] }
 0x1ac   : > { %5375 = vrot.lane.b32.xlu1 %v5252_v10, %s7221_s29  ;;  %v4659_v15 = vadd.f32 %v4627_v14, %v4204_v50  ;;  %v4203_v26 = vadd.f32 %v4171_v62, %v3746_v11  ;;  %v7183_v37 = vld [vmem:[#allocation2 + $0x91] sm:$0xff]  ;;  %v7185_v42 = vld [vmem:[#allocation2 + $0x99] sm:$0xff]  ;;  %v7187_v49 = vld [vmem:[#allocation2 + $0xa9] sm:$0xff] }
 0x1ad   : > { %5373 = vrot.lane.b32.xlu0 %v5251_v8, %s7221_s29  ;;  %v5254_v51 = vmax.f32 %v5222_v20, 0.0  ;;  %v5111_v2 = vadd.f32 %v5079_v47, %v4656_v18  ;;  %v7188_v10 = vld [vmem:[#allocation2 + $0xb0] sm:$0xff]  ;;  %v7190_v17 = vld [vmem:[#allocation2 + $0xc0] sm:$0xff]  ;;  %v7192_v36 = vld [vmem:[#allocation2 + $0xc8] sm:$0xff] }
 0x1ae   : > { %6526 = vmatmul.mubr.msk.f32.gmra.mrb[78].mxu1 %vm906_vm4, %v8876_v55  ;;  %6731 = vmatmul.mubr.msk.f32.gmra.mrb[44].mxu0 %vm906_vm4, %v8397_v7  ;;  %v5114_v0 = vadd.f32 %v5082_v24, %v4659_v15  ;;  %v4658_v31 = vadd.f32 %v4626_v22, %v4203_v26  ;;  %v7189_v3 = vld [vmem:[#allocation2 + $0xb1] sm:$0xff]  ;;  %v7193_v30 = vld [vmem:[#allocation2 + $0xc9] sm:$0xff]  ;;  %v7195_v47 = vld [vmem:[#allocation2 + $0xd9] sm:$0xff] }
 0x1af   : > { %6532 = vmatprep.mubr.msk.f32.mxu1 %vm906_vm4, %v7164_v44  ;;  %6733 = vmatprep.mubr.msk.f32.mxu0 %vm906_vm4, %v3779_v21  ;;  %v5221_v29 = vadd.f32 %v8383_v27, %v5111_v2  ;;  %v7191_v21 = vld [vmem:[#allocation2 + $0xc1] sm:$0xff]  ;;  %v7194_v40 = vld [vmem:[#allocation2 + $0xd8] sm:$0xff]  ;;  %v7198_v56 = vld [vmem:[#allocation2 + $0xf0] sm:$0xff] }
 0x1b0   : > { %v5224_v25 = vadd.f32 %v8383_v27, %v5114_v0  ;;  %5379 = vrot.lane.b32.xlu1 %v5254_v51, %s7221_s29  ;;  %v5113_v41 = vadd.f32 %v5081_v53, %v4658_v31  ;;  %v7196_v14 = vld [vmem:[#allocation2 + $0xe0] sm:$0xff]  ;;  %v7199_v55 = vld [vmem:[#allocation2 + $0xf1] sm:$0xff]  ;;  %v7202_v18 = vld [vmem:[#allocation2 + $0x108] sm:$0xff] }
 0x1b1   : > { %v5253_v48 = vmax.f32 %v5221_v29, 0.0  ;;  %v7197_v50 = vld [vmem:[#allocation2 + $0xe1] sm:$0xff]  ;;  %v7200_v8 = vld [vmem:[#allocation2 + $0xf8] sm:$0xff]  ;;  %v7203_v24 = vld [vmem:[#allocation2 + $0x109] sm:$0xff] }
 0x1b2   : > { %6533 = vmatmul.mubr.msk.f32.vlgmr.msra.gmra.mrb[48].mxu1 %vm906_vm4, %v7165_v12  ;;  %6734 = vmatmul.mubr.msk.f32.gmra.mrb[46].mxu0 %vm906_vm4, %v3780_v13  ;;  %v5256_v63 = vmax.f32 %v5224_v25, 0.0  ;;  %v5223_v1 = vadd.f32 %v8383_v27, %v5113_v41  ;;  %v7177_v27 = vld [vmem:[#allocation2 + $0x69] sm:$0xff]  ;;  %v7201_v20 = vld [vmem:[#allocation2 + $0xf9] sm:$0xff]  ;;  %v7205_v44 = vld [vmem:[#allocation2 + $0x111] sm:$0xff] }
 0x1b3   : > { %6535 = vmatprep.mubr.msk.f32.mxu1 %vm906_vm4, %v7166_v54  ;;  %6740 = vmatprep.mubr.msk.f32.mxu0 %vm906_vm4, %v7167_v28  ;;  %v7204_v62 = vld [vmem:[#allocation2 + $0x110] sm:$0xff]  ;;  %v7206_v13 = vld [vmem:[#allocation2 + $0x120] sm:$0xff]  ;;  %v7208_v51 = vld [vmem:[#allocation2 + $0x128] sm:$0xff] }
 0x1b4   : > { %5377 = vrot.lane.b32.xlu0 %v5253_v48, %s7221_s29  ;;  %5383 = vrot.lane.b32.xlu1 %v5256_v63, %s7221_s29  ;;  %v5255_v34 = vmax.f32 %v5223_v1, 0.0  ;;  %v7207_v15 = vld [vmem:[#allocation2 + $0x121] sm:$0xff]  ;;  %v4226_v11 = vld [vmem:[#allocation2 + $0x129] sm:$0xff]  ;;  %v4227_v2 = vld [vmem:[#allocation2 + $0x139] sm:$0xff] }
 0x1b5   : > { %v7209_v22 = vld [vmem:[#allocation2 + $0x138] sm:$0xff]  ;;  %v4228_v0 = vld [vmem:[#allocation2 + $0x141] sm:$0xff]  ;;  %v4231_v53 = vld [vmem:[#allocation2 + $0x169] sm:$0xff] }
 0x1b6   : > { %6536 = vmatmul.mubr.msk.f32.gmra.mrb[50].mxu1 %vm906_vm4, %v7168_v58  ;;  %6741 = vmatmul.mubr.msk.f32.vlgmr.msra.gmra.mrb[16].mxu0 %vm906_vm4, %v7169_v38  ;;  %v7210_v26 = vld [vmem:[#allocation2 + $0x140] sm:$0xff]  ;;  %v4229_v12 = vld [vmem:[#allocation2 + $0x151] sm:$0xff]  ;;  %v4234_v28 = vld [vmem:[#allocation2 + $0x189] sm:$0xff] }
 0x1b7   : > { %6893 = vmatpush3.bf16.msk.msra.mxu0 %vm7290_vm2, %v8228_v60  ;;  %6538 = vmatprep.mubr.msk.f32.mxu1 %vm906_vm4, %v7170_v45  ;;  %v7175_v60 = vld [vmem:[#allocation2 + $0x61] sm:$0xff]  ;;  %v4230_v29 = vld [vmem:[#allocation2 + $0x159] sm:$0xff]  ;;  %v4232_v54 = vld [vmem:[#allocation2 + $0x171] sm:$0xff] }
 0x1b8   : > { %6743 = vmatprep.mubr.msk.f32.mxu0 %vm906_vm4, %v7171_v9  ;;  %5381 = vrot.lane.b32.xlu0 %v5255_v34, %s7221_s29  ;;  %v4661_v25 = vld [vmem:[#allocation2 + $0x3a] sm:$0xff]  ;;  %v4663_v31 = vld [vmem:[#allocation2 + $0x52] sm:$0xff]  ;;  %v4665_v48 = vld [vmem:[#allocation2 + $0x6a] sm:$0xff] }
 0x1b9   : > { %v4666_v63 = vld [vmem:[#allocation2 + $0x7a] sm:$0xff]  ;;  %v4667_v41 = vld [vmem:[#allocation2 + $0x82] sm:$0xff]  ;;  %v4668_v58 = vld [vmem:[#allocation2 + $0x92] sm:$0xff] }
 0x1ba   : > { %6539 = vmatmul.mubr.msk.f32.gmra.mrb[52].mxu1 %vm906_vm4, %v7172_v59  ;;  %6744 = vmatmul.mubr.msk.f32.gmra.mrb[18].mxu0 %vm906_vm4, %v7173_v6  ;;  %v4669_v38 = vld [vmem:[#allocation2 + $0x9a] sm:$0xff]  ;;  %v4670_v45 = vld [vmem:[#allocation2 + $0xaa] sm:$0xff]  ;;  %v4671_v1 = vld [vmem:[#allocation2 + $0xb2] sm:$0xff] }
 0x1bb   : > { %6541 = vmatprep.mubr.msk.f32.mxu1 %vm906_vm4, %v7174_v5  ;;  %6746 = vmatprep.mubr.msk.f32.mxu0 %vm906_vm4, %v7175_v60  ;;  %v4672_v9 = vld [vmem:[#allocation2 + $0xc2] sm:$0xff]  ;;  %v4673_v34 = vld [vmem:[#allocation2 + $0xca] sm:$0xff]  ;;  %v4674_v59 = vld [vmem:[#allocation2 + $0xda] sm:$0xff] }
 0x1bc   : > { %v4675_v6 = vld [vmem:[#allocation2 + $0xe2] sm:$0xff]  ;;  %v4676_v5 = vld [vmem:[#allocation2 + $0xf2] sm:$0xff]  ;;  %v4677_v60 = vld [vmem:[#allocation2 + $0xfa] sm:$0xff] }
 0x1be   : > { %6542 = vmatmul.mubr.msk.f32.gmra.mrb[54].mxu1 %vm906_vm4, %v7176_v43  ;;  %6747 = vmatmul.mubr.msk.f32.gmra.mrb[20].mxu0 %vm906_vm4, %v7177_v27  ;;  %v4678_v43 = vld [vmem:[#allocation2 + $0x10a] sm:$0xff]  ;;  %v4679_v27 = vld [vmem:[#allocation2 + $0x112] sm:$0xff] }
 0x1bf   : > { %6544 = vmatprep.mubr.msk.f32.mxu1 %vm906_vm4, %v7178_v35  ;;  %6749 = vmatprep.mubr.msk.f32.mxu0 %vm906_vm4, %v7179_v16  ;;  %v4680_v35 = vld [vmem:[#allocation2 + $0x122] sm:$0xff]  ;;  %v4681_v16 = vld [vmem:[#allocation2 + $0x12a] sm:$0xff] }
 0x1c2   : > { %6545 = vmatmul.mubr.msk.f32.gmra.mrb[56].mxu1 %vm906_vm4, %v7180_v4  ;;  %6750 = vmatmul.mubr.msk.f32.gmra.mrb[22].mxu0 %vm906_vm4, %v7181_v23  ;;  %v4682_v4 = vld [vmem:[#allocation2 + $0x13a] sm:$0xff]  ;;  %v4683_v23 = vld [vmem:[#allocation2 + $0x142] sm:$0xff] }
 0x1c3   : > { %6547 = vmatprep.mubr.msk.f32.mxu1 %vm906_vm4, %v7182_v52  ;;  %6752 = vmatprep.mubr.msk.f32.mxu0 %vm906_vm4, %v7183_v37  ;;  %v4684_v52 = vld [vmem:[#allocation2 + $0x152] sm:$0xff]  ;;  %v4685_v37 = vld [vmem:[#allocation2 + $0x15a] sm:$0xff] }
 0x1c6   : > { %6548 = vmatmul.mubr.msk.f32.gmra.mrb[58].mxu1 %vm906_vm4, %v7184_v33  ;;  %6753 = vmatmul.mubr.msk.f32.gmra.mrb[24].mxu0 %vm906_vm4, %v7185_v42  ;;  %v4686_v33 = vld [vmem:[#allocation2 + $0x16a] sm:$0xff]  ;;  %v4687_v42 = vld [vmem:[#allocation2 + $0x172] sm:$0xff] }
 0x1c7   : > { %6550 = vmatprep.mubr.msk.f32.mxu1 %vm906_vm4, %v7186_v46  ;;  %6755 = vmatprep.mubr.msk.f32.mxu0 %vm906_vm4, %v7187_v49  ;;  %v4688_v46 = vld [vmem:[#allocation2 + $0x182] sm:$0xff]  ;;  %v4690_v49 = vld [vmem:[#allocation2 + $0x19a] sm:$0xff] }
 0x1ca   : > { %6551 = vmatmul.mubr.msk.f32.gmra.mrb[60].mxu1 %vm906_vm4, %v7188_v10  ;;  %6756 = vmatmul.mubr.msk.f32.gmra.mrb[26].mxu0 %vm906_vm4, %v7189_v3  ;;  %v4689_v10 = vld [vmem:[#allocation2 + $0x18a] sm:$0xff]  ;;  %v4691_v3 = vld [vmem:[#allocation2 + $0x1a2] sm:$0xff] }
 0x1cb   : > { %6553 = vmatprep.mubr.msk.f32.mxu1 %vm906_vm4, %v7190_v17  ;;  %6758 = vmatprep.mubr.msk.f32.mxu0 %vm906_vm4, %v7191_v21 }
 0x1ce   : > { %6554 = vmatmul.mubr.msk.f32.gmra.mrb[62].mxu1 %vm906_vm4, %v7192_v36  ;;  %6759 = vmatmul.mubr.msk.f32.gmra.mrb[28].mxu0 %vm906_vm4, %v7193_v30 }
 0x1cf   : > { %6556 = vmatprep.mubr.msk.f32.mxu1 %vm906_vm4, %v7194_v40  ;;  %6761 = vmatprep.mubr.msk.f32.mxu0 %vm906_vm4, %v7195_v47 }
 0x1d2   : > { %6557 = vmatmul.mubr.msk.f32.gmra.mrb[64].mxu1 %vm906_vm4, %v7196_v14  ;;  %6762 = vmatmul.mubr.msk.f32.gmra.mrb[30].mxu0 %vm906_vm4, %v7197_v50 }
 0x1d3   : > { %6559 = vmatprep.mubr.msk.f32.mxu1 %vm906_vm4, %v7198_v56  ;;  %6764 = vmatprep.mubr.msk.f32.mxu0 %vm906_vm4, %v7199_v55 }
 0x1d6   : > { %6560 = vmatmul.mubr.msk.f32.gmra.mrb[66].mxu1 %vm906_vm4, %v7200_v8  ;;  %6765 = vmatmul.mubr.msk.f32.gmra.mrb[32].mxu0 %vm906_vm4, %v7201_v20 }
 0x1d7   : > { %6562 = vmatprep.mubr.msk.f32.mxu1 %vm906_vm4, %v7202_v18  ;;  %6767 = vmatprep.mubr.msk.f32.mxu0 %vm906_vm4, %v7203_v24 }
 0x1da   : > { %6563 = vmatmul.mubr.msk.f32.gmra.mrb[68].mxu1 %vm906_vm4, %v7204_v62  ;;  %6768 = vmatmul.mubr.msk.f32.gmra.mrb[34].mxu0 %vm906_vm4, %v7205_v44 }
 0x1db   : > { %6565 = vmatprep.mubr.msk.f32.mxu1 %vm906_vm4, %v7206_v13  ;;  %6770 = vmatprep.mubr.msk.f32.mxu0 %vm906_vm4, %v7207_v15 }
 0x1de   : > { %6566 = vmatmul.mubr.msk.f32.gmra.mrb[70].mxu1 %vm906_vm4, %v7208_v51  ;;  %6771 = vmatmul.mubr.msk.f32.gmra.mrb[36].mxu0 %vm906_vm4, %v4226_v11 }
 0x1df   : > { %6568 = vmatprep.mubr.msk.f32.mxu1 %vm906_vm4, %v7209_v22  ;;  %6773 = vmatprep.mubr.msk.f32.mxu0 %vm906_vm4, %v4227_v2 }
 0x1e2   : > { %6569 = vmatmul.mubr.msk.f32.gmra.mrb[72].mxu1 %vm906_vm4, %v7210_v26  ;;  %6774 = vmatmul.mubr.msk.f32.gmra.mrb[38].mxu0 %vm906_vm4, %v4228_v0 }
 0x1e3   : > { %6571 = vmatprep.mubr.msk.f32.mxu1 %vm906_vm4, %v8868_v39  ;;  %6776 = vmatprep.mubr.msk.f32.mxu0 %vm906_vm4, %v4229_v12  ;;  %v4233_v39 = vld [vmem:[#allocation2 + $0x181] sm:$0xff]  ;;  %v5326_v12 = vpop.permute.xlu1 %5325 }
 0x1e6   : > { %6572 = vmatmul.mubr.msk.f32.gmra.mrb[74].mxu1 %vm906_vm4, %v8870_v57  ;;  %6777 = vmatmul.mubr.msk.f32.gmra.mrb[40].mxu0 %vm906_vm4, %v4230_v29  ;;  %v4235_v57 = vld [vmem:[#allocation2 + $0x199] sm:$0xff] }
 0x1e7   : > { %6574 = vmatprep.mubr.msk.f32.mxu1 %vm906_vm4, %v8872_v32  ;;  %6779 = vmatprep.mubr.msk.f32.mxu0 %vm906_vm4, %v4231_v53  ;;  %v4236_v32 = vld [vmem:[#allocation2 + $0x1a1] sm:$0xff] }
 0x1ea   : > { %6575 = vmatmul.mubr.msk.f32.gmra.mrb[76].mxu1 %vm906_vm4, %v8874_v61  ;;  %6780 = vmatmul.mubr.msk.f32.gmra.mrb[42].mxu0 %vm906_vm4, %v4232_v54  ;;  %v4660_v61 = vld [vmem:[#allocation2 + $0x32] sm:$0xff]  ;;  %v5322_v54 = vpop.permute.xlu0 %5321 }
 0x1eb   : > { %6577 = vmatprep.mubr.msk.f32.mxu1 %vm906_vm4, %v8390_v19  ;;  %6782 = vmatprep.mubr.msk.f32.mxu0 %vm906_vm4, %v4233_v39  ;;  %v4662_v19 = vld [vmem:[#allocation2 + $0x4a] sm:$0xff] }
 0x1ee   : > { %6578 = vmatmul.mubr.msk.f32.gmra.mrb[78].mxu1 %vm906_vm4, %v8397_v7  ;;  %6783 = vmatmul.mubr.msk.f32.gmra.mrb[44].mxu0 %vm906_vm4, %v4234_v28  ;;  %v4664_v7 = vld [vmem:[#allocation2 + $0x62] sm:$0xff] }
 0x1ef   : > { %6785 = vmatprep.mubr.msk.f32.mxu0 %vm906_vm4, %v4235_v57  ;;  %v5328_v57 = vpop.permute.xlu1 %5327 }
 0x1f2   : > { %6786 = vmatmul.mubr.msk.f32.gmra.mrb[46].mxu0 %vm906_vm4, %v4236_v32  ;;  %v5324_v32 = vpop.permute.xlu0 %5323 }
 0x1f3   : > { %6792 = vmatprep.mubr.msk.f32.mxu0 %vm906_vm4, %v4660_v61 }
 0x1f6   : > { %6793 = vmatmul.mubr.msk.f32.vlgmr.msra.gmra.mrb[16].mxu0 %vm906_vm4, %v4661_v25 }
 0x1f7   : > { %6795 = vmatprep.mubr.msk.f32.mxu0 %vm906_vm4, %v4662_v19  ;;  %v5332_v19 = vpop.permute.xlu1 %5331 }
 0x1fa   : > { %6796 = vmatmul.mubr.msk.f32.gmra.mrb[18].mxu0 %vm906_vm4, %v4663_v31  ;;  %v5330_v31 = vpop.permute.xlu0 %5329 }
 0x1fb   : > { %6798 = vmatprep.mubr.msk.f32.mxu0 %vm906_vm4, %v4664_v7 }
 0x1fe   : > { %6799 = vmatmul.mubr.msk.f32.gmra.mrb[20].mxu0 %vm906_vm4, %v4665_v48 }
 0x1ff   : > { %6801 = vmatprep.mubr.msk.f32.mxu0 %vm906_vm4, %v4666_v63  ;;  %v5336_v63 = vpop.permute.xlu1 %5335 }
 0x202   : > { %6802 = vmatmul.mubr.msk.f32.gmra.mrb[22].mxu0 %vm906_vm4, %v4667_v41  ;;  %v8574_v41 = vpop.permute.xlu0 %5333 }
 0x203   : > { %6804 = vmatprep.mubr.msk.f32.mxu0 %vm906_vm4, %v4668_v58 }
 0x206   : > { %6805 = vmatmul.mubr.msk.f32.gmra.mrb[24].mxu0 %vm906_vm4, %v4669_v38  ;;  %v8579_v38 = vld [vmem:[%s8797_s6] ss:$0 sm:$0xff] }
 0x207   : > { %6807 = vmatprep.mubr.msk.f32.mxu0 %vm906_vm4, %v4670_v45 }
 0x20a   : > { %6808 = vmatmul.mubr.msk.f32.gmra.mrb[26].mxu0 %vm906_vm4, %v4671_v1 }
 0x20b   : > { %6810 = vmatprep.mubr.msk.f32.mxu0 %vm906_vm4, %v4672_v9 }
 0x20e   : > { %6811 = vmatmul.mubr.msk.f32.gmra.mrb[28].mxu0 %vm906_vm4, %v4673_v34  ;;  %v8581_v34 = vpop.permute.xlu1 %5339 }
 0x20f   : > { %6813 = vmatprep.mubr.msk.f32.mxu0 %vm906_vm4, %v4674_v59 }
 0x212   : > { %6814 = vmatmul.mubr.msk.f32.gmra.mrb[30].mxu0 %vm906_vm4, %v4675_v6  ;;  %v8591_v6 = vpop.permute.xlu0 %5337 }
 0x213   : > { %6816 = vmatprep.mubr.msk.f32.mxu0 %vm906_vm4, %v4676_v5 }
 0x216   : > { %6817 = vmatmul.mubr.msk.f32.gmra.mrb[32].mxu0 %vm906_vm4, %v4677_v60 }
 0x217   : > { %6819 = vmatprep.mubr.msk.f32.mxu0 %vm906_vm4, %v4678_v43 }
 0x21a   : > { %6820 = vmatmul.mubr.msk.f32.gmra.mrb[34].mxu0 %vm906_vm4, %v4679_v27 }
 0x21b   : > { %6822 = vmatprep.mubr.msk.f32.mxu0 %vm906_vm4, %v4680_v35 }
 0x21e   : > { %6823 = vmatmul.mubr.msk.f32.gmra.mrb[36].mxu0 %vm906_vm4, %v4681_v16 }
 0x21f   : > { %6825 = vmatprep.mubr.msk.f32.mxu0 %vm906_vm4, %v4682_v4 }
 0x222   : > { %6826 = vmatmul.mubr.msk.f32.gmra.mrb[38].mxu0 %vm906_vm4, %v4683_v23 }
 0x223   : > { %6828 = vmatprep.mubr.msk.f32.mxu0 %vm906_vm4, %v4684_v52 }
 0x226   : > { %6829 = vmatmul.mubr.msk.f32.gmra.mrb[40].mxu0 %vm906_vm4, %v4685_v37 }
 0x227   : > { %6831 = vmatprep.mubr.msk.f32.mxu0 %vm906_vm4, %v4686_v33  ;;  %v8602_v33 = vpop.permute.xlu1 %5343 }
 0x22a   : > { %6832 = vmatmul.mubr.msk.f32.gmra.mrb[42].mxu0 %vm906_vm4, %v4687_v42 }
 0x22b   : > { %6834 = vmatprep.mubr.msk.f32.mxu0 %vm906_vm4, %v4688_v46 }
 0x22e   : > { %6835 = vmatmul.mubr.msk.f32.gmra.mrb[44].mxu0 %vm906_vm4, %v4689_v10  ;;  %v8606_v10 = vpop.permute.xlu0 %5341 }
 0x22f   : > { %6837 = vmatprep.mubr.msk.f32.mxu0 %vm906_vm4, %v4690_v49 }
 0x232   : > { %6838 = vmatmul.mubr.msk.f32.gmra.mrb[46].mxu0 %vm906_vm4, %v4691_v3 }
 0x285   : > { %v6534_v17 = vpop.f32.mrb[48].mxu1 }
 0x286   : > { %v2583_v21 = vpop.f32.mrb[49].mxu1 }
 0x289   : > { %v6537_v36 = vpop.f32.mrb[50].mxu1 }
 0x28a   : > { %v2593_v30 = vpop.f32.mrb[51].mxu1 }
 0x28d   : > { %v6540_v40 = vpop.f32.mrb[52].mxu1 }
 0x28e   : > { %v8520_v47 = vpop.f32.mrb[53].mxu1 }
 0x291   : > { %v8522_v14 = vpop.f32.mrb[54].mxu1 }
 0x292   : > { %v8524_v50 = vpop.f32.mrb[55].mxu1 }
 0x295   : > { %v8526_v56 = vpop.f32.mrb[56].mxu1 }
 0x296   : > { %v8528_v55 = vpop.f32.mrb[57].mxu1 }
 0x299   : > { %v8530_v8 = vpop.f32.mrb[58].mxu1 }
 0x29a   : > { %v8532_v20 = vpop.f32.mrb[59].mxu1 }
 0x29d   : > { %v8534_v18 = vpop.f32.mrb[60].mxu1 }
 0x29e   : > { %v8536_v24 = vpop.f32.mrb[61].mxu1 }
 0x2a1   : > { %v8538_v62 = vpop.f32.mrb[62].mxu1 }
 0x2a2   : > { %v8540_v44 = vpop.f32.mrb[63].mxu1 }
 0x2a5   : > { %v8542_v13 = vpop.f32.mrb[64].mxu1 }
 0x2a6   : > { %v8544_v15 = vpop.f32.mrb[65].mxu1 }
 0x2a9   : > { %v8546_v11 = vpop.f32.mrb[66].mxu1 }
 0x2aa   : > { %v8548_v51 = vpop.f32.mrb[67].mxu1 }
 0x2ad   : > { %v8550_v2 = vpop.f32.mrb[68].mxu1 }
 0x2ae   : > { %v8552_v22 = vpop.f32.mrb[69].mxu1 }
 0x2b1   : > { %v8554_v0 = vpop.f32.mrb[70].mxu1 }
 0x2b2   : > { %v8556_v26 = vpop.f32.mrb[71].mxu1 }
 0x2b5   : > { %v8558_v29 = vpop.f32.mrb[72].mxu1 }
 0x2b6   : > { %v8560_v53 = vpop.f32.mrb[73].mxu1 }
 0x2b9   : > { %v8562_v39 = vpop.f32.mrb[74].mxu1 }
 0x2ba   : > { %v8564_v28 = vpop.f32.mrb[75].mxu1 }
 0x2bd   : > { %v8566_v61 = vpop.f32.mrb[76].mxu1 }
 0x2be   : > { %v8568_v25 = vpop.f32.mrb[77].mxu1 }
 0x2c1   : > { %v8570_v7 = vpop.f32.mrb[78].mxu1 }
 0x2c2   : > { %v8572_v48 = vpop.f32.mrb[79].mxu1 }
 0x2c9   : > { %v6794_v58 = vpop.f32.mrb[16].mxu0 }
 0x2ca   : > { %v6896_v45 = vadd.f32 %v6794_v58, %v6534_v17  ;;  %v4860_v1 = vpop.f32.mrb[17].mxu0 }
 0x2cb   : > { %v6897_v9 = vadd.f32 %v4860_v1, %v2583_v21  ;;  %v5346_v1 = vpop.permute.xlu0 %5345 }
 0x2cc   : > { %v5123_v59 = vadd.f32 %v6896_v45, %v8579_v38  ;;  %v5348_v45 = vpop.permute.xlu1 %5347 }
 0x2cd   : > { %v5122_v5 = vadd.f32 %v6897_v9, %v8579_v38  ;;  %v6797_v60 = vpop.f32.mrb[18].mxu0 }
 0x2ce   : > { %v5155_v43 = vmax.f32 %v5123_v59, 0.0  ;;  %v6898_v27 = vadd.f32 %v6797_v60, %v6537_v36  ;;  %v4870_v35 = vpop.f32.mrb[19].mxu0 }
 0x2cf   : > { %v5154_v16 = vmax.f32 %v5122_v5, 0.0  ;;  %v6899_v4 = vadd.f32 %v4870_v35, %v2593_v30 }
 0x2d0   : > { %5258 = vst.msk [vmem:[%s8589_s18 + $0x8] sm:$0xff] %vm906_vm4, %v5155_v43  ;;  %v5125_v23 = vadd.f32 %v6898_v27, %v8579_v38 }
 0x2d1   : > { %5419 = vst.msk [vmem:[%s8589_s18 + $0x8] sm:$0xff] %vm5417_vm7, %v5324_v32  ;;  %v5124_v52 = vadd.f32 %v6899_v4, %v8579_v38  ;;  %v6800_v37 = vpop.f32.mrb[20].mxu0 }
 0x2d2   : > { %5257 = vst.msk [vmem:[%s8589_s18] sm:$0xff] %vm906_vm4, %v5154_v16  ;;  %v5157_v42 = vmax.f32 %v5125_v23, 0.0  ;;  %v6900_v46 = vadd.f32 %v6800_v37, %v6540_v40  ;;  %v4880_v49 = vpop.f32.mrb[21].mxu0  ;;  %v5350_v16 = vpop.permute.xlu0 %5349 }
 0x2d3   : > { %5418 = vst.msk [vmem:[%s8589_s18] sm:$0xff] %vm5417_vm7, %v5322_v54  ;;  %v5156_v3 = vmax.f32 %v5124_v52, 0.0  ;;  %v6901_v17 = vadd.f32 %v4880_v49, %v8520_v47 }
 0x2d4   : > { %5260 = vst.msk [vmem:[%s8589_s18 + $0x18] sm:$0xff] %vm906_vm4, %v5157_v42  ;;  %v5127_v21 = vadd.f32 %v6900_v46, %v8579_v38 }
 0x2d5   : > { %5421 = vst.msk [vmem:[%s8589_s18 + $0x18] sm:$0xff] %vm5417_vm7, %v5328_v57  ;;  %v5126_v36 = vadd.f32 %v6901_v17, %v8579_v38  ;;  %v6803_v30 = vpop.f32.mrb[22].mxu0 }
 0x2d6   : > { %5259 = vst.msk [vmem:[%s8589_s18 + $0x10] sm:$0xff] %vm906_vm4, %v5156_v3  ;;  %v5159_v40 = vmax.f32 %v5127_v21, 0.0  ;;  %v6902_v54 = vadd.f32 %v6803_v30, %v8522_v14  ;;  %v4890_v47 = vpop.f32.mrb[23].mxu0  ;;  %v5354_v3 = vpop.permute.xlu0 %5353 }
 0x2d7   : > { %5420 = vst.msk [vmem:[%s8589_s18 + $0x10] sm:$0xff] %vm5417_vm7, %v5326_v12  ;;  %v5158_v32 = vmax.f32 %v5126_v36, 0.0  ;;  %v6903_v58 = vadd.f32 %v4890_v47, %v8524_v50 }
 0x2d8   : > { %5262 = vst.msk [vmem:[%s8589_s18 + $0x28] sm:$0xff] %vm906_vm4, %v5159_v40  ;;  %v5129_v57 = vadd.f32 %v6902_v54, %v8579_v38 }
 0x2d9   : > { %5423 = vst.msk [vmem:[%s8589_s18 + $0x28] sm:$0xff] %vm5417_vm7, %v5332_v19  ;;  %v5128_v14 = vadd.f32 %v6903_v58, %v8579_v38  ;;  %v6806_v12 = vpop.f32.mrb[24].mxu0 }
 0x2da   : > { %5261 = vst.msk [vmem:[%s8589_s18 + $0x20] sm:$0xff] %vm906_vm4, %v5158_v32  ;;  %v5161_v9 = vmax.f32 %v5129_v57, 0.0  ;;  %v6904_v50 = vadd.f32 %v6806_v12, %v8526_v56  ;;  %v4900_v59 = vpop.f32.mrb[25].mxu0  ;;  %v5352_v56 = vpop.permute.xlu1 %5351 }
 0x2db   : > { %5422 = vst.msk [vmem:[%s8589_s18 + $0x20] sm:$0xff] %vm5417_vm7, %v5330_v31  ;;  %v5160_v5 = vmax.f32 %v5128_v14, 0.0  ;;  %v6905_v60 = vadd.f32 %v4900_v59, %v8528_v55  ;;  %v5358_v32 = vpop.permute.xlu0 %5357 }
 0x2dc   : > { %5264 = vst.msk [vmem:[%s8589_s18 + $0x38] sm:$0xff] %vm906_vm4, %v5161_v9  ;;  %v5131_v19 = vadd.f32 %v6904_v50, %v8579_v38 }
 0x2dd   : > { %5425 = vst.msk [vmem:[%s8589_s18 + $0x38] sm:$0xff] %vm5417_vm7, %v5336_v63  ;;  %v5130_v31 = vadd.f32 %v6905_v60, %v8579_v38  ;;  %v6809_v43 = vpop.f32.mrb[26].mxu0 }
 0x2de   : > { %5263 = vst.msk [vmem:[%s8589_s18 + $0x30] sm:$0xff] %vm906_vm4, %v5160_v5  ;;  %v5163_v27 = vmax.f32 %v5131_v19, 0.0  ;;  %v6906_v55 = vadd.f32 %v6809_v43, %v8530_v8  ;;  %v4910_v35 = vpop.f32.mrb[27].mxu0  ;;  %v5356_v49 = vpop.permute.xlu1 %5355 }
 0x2df   : > { %5424 = vst.msk [vmem:[%s8589_s18 + $0x30] sm:$0xff] %vm5417_vm7, %v8574_v41  ;;  %v5162_v4 = vmax.f32 %v5130_v31, 0.0  ;;  %v6907_v23 = vadd.f32 %v4910_v35, %v8532_v20  ;;  %v5362_v60 = vpop.permute.xlu0 %5361 }
 0x2e0   : > { %5266 = vst.msk [vmem:[%s8589_s18 + $0x48] sm:$0xff] %vm906_vm4, %v5163_v27  ;;  %v5133_v63 = vadd.f32 %v6906_v55, %v8579_v38 }
 0x2e1   : > { %5427 = vst.msk [vmem:[%s8589_s18 + $0x48] sm:$0xff] %vm5417_vm7, %v8581_v34  ;;  %v5132_v41 = vadd.f32 %v6907_v23, %v8579_v38  ;;  %v6812_v8 = vpop.f32.mrb[28].mxu0 }
 0x2e2   : > { %5265 = vst.msk [vmem:[%s8589_s18 + $0x40] sm:$0xff] %vm906_vm4, %v5162_v4  ;;  %v5165_v52 = vmax.f32 %v5133_v63, 0.0  ;;  %v6908_v20 = vadd.f32 %v6812_v8, %v8534_v18  ;;  %v4920_v37 = vpop.f32.mrb[29].mxu0 }
 0x2e3   : > { %5426 = vst.msk [vmem:[%s8589_s18 + $0x40] sm:$0xff] %vm5417_vm7, %v8591_v6  ;;  %v5164_v42 = vmax.f32 %v5132_v41, 0.0  ;;  %v6909_v46 = vadd.f32 %v4920_v37, %v8536_v24  ;;  %v5366_v63 = vpop.permute.xlu0 %5365 }
 0x2e4   : > { %5268 = vst.msk [vmem:[%s8589_s18 + $0x58] sm:$0xff] %vm906_vm4, %v5165_v52  ;;  %v5135_v34 = vadd.f32 %v6908_v20, %v8579_v38 }
 0x2e5   : > { %5429 = vst.msk [vmem:[%s8589_s18 + $0x58] sm:$0xff] %vm5417_vm7, %v8602_v33  ;;  %v5134_v18 = vadd.f32 %v6909_v46, %v8579_v38  ;;  %v6815_v6 = vpop.f32.mrb[30].mxu0 }
 0x2e6   : > { %5267 = vst.msk [vmem:[%s8589_s18 + $0x50] sm:$0xff] %vm906_vm4, %v5164_v42  ;;  %v5167_v24 = vmax.f32 %v5135_v34, 0.0  ;;  %v6910_v17 = vadd.f32 %v6815_v6, %v8538_v62  ;;  %v4930_v21 = vpop.f32.mrb[31].mxu0  ;;  %v5360_v62 = vpop.permute.xlu1 %5359 }
 0x2e7   : > { %5428 = vst.msk [vmem:[%s8589_s18 + $0x50] sm:$0xff] %vm5417_vm7, %v8606_v10  ;;  %v5166_v36 = vmax.f32 %v5134_v18, 0.0  ;;  %v6911_v30 = vadd.f32 %v4930_v21, %v8540_v44  ;;  %v5370_v18 = vpop.permute.xlu0 %5369 }
 0x2e8   : > { %5270 = vst.msk [vmem:[%s8589_s18 + $0x68] sm:$0xff] %vm906_vm4, %v5167_v24  ;;  %v5137_v33 = vadd.f32 %v6910_v17, %v8579_v38 }
 0x2e9   : > { %5431 = vst.msk [vmem:[%s8589_s18 + $0x68] sm:$0xff] %vm5417_vm7, %v5348_v45  ;;  %v5136_v10 = vadd.f32 %v6911_v30, %v8579_v38  ;;  %v6818_v40 = vpop.f32.mrb[32].mxu0 }
 0x2ea   : > { %5269 = vst.msk [vmem:[%s8589_s18 + $0x60] sm:$0xff] %vm906_vm4, %v5166_v36  ;;  %v5169_v54 = vmax.f32 %v5137_v33, 0.0  ;;  %v6912_v44 = vadd.f32 %v6818_v40, %v8542_v13  ;;  %v4940_v47 = vpop.f32.mrb[33].mxu0  ;;  %v5364_v59 = vpop.permute.xlu1 %5363 }
 0x2eb   : > { %5430 = vst.msk [vmem:[%s8589_s18 + $0x60] sm:$0xff] %vm5417_vm7, %v5346_v1  ;;  %v5168_v58 = vmax.f32 %v5136_v10, 0.0  ;;  %v6913_v57 = vadd.f32 %v4940_v47, %v8544_v15 }
 0x2ec   : > { %5272 = vst.msk [vmem:[%s8589_s18 + $0x78] sm:$0xff] %vm906_vm4, %v5169_v54  ;;  %v5139_v45 = vadd.f32 %v6912_v44, %v8579_v38  ;;  %v5374_v54 = vpop.permute.xlu0 %5373 }
 0x2ed   : > { %5433 = vst.msk [vmem:[%s8589_s18 + $0x78] sm:$0xff] %vm5417_vm7, %v5352_v56  ;;  %v5138_v1 = vadd.f32 %v6913_v57, %v8579_v38  ;;  %v6821_v13 = vpop.f32.mrb[34].mxu0 }
 0x2ee   : > { %5271 = vst.msk [vmem:[%s8589_s18 + $0x70] sm:$0xff] %vm906_vm4, %v5168_v58  ;;  %v5171_v14 = vmax.f32 %v5139_v45, 0.0  ;;  %v6914_v12 = vadd.f32 %v6821_v13, %v8546_v11  ;;  %v4950_v15 = vpop.f32.mrb[35].mxu0 }
 0x2ef   : > { %5432 = vst.msk [vmem:[%s8589_s18 + $0x70] sm:$0xff] %vm5417_vm7, %v5350_v16  ;;  %v5170_v9 = vmax.f32 %v5138_v1, 0.0  ;;  %v6915_v50 = vadd.f32 %v4950_v15, %v8548_v51 }
 0x2f0   : > { %5274 = vst.msk [vmem:[%s8589_s18 + $0x88] sm:$0xff] %vm906_vm4, %v5171_v14  ;;  %v5141_v5 = vadd.f32 %v6914_v12, %v8579_v38  ;;  %v5378_v15 = vpop.permute.xlu0 %5377 }
 0x2f1   : > { %5435 = vst.msk [vmem:[%s8589_s18 + $0x88] sm:$0xff] %vm5417_vm7, %v5356_v49  ;;  %v5140_v11 = vadd.f32 %v6915_v50, %v8579_v38  ;;  %v6824_v19 = vpop.f32.mrb[36].mxu0 }
 0x2f2   : > { %5273 = vst.msk [vmem:[%s8589_s18 + $0x80] sm:$0xff] %vm906_vm4, %v5170_v9  ;;  %v5173_v31 = vmax.f32 %v5141_v5, 0.0  ;;  %v6916_v51 = vadd.f32 %v6824_v19, %v8550_v2  ;;  %v4960_v43 = vpop.f32.mrb[37].mxu0  ;;  %v5368_v2 = vpop.permute.xlu1 %5367 }
 0x2f3   : > { %5434 = vst.msk [vmem:[%s8589_s18 + $0x80] sm:$0xff] %vm5417_vm7, %v5354_v3  ;;  %v5172_v56 = vmax.f32 %v5140_v11, 0.0  ;;  %v6917_v27 = vadd.f32 %v4960_v43, %v8552_v22 }
 0x2f4   : > { %5276 = vst.msk [vmem:[%s8589_s18 + $0x98] sm:$0xff] %vm906_vm4, %v5173_v31  ;;  %v5143_v55 = vadd.f32 %v6916_v51, %v8579_v38 }
 0x2f5   : > { %5437 = vst.msk [vmem:[%s8589_s18 + $0x98] sm:$0xff] %vm5417_vm7, %v5360_v62  ;;  %v5142_v35 = vadd.f32 %v6917_v27, %v8579_v38  ;;  %v6827_v16 = vpop.f32.mrb[38].mxu0 }
 0x2f6   : > { %5275 = vst.msk [vmem:[%s8589_s18 + $0x90] sm:$0xff] %vm906_vm4, %v5172_v56  ;;  %v5175_v4 = vmax.f32 %v5143_v55, 0.0  ;;  %v6918_v22 = vadd.f32 %v6827_v16, %v8554_v0  ;;  %v4970_v23 = vpop.f32.mrb[39].mxu0  ;;  %v5372_v34 = vpop.permute.xlu1 %5371 }
 0x2f7   : > { %5436 = vst.msk [vmem:[%s8589_s18 + $0x90] sm:$0xff] %vm5417_vm7, %v5358_v32  ;;  %v5174_v41 = vmax.f32 %v5142_v35, 0.0  ;;  %v6919_v8 = vadd.f32 %v4970_v23, %v8556_v26 }
 0x2f8   : > { %5278 = vst.msk [vmem:[%s8589_s18 + $0xa8] sm:$0xff] %vm906_vm4, %v5175_v4  ;;  %v5145_v52 = vadd.f32 %v6918_v22, %v8579_v38 }
 0x2f9   : > { %5439 = vst.msk [vmem:[%s8589_s18 + $0xa8] sm:$0xff] %vm5417_vm7, %v5364_v59  ;;  %v5144_v20 = vadd.f32 %v6919_v8, %v8579_v38  ;;  %v6830_v0 = vpop.f32.mrb[40].mxu0 }
 0x2fa   : > { %5277 = vst.msk [vmem:[%s8589_s18 + $0xa0] sm:$0xff] %vm906_vm4, %v5174_v41  ;;  %v5177_v37 = vmax.f32 %v5145_v52, 0.0  ;;  %v6920_v42 = vadd.f32 %v6830_v0, %v8558_v29  ;;  %v4980_v26 = vpop.f32.mrb[41].mxu0 }
 0x2fb   : > { %5438 = vst.msk [vmem:[%s8589_s18 + $0xa0] sm:$0xff] %vm5417_vm7, %v5362_v60  ;;  %v5176_v46 = vmax.f32 %v5144_v20, 0.0  ;;  %v6921_v49 = vadd.f32 %v4980_v26, %v8560_v53 }
 0x2fc   : > { %5280 = vst.msk [vmem:[%s8589_s18 + $0xb8] sm:$0xff] %vm906_vm4, %v5177_v37  ;;  %v5147_v3 = vadd.f32 %v6920_v42, %v8579_v38 }
 0x2fd   : > { %5441 = vst.msk [vmem:[%s8589_s18 + $0xb8] sm:$0xff] %vm5417_vm7, %v5368_v2  ;;  %v5146_v29 = vadd.f32 %v6921_v49, %v8579_v38  ;;  %v6833_v6 = vpop.f32.mrb[42].mxu0 }
 0x2fe   : > { %5279 = vst.msk [vmem:[%s8589_s18 + $0xb0] sm:$0xff] %vm906_vm4, %v5176_v46  ;;  %v5179_v24 = vmax.f32 %v5147_v3, 0.0  ;;  %v6922_v53 = vadd.f32 %v6833_v6, %v8562_v39  ;;  %v4990_v17 = vpop.f32.mrb[43].mxu0  ;;  %v5376_v39 = vpop.permute.xlu1 %5375 }
 0x2ff   : > { %5440 = vst.msk [vmem:[%s8589_s18 + $0xb0] sm:$0xff] %vm5417_vm7, %v5366_v63  ;;  %v5178_v21 = vmax.f32 %v5146_v29, 0.0  ;;  %v6923_v36 = vadd.f32 %v4990_v17, %v8564_v28 }
 0x300   : > { %5282 = vst.msk [vmem:[%s8589_s18 + $0xc8] sm:$0xff] %vm906_vm4, %v5179_v24  ;;  %v5149_v30 = vadd.f32 %v6922_v53, %v8579_v38 }
 0x301   : > { %5443 = vst.msk [vmem:[%s8589_s18 + $0xc8] sm:$0xff] %vm5417_vm7, %v5372_v34  ;;  %v5148_v33 = vadd.f32 %v6923_v36, %v8579_v38  ;;  %v6836_v10 = vpop.f32.mrb[44].mxu0 }
 0x302   : > { %5281 = vst.msk [vmem:[%s8589_s18 + $0xc0] sm:$0xff] %vm906_vm4, %v5178_v21  ;;  %v5181_v40 = vmax.f32 %v5149_v30, 0.0  ;;  %v6924_v28 = vadd.f32 %v6836_v10, %v8566_v61  ;;  %v5000_v62 = vpop.f32.mrb[45].mxu0  ;;  %v5380_v14 = vpop.permute.xlu1 %5379 }
 0x303   : > { %5442 = vst.msk [vmem:[%s8589_s18 + $0xc0] sm:$0xff] %vm5417_vm7, %v5370_v18  ;;  %v5180_v44 = vmax.f32 %v5148_v33, 0.0  ;;  %v6925_v47 = vadd.f32 %v5000_v62, %v8568_v25 }
 0x304   : > { %5284 = vst.msk [vmem:[%s8589_s18 + $0xd8] sm:$0xff] %vm906_vm4, %v5181_v40  ;;  %v5151_v32 = vadd.f32 %v6924_v28, %v8579_v38 }
 0x305   : > { %5445 = vst.msk [vmem:[%s8589_s18 + $0xd8] sm:$0xff] %vm5417_vm7, %v5376_v39  ;;  %v5150_v58 = vadd.f32 %v6925_v47, %v8579_v38  ;;  %v6839_v61 = vpop.f32.mrb[46].mxu0 }
 0x306   : > { %5283 = vst.msk [vmem:[%s8589_s18 + $0xd0] sm:$0xff] %vm906_vm4, %v5180_v44  ;;  %v5183_v57 = vmax.f32 %v5151_v32, 0.0  ;;  %v6926_v25 = vadd.f32 %v6839_v61, %v8570_v7  ;;  %v5010_v45 = vpop.f32.mrb[47].mxu0  ;;  %v5384_v59 = vpop.permute.xlu1 %5383 }
 0x307   : > { %5444 = vst.msk [vmem:[%s8589_s18 + $0xd0] sm:$0xff] %vm5417_vm7, %v5374_v54  ;;  %v5182_v1 = vmax.f32 %v5150_v58, 0.0  ;;  %v6927_v13 = vadd.f32 %v5010_v45, %v8572_v48  ;;  %v5382_v48 = vpop.permute.xlu0 %5381 }
 0x308   : > { %5286 = vst.msk [vmem:[%s8589_s18 + $0xe8] sm:$0xff] %vm906_vm4, %v5183_v57  ;;  %v5153_v12 = vadd.f32 %v6926_v25, %v8579_v38 }
 0x309   : > { %5447 = vst.msk [vmem:[%s8589_s18 + $0xe8] sm:$0xff] %vm5417_vm7, %v5380_v14  ;;  %v5152_v9 = vadd.f32 %v6927_v13, %v8579_v38 }
 0x30a   : > { %5285 = vst.msk [vmem:[%s8589_s18 + $0xe0] sm:$0xff] %vm906_vm4, %v5182_v1  ;;  %v5185_v7 = vmax.f32 %v5153_v12, 0.0 }
 0x30b   : > { %5446 = vst.msk [vmem:[%s8589_s18 + $0xe0] sm:$0xff] %vm5417_vm7, %v5378_v15  ;;  %v5184_v50 = vmax.f32 %v5152_v9, 0.0 }
 0x30c   : > { %5288 = vst.msk [vmem:[%s8589_s18 + $0xf8] sm:$0xff] %vm906_vm4, %v5185_v7 }
 0x30d   : > { %5449 = vst.msk [vmem:[%s8589_s18 + $0xf8] sm:$0xff] %vm5417_vm7, %v5384_v59 }
 0x30e   : > { %5287 = vst.msk [vmem:[%s8589_s18 + $0xf0] sm:$0xff] %vm906_vm4, %v5184_v50 }
 0x30f   : > { %5448 = vst.msk [vmem:[%s8589_s18 + $0xf0] sm:$0xff] %vm5417_vm7, %v5382_v48 }
 0x310 PF: > { %s17_s24 = sadd.s32 1, %s7217_s24  }
 0x311   : > { %p14_p4 = scmp.ge.s32.totalorder %s17_s24, 4  }
 0x313   :  { %16 = sbr.rel (!%p14_p4) target bundleno = 1 (0x1), region = 90 }

</bundles_post_ra>
